<compile_context>
chip_gen: v6e
topology: v6e:2x2x1
jax: 0.10.0
libtpu: 0.0.40
codegen_flags: <defaults>
</compile_context>

<pallas_src>
import functools

import jax
import jax.numpy as jnp
from jax import lax
from jax.experimental import pallas as pl
from jax.experimental.pallas import tpu as pltpu

F32 = jnp.float32
BF16 = jnp.bfloat16


def _round_up(x, m):
    return ((x + m - 1) // m) * m


# ----------------------------------------------------------------------------
# Pallas kernels
# ----------------------------------------------------------------------------
def _mm_bias_act_kernel(x_ref, w_ref, b_ref, o_ref, *, act, mm_dtype):
    """y = act(x @ w + b); matmul operands in mm_dtype, f32 accumulation."""
    x = x_ref[...].astype(mm_dtype)
    w = w_ref[...].astype(mm_dtype)
    y = jnp.dot(x, w, preferred_element_type=jnp.float32) + b_ref[...]
    if act == "relu":
        y = jnp.maximum(y, 0.0)
    o_ref[...] = y.astype(o_ref.dtype)


def _conv3x3_taps_kernel(x_ref, w_ref, b_ref, o_ref, *, wp, n_rows, cin, act):
    """3x3 / stride-1 conv: 9 accumulating in-kernel dots over shifted views
    of a flattened, spatially padded per-image slab (no HBM im2col)."""
    cout = o_ref.shape[-1]
    acc = jnp.zeros((n_rows, cout), jnp.float32) + b_ref[...]
    for t in range(9):
        dy, dx = t // 3, t % 3
        off = dy * wp + dx
        patch = x_ref[0, off:off + n_rows, :].astype(jnp.float32)
        w_t = w_ref[t * cin:(t + 1) * cin, :].astype(jnp.float32)
        acc = acc + jnp.dot(patch, w_t, preferred_element_type=jnp.float32)
    if act == "relu":
        acc = jnp.maximum(acc, 0.0)
    o_ref[0] = acc.astype(o_ref.dtype)


def _esa_tail_kernel(r_ref, c3_ref, c1_ref, x_ref, wf_ref, bf_ref,
                     w4_ref, b4_ref, o_ref):
    """Fused ESA tail: bilinear-resize-as-matmul + conv_f + add + conv4 +
    sigmoid + (x * mask) gate, in a single HBM pass."""
    c3u = jnp.dot(r_ref[...], c3_ref[0].astype(jnp.float32),
                  preferred_element_type=jnp.float32)                 # (tm, f)
    cf = jnp.dot(c1_ref[0].astype(jnp.float32), wf_ref[...],
                 preferred_element_type=jnp.float32) + bf_ref[...]    # (tm, f)
    c4 = jnp.dot(c3u + cf, w4_ref[...],
                 preferred_element_type=jnp.float32) + b4_ref[...]    # (tm, nf)
    z = jnp.clip(c4, -30.0, 30.0)
    m = pl.reciprocal(1.0 + jnp.exp(-z), approx=True)                 # sigmoid
    o_ref[0] = (x_ref[0].astype(jnp.float32) * m).astype(o_ref.dtype)


# ----------------------------------------------------------------------------
# Pallas wrappers
# ----------------------------------------------------------------------------
def matmul_bias_act(x, w, b, act="none", out_dtype=F32, mm_dtype=F32, tm=1024):
    """x:(M,K) @ w:(K,Cout) + b with fused activation, tiled over M."""
    M, K = x.shape
    cout = w.shape[1]
    tm = min(tm, _round_up(M, 8))
    mp = _round_up(M, tm)
    if mp != M:
        x = jnp.pad(x, ((0, mp - M), (0, 0)))
    out = pl.pallas_call(
        functools.partial(_mm_bias_act_kernel, act=act, mm_dtype=mm_dtype),
        out_shape=jax.ShapeDtypeStruct((mp, cout), out_dtype),
        grid_spec=pltpu.PrefetchScalarGridSpec(
            num_scalar_prefetch=0,
            grid=(mp // tm,),
            in_specs=[
                pl.BlockSpec((tm, K), lambda i: (i, 0)),
                pl.BlockSpec((K, cout), lambda i: (0, 0)),
                pl.BlockSpec((1, cout), lambda i: (0, 0)),
            ],
            out_specs=pl.BlockSpec((tm, cout), lambda i: (i, 0)),
        ),
        compiler_params=pltpu.CompilerParams(dimension_semantics=("parallel",)),
    )(x, w, b.reshape(1, cout).astype(jnp.float32))
    return out if mp == M else out[:M]


def conv3x3_s1(x, w, b, act="none", out_dtype=F32):
    """3x3 / stride-1 / pad-1 conv (NHWC) with in-kernel 9-tap accumulation.
    w: (9*Cin, Cout), tap-major (dy, dx, cin)."""
    N, H, W, cin = x.shape
    cout = w.shape[1]
    hp, wp = H + 2, W + 2
    valid_rows = H * wp                       # valid cols are (row % wp) < W
    n_rows = _round_up(valid_rows, 8)         # MXU-friendly row count
    total_rows = n_rows + 2 * wp + 2          # last tap offset is 2*wp + 2
    xp = jnp.pad(x, ((0, 0), (1, 1), (1, 1), (0, 0))).reshape(N, hp * wp, cin)
    xp = jnp.pad(xp, ((0, 0), (0, total_rows - hp * wp), (0, 0)))
    out = pl.pallas_call(
        functools.partial(_conv3x3_taps_kernel, wp=wp, n_rows=n_rows,
                          cin=cin, act=act),
        out_shape=jax.ShapeDtypeStruct((N, n_rows, cout), out_dtype),
        grid_spec=pltpu.PrefetchScalarGridSpec(
            num_scalar_prefetch=0,
            grid=(N,),
            in_specs=[
                pl.BlockSpec((1, total_rows, cin), lambda n: (n, 0, 0)),
                pl.BlockSpec((9 * cin, cout), lambda n: (0, 0)),
                pl.BlockSpec((1, cout), lambda n: (0, 0)),
            ],
            out_specs=pl.BlockSpec((1, n_rows, cout), lambda n: (n, 0, 0)),
        ),
        compiler_params=pltpu.CompilerParams(dimension_semantics=("parallel",)),
    )(xp, w, b.reshape(1, cout).astype(jnp.float32))
    return out[:, :valid_rows, :].reshape(N, H, wp, cout)[:, :, :W, :]


def esa_tail(r_mat, c3_small, c1_flat, x_flat, pf, p4, tm=512):
    """Fused bilinear-resize + conv_f + add + conv4 + sigmoid + gate."""
    N, HW, f = c1_flat.shape
    nf = x_flat.shape[-1]
    hw = r_mat.shape[1]
    if HW % tm != 0:
        tm = HW
    wf, bf_ = pf
    w4, b4 = p4
    return pl.pallas_call(
        _esa_tail_kernel,
        out_shape=jax.ShapeDtypeStruct((N, HW, nf), jnp.float32),
        grid_spec=pltpu.PrefetchScalarGridSpec(
            num_scalar_prefetch=0,
            grid=(N, HW // tm),
            in_specs=[
                pl.BlockSpec((tm, hw), lambda n, i: (i, 0)),
                pl.BlockSpec((1, hw, f), lambda n, i: (n, 0, 0)),
                pl.BlockSpec((1, tm, f), lambda n, i: (n, i, 0)),
                pl.BlockSpec((1, tm, nf), lambda n, i: (n, i, 0)),
                pl.BlockSpec((f, f), lambda n, i: (0, 0)),
                pl.BlockSpec((1, f), lambda n, i: (0, 0)),
                pl.BlockSpec((f, nf), lambda n, i: (0, 0)),
                pl.BlockSpec((1, nf), lambda n, i: (0, 0)),
            ],
            out_specs=pl.BlockSpec((1, tm, nf), lambda n, i: (n, i, 0)),
        ),
        compiler_params=pltpu.CompilerParams(
            dimension_semantics=("parallel", "parallel")),
    )(r_mat.astype(jnp.float32), c3_small, c1_flat, x_flat,
      wf.astype(jnp.float32), bf_.reshape(1, f).astype(jnp.float32),
      w4.astype(jnp.float32), b4.reshape(1, nf).astype(jnp.float32))


# ----------------------------------------------------------------------------
# Glue helpers (tiny, plain JAX)
# ----------------------------------------------------------------------------
def _interp_matrix(out_size, in_size):
    """Interpolation matrix matching F.interpolate(mode='bilinear',
    align_corners=False) along one axis."""
    d = jnp.arange(out_size, dtype=jnp.float32)
    s = jnp.maximum((d + 0.5) * (in_size / out_size) - 0.5, 0.0)
    i0 = jnp.clip(jnp.floor(s).astype(jnp.int32), 0, in_size - 1)
    i1 = jnp.clip(i0 + 1, 0, in_size - 1)
    lam = s - i0.astype(jnp.float32)
    rows = jnp.arange(out_size)
    m = jnp.zeros((out_size, in_size), jnp.float32)
    m = m.at[rows, i0].add(1.0 - lam)
    m = m.at[rows, i1].add(lam)
    return m


# ----------------------------------------------------------------------------
# ESA forward
# ----------------------------------------------------------------------------
def esa_forward(x_nchw, p):
    x = jnp.transpose(x_nchw, (0, 2, 3, 1)).astype(jnp.float32)   # NCHW -> NHWC
    N, H, W, nf = x.shape
    f = p["conv1"][0].shape[1]

    # conv1: 1x1, nf -> f.  bf16 matmul operands, bf16 activation storage.
    c1_flat = matmul_bias_act(x.reshape(N * H * W, nf), *p["conv1"],
                              out_dtype=BF16, mm_dtype=BF16, tm=1024)
    c1_img = c1_flat.reshape(N, H, W, f)

    # conv2: 3x3 / stride 2 / pad 0 -- stride-2 patches built directly
    # (no 4x over-compute); the matmul runs in Pallas.
    ho, wo = (H - 3) // 2 + 1, (W - 3) // 2 + 1
    cols = [c1_img[:, dy:dy + 2 * (ho - 1) + 1:2, dx:dx + 2 * (wo - 1) + 1:2, :]
            for dy in range(3) for dx in range(3)]
    patches = jnp.concatenate(cols, axis=-1).reshape(N * ho * wo, 9 * f)
    c1 = matmul_bias_act(patches, *p["conv2"]).reshape(N, ho, wo, f)

    # TODO(synk): 7x7 / stride-3 max-pool kept as lax.reduce_window glue
    # (tiny tensor, no clean Pallas win).
    v_max = lax.reduce_window(c1, -jnp.inf, lax.max,
                              (1, 7, 7, 1), (1, 3, 3, 1), "VALID")

    # Three 3x3 pad-1 convs with in-kernel 9-tap accumulation (no HBM im2col).
    v_range = conv3x3_s1(v_max, *p["conv_max"], act="relu")
    c3 = conv3x3_s1(v_range, *p["conv3"], act="relu")
    c3 = conv3x3_s1(c3, *p["conv3_"])

    # Fused tail: bilinear upsample (as matmul) + conv_f + add + conv4 +
    # sigmoid + x*mask gate -- one Pallas kernel.
    hm, wm = c3.shape[1], c3.shape[2]
    ry = _interp_matrix(H, hm)
    rx = _interp_matrix(W, wm)
    r_mat = jnp.einsum('yi,xj->yxij', ry, rx).reshape(H * W, hm * wm)
    out = esa_tail(r_mat, c3.reshape(N, hm * wm, f),
                   c1_flat.reshape(N, H * W, f),
                   x.reshape(N, H * W, nf), p["conv_f"], p["conv4"])
    return jnp.transpose(out.reshape(N, H, W, nf), (0, 3, 1, 2))


# ----------------------------------------------------------------------------
# Pure-JAX reference (for the built-in numerical self-check)
# ----------------------------------------------------------------------------
def _conv2d_ref(x, w_oihw, b, stride=1, padding=0):
    y = lax.conv_general_dilated(
        x, w_oihw, (stride, stride),
        [(padding, padding), (padding, padding)],
        dimension_numbers=('NHWC', 'OIHW', 'NHWC'))
    return y + b.reshape(1, 1, 1, -1)


def esa_reference(x_nchw, raw):
    x = jnp.transpose(x_nchw, (0, 2, 3, 1))
    N, H, W, _ = x.shape
    c1_ = _conv2d_ref(x, *raw["conv1"])
    c1 = _conv2d_ref(c1_, *raw["conv2"], stride=2, padding=0)
    v_max = lax.reduce_window(c1, -jnp.inf, lax.max,
                              (1, 7, 7, 1), (1, 3, 3, 1), "VALID")
    v_range = jax.nn.relu(_conv2d_ref(v_max, *raw["conv_max"], padding=1))
    c3 = jax.nn.relu(_conv2d_ref(v_range, *raw["conv3"], padding=1))
    c3 = _conv2d_ref(c3, *raw["conv3_"], padding=1)
    ry = _interp_matrix(H, c3.shape[1])
    rx = _interp_matrix(W, c3.shape[2])
    c3 = jnp.einsum('yi,nijc->nyjc', ry, c3)
    c3 = jnp.einsum('xj,nyjc->nyxc', rx, c3)
    cf = _conv2d_ref(c1_, *raw["conv_f"])
    c4 = _conv2d_ref(c3 + cf, *raw["conv4"])
    out = x * jax.nn.sigmoid(c4)
    return jnp.transpose(out, (0, 3, 1, 2))


# ----------------------------------------------------------------------------
# Deterministic parameter init (PyTorch-shaped, then repacked for the kernels)
# ----------------------------------------------------------------------------
def init_params(key, n_feats):
    f = n_feats // 4
    specs = [("conv1", n_feats, f, 1), ("conv2", f, f, 3),
             ("conv_max", f, f, 3), ("conv3", f, f, 3), ("conv3_", f, f, 3),
             ("conv_f", f, f, 1), ("conv4", f, n_feats, 1)]
    keys = jax.random.split(key, 2 * len(specs))
    packed, raw = {}, {}
    for idx, (name, cin, cout, k) in enumerate(specs):
        std = (cin * k * k) ** -0.5
        w = jax.random.normal(keys[2 * idx], (cout, cin, k, k), jnp.float32) * std
        b = jax.random.normal(keys[2 * idx + 1], (cout,), jnp.float32) * 0.01
        if k == 1:
            w_packed = jnp.transpose(w[:, :, 0, 0], (1, 0))                   # (cin, cout)
        else:
            w_packed = jnp.transpose(w, (2, 3, 1, 0)).reshape(k * k * cin, cout)
        packed[name] = (w_packed, b)
        raw[name] = (w, b)
    return packed, raw


# ----------------------------------------------------------------------------
if __name__ == "__main__":
    key = jax.random.PRNGKey(0)
    kx, kp = jax.random.split(key)

    N, n_feats, H, W = 2, 16, 32, 32
    x = jax.random.uniform(kx, (N, n_feats, H, W), jnp.float32)
    packed, raw = init_params(kp, n_feats)

    fwd = jax.jit(esa_forward)
    y = fwd(x, packed)
    jax.block_until_ready(y)

    y_ref = jax.jit(esa_reference)(x, raw)
    jax.block_until_ready(y_ref)

    assert y.shape == (N, n_feats, H, W)
    assert bool(jnp.all(jnp.isfinite(y)))
    max_err = float(jnp.max(jnp.abs(y - y_ref)))
    assert max_err < 2e-2, f"max abs error vs reference: {max_err}"
    print("KERNEL_OK")
</pallas_src>

<mosaic_0001>
module attributes {stable_mosaic.version = 11 : i64} {
  func.func private @main(%arg0: i32) attributes {dimension_semantics = [#tpu.dimension_semantics<core_parallel>], iteration_bounds = array<i64: 2>, tpu.core_type = #tpu.core_type<sc_scalar_subcore>, window_params = []} {
    return
  }
}

module attributes {stable_mosaic.version = 11 : i64} {
  func.func private @main(%arg0: i32) attributes {dimension_semantics = [#tpu.dimension_semantics<core_parallel>], iteration_bounds = array<i64: 2>, tpu.core_type = #tpu.core_type<sc_scalar_subcore>, window_params = []} {
    return
  }
}

module attributes {stable_mosaic.version = 11 : i64} {
  func.func @_mm_bias_act_kernel(%arg0: i32, %arg1: memref<1024x16xf32, #tpu.memory_space<vmem>>, %arg2: memref<16x4xf32, #tpu.memory_space<vmem>>, %arg3: memref<1x4xf32, #tpu.memory_space<vmem>>, %arg4: memref<1024x4xbf16, #tpu.memory_space<vmem>>) attributes {dimension_semantics = [#tpu.dimension_semantics<parallel>], iteration_bounds = array<i64: 2>, scalar_prefetch = 0 : i64, scratch_operands = 0 : i64, tpu.core_type = #tpu.core_type<tc>, window_params = [{transform_indices = @transform_0, window_bounds = array<i64: 1024, 16>}, {pipeline_mode = #tpu.pipeline_mode<synchronous>, transform_indices = @transform_1, window_bounds = array<i64: 16, 4>}, {pipeline_mode = #tpu.pipeline_mode<synchronous>, transform_indices = @transform_2, window_bounds = array<i64: 1, 4>}, {transform_indices = @transform_3, window_bounds = array<i64: 1024, 4>}]} {
    %c0 = arith.constant 0 : index
    %c0_0 = arith.constant 0 : index
    %0 = vector.load %arg1[%c0, %c0_0] : memref<1024x16xf32, #tpu.memory_space<vmem>>, vector<1024x16xf32>
    %1 = arith.truncf %0 : vector<1024x16xf32> to vector<1024x16xbf16>
    %c0_1 = arith.constant 0 : index
    %c0_2 = arith.constant 0 : index
    %2 = vector.load %arg2[%c0_1, %c0_2] : memref<16x4xf32, #tpu.memory_space<vmem>>, vector<16x4xf32>
    %3 = arith.truncf %2 : vector<16x4xf32> to vector<16x4xbf16>
    %cst = arith.constant dense<0.000000e+00> : vector<1024x4xf32>
    %4 = tpu.matmul %1, %3, %cst {dimension_numbers = #tpu.dot_dimension_numbers<[1], [0], [0], [1], [0, 0, 1, 1], [], []>} : vector<1024x16xbf16>, vector<16x4xbf16>, vector<1024x4xf32> -> vector<1024x4xf32>
    %c0_3 = arith.constant 0 : index
    %c0_4 = arith.constant 0 : index
    %5 = vector.load %arg3[%c0_3, %c0_4] : memref<1x4xf32, #tpu.memory_space<vmem>>, vector<1x4xf32>
    %6 = vector.broadcast %5 : vector<1x4xf32> to vector<1024x4xf32>
    %7 = arith.addf %4, %6 : vector<1024x4xf32>
    %8 = arith.truncf %7 : vector<1024x4xf32> to vector<1024x4xbf16>
    %c0_5 = arith.constant 0 : index
    %c0_6 = arith.constant 0 : index
    %9 = vector.load %arg4[%c0_5, %c0_6] : memref<1024x4xbf16, #tpu.memory_space<vmem>>, vector<1024x4xbf16>
    tpu.vector_store %arg4[%c0_5, %c0_6], %8 {strides = array<i32>} : memref<1024x4xbf16, #tpu.memory_space<vmem>>, vector<1024x4xbf16>,
    return
  }
  func.func @transform_0(%arg0: i32) -> (i32, i32) {
    %c0_i32 = arith.constant 0 : i32
    %c0_i32_0 = arith.constant 0 : i32
    return %arg0, %c0_i32 : i32, i32
  }
  func.func @transform_1(%arg0: i32) -> (i32, i32) {
    %c0_i32 = arith.constant 0 : i32
    %c0_i32_0 = arith.constant 0 : i32
    %c0_i32_1 = arith.constant 0 : i32
    return %c0_i32, %c0_i32_0 : i32, i32
  }
  func.func @transform_2(%arg0: i32) -> (i32, i32) {
    %c0_i32 = arith.constant 0 : i32
    %c0_i32_0 = arith.constant 0 : i32
    %c0_i32_1 = arith.constant 0 : i32
    return %c0_i32, %c0_i32_0 : i32, i32
  }
  func.func @transform_3(%arg0: i32) -> (i32, i32) {
    %c0_i32 = arith.constant 0 : i32
    %c0_i32_0 = arith.constant 0 : i32
    return %arg0, %c0_i32 : i32, i32
  }
}

module attributes {stable_mosaic.version = 11 : i64} {
  func.func @_mm_bias_act_kernel(%arg0: i32, %arg1: memref<456x36xbf16, #tpu.memory_space<vmem>>, %arg2: memref<36x4xf32, #tpu.memory_space<vmem>>, %arg3: memref<1x4xf32, #tpu.memory_space<vmem>>, %arg4: memref<456x4xf32, #tpu.memory_space<vmem>>) attributes {dimension_semantics = [#tpu.dimension_semantics<parallel>], iteration_bounds = array<i64: 1>, scalar_prefetch = 0 : i64, scratch_operands = 0 : i64, tpu.core_type = #tpu.core_type<tc>, window_params = [{transform_indices = @transform_0, window_bounds = array<i64: 456, 36>}, {pipeline_mode = #tpu.pipeline_mode<synchronous>, transform_indices = @transform_1, window_bounds = array<i64: 36, 4>}, {pipeline_mode = #tpu.pipeline_mode<synchronous>, transform_indices = @transform_2, window_bounds = array<i64: 1, 4>}, {transform_indices = @transform_3, window_bounds = array<i64: 456, 4>}]} {
    %c0 = arith.constant 0 : index
    %c0_0 = arith.constant 0 : index
    %0 = vector.load %arg1[%c0, %c0_0] : memref<456x36xbf16, #tpu.memory_space<vmem>>, vector<456x36xbf16>
    %1 = arith.extf %0 : vector<456x36xbf16> to vector<456x36xf32>
    %c0_1 = arith.constant 0 : index
    %c0_2 = arith.constant 0 : index
    %2 = vector.load %arg2[%c0_1, %c0_2] : memref<36x4xf32, #tpu.memory_space<vmem>>, vector<36x4xf32>
    %cst = arith.constant dense<0.000000e+00> : vector<456x4xf32>
    %3 = tpu.matmul %1, %2, %cst {dimension_numbers = #tpu.dot_dimension_numbers<[1], [0], [0], [1], [0, 0, 1, 1], [], []>} : vector<456x36xf32>, vector<36x4xf32>, vector<456x4xf32> -> vector<456x4xf32>
    %c0_3 = arith.constant 0 : index
    %c0_4 = arith.constant 0 : index
    %4 = vector.load %arg3[%c0_3, %c0_4] : memref<1x4xf32, #tpu.memory_space<vmem>>, vector<1x4xf32>
    %5 = vector.broadcast %4 : vector<1x4xf32> to vector<456x4xf32>
    %6 = arith.addf %3, %5 : vector<456x4xf32>
    %c0_5 = arith.constant 0 : index
    %c0_6 = arith.constant 0 : index
    %7 = vector.load %arg4[%c0_5, %c0_6] : memref<456x4xf32, #tpu.memory_space<vmem>>, vector<456x4xf32>
    tpu.vector_store %arg4[%c0_5, %c0_6], %6 {strides = array<i32>} : memref<456x4xf32, #tpu.memory_space<vmem>>, vector<456x4xf32>,
    return
  }
  func.func @transform_0(%arg0: i32) -> (i32, i32) {
    %c0_i32 = arith.constant 0 : i32
    %c0_i32_0 = arith.constant 0 : i32
    return %arg0, %c0_i32 : i32, i32
  }
  func.func @transform_1(%arg0: i32) -> (i32, i32) {
    %c0_i32 = arith.constant 0 : i32
    %c0_i32_0 = arith.constant 0 : i32
    %c0_i32_1 = arith.constant 0 : i32
    return %c0_i32, %c0_i32_0 : i32, i32
  }
  func.func @transform_2(%arg0: i32) -> (i32, i32) {
    %c0_i32 = arith.constant 0 : i32
    %c0_i32_0 = arith.constant 0 : i32
    %c0_i32_1 = arith.constant 0 : i32
    return %c0_i32, %c0_i32_0 : i32, i32
  }
  func.func @transform_3(%arg0: i32) -> (i32, i32) {
    %c0_i32 = arith.constant 0 : i32
    %c0_i32_0 = arith.constant 0 : i32
    return %arg0, %c0_i32 : i32, i32
  }
}

module attributes {stable_mosaic.version = 11 : i64} {
  func.func @_conv3x3_taps_kernel(%arg0: i32, %arg1: memref<1x28x4xf32, #tpu.memory_space<vmem>>, %arg2: memref<36x4xf32, #tpu.memory_space<vmem>>, %arg3: memref<1x4xf32, #tpu.memory_space<vmem>>, %arg4: memref<1x16x4xf32, #tpu.memory_space<vmem>>) attributes {dimension_semantics = [#tpu.dimension_semantics<parallel>], iteration_bounds = array<i64: 2>, scalar_prefetch = 0 : i64, scratch_operands = 0 : i64, tpu.core_type = #tpu.core_type<tc>, window_params = [{transform_indices = @transform_0, window_bounds = array<i64: 1, 28, 4>}, {pipeline_mode = #tpu.pipeline_mode<synchronous>, transform_indices = @transform_1, window_bounds = array<i64: 36, 4>}, {pipeline_mode = #tpu.pipeline_mode<synchronous>, transform_indices = @transform_2, window_bounds = array<i64: 1, 4>}, {transform_indices = @transform_3, window_bounds = array<i64: 1, 16, 4>}]} {
    %cst = arith.constant 0.000000e+00 : f32
    %0 = vector.broadcast %cst : f32 to vector<16x4xf32>
    %c0 = arith.constant 0 : index
    %c0_0 = arith.constant 0 : index
    %1 = vector.load %arg3[%c0, %c0_0] : memref<1x4xf32, #tpu.memory_space<vmem>>, vector<1x4xf32>
    %2 = vector.broadcast %1 : vector<1x4xf32> to vector<16x4xf32>
    %3 = arith.addf %0, %2 : vector<16x4xf32>
    %c0_1 = arith.constant 0 : index
    %c0_2 = arith.constant 0 : index
    %c0_3 = arith.constant 0 : index
    %4 = vector.load %arg1[%c0_1, %c0_2, %c0_3] : memref<1x28x4xf32, #tpu.memory_space<vmem>>, vector<1x16x4xf32>
    %5 = vector.shape_cast %4 : vector<1x16x4xf32> to vector<16x4xf32>
    %c0_4 = arith.constant 0 : index
    %c0_5 = arith.constant 0 : index
    %6 = vector.load %arg2[%c0_4, %c0_5] : memref<36x4xf32, #tpu.memory_space<vmem>>, vector<4x4xf32>
    %cst_6 = arith.constant dense<0.000000e+00> : vector<16x4xf32>
    %7 = tpu.matmul %5, %6, %cst_6 {dimension_numbers = #tpu.dot_dimension_numbers<[1], [0], [0], [1], [0, 0, 1, 1], [], []>} : vector<16x4xf32>, vector<4x4xf32>, vector<16x4xf32> -> vector<16x4xf32>
    %8 = arith.addf %3, %7 : vector<16x4xf32>
    %c0_7 = arith.constant 0 : index
    %c1 = arith.constant 1 : index
    %c0_8 = arith.constant 0 : index
    %9 = vector.load %arg1[%c0_7, %c1, %c0_8] : memref<1x28x4xf32, #tpu.memory_space<vmem>>, vector<1x16x4xf32>
    %10 = vector.shape_cast %9 : vector<1x16x4xf32> to vector<16x4xf32>
    %c4 = arith.constant 4 : index
    %c0_9 = arith.constant 0 : index
    %11 = vector.load %arg2[%c4, %c0_9] : memref<36x4xf32, #tpu.memory_space<vmem>>, vector<4x4xf32>
    %cst_10 = arith.constant dense<0.000000e+00> : vector<16x4xf32>
    %12 = tpu.matmul %10, %11, %cst_10 {dimension_numbers = #tpu.dot_dimension_numbers<[1], [0], [0], [1], [0, 0, 1, 1], [], []>} : vector<16x4xf32>, vector<4x4xf32>, vector<16x4xf32> -> vector<16x4xf32>
    %13 = arith.addf %8, %12 : vector<16x4xf32>
    %c0_11 = arith.constant 0 : index
    %c2 = arith.constant 2 : index
    %c0_12 = arith.constant 0 : index
    %14 = vector.load %arg1[%c0_11, %c2, %c0_12] : memref<1x28x4xf32, #tpu.memory_space<vmem>>, vector<1x16x4xf32>
    %15 = vector.shape_cast %14 : vector<1x16x4xf32> to vector<16x4xf32>
    %c8 = arith.constant 8 : index
    %c0_13 = arith.constant 0 : index
    %16 = vector.load %arg2[%c8, %c0_13] : memref<36x4xf32, #tpu.memory_space<vmem>>, vector<4x4xf32>
    %cst_14 = arith.constant dense<0.000000e+00> : vector<16x4xf32>
    %17 = tpu.matmul %15, %16, %cst_14 {dimension_numbers = #tpu.dot_dimension_numbers<[1], [0], [0], [1], [0, 0, 1, 1], [], []>} : vector<16x4xf32>, vector<4x4xf32>, vector<16x4xf32> -> vector<16x4xf32>
    %18 = arith.addf %13, %17 : vector<16x4xf32>
    %c0_15 = arith.constant 0 : index
    %c5 = arith.constant 5 : index
    %c0_16 = arith.constant 0 : index
    %19 = vector.load %arg1[%c0_15, %c5, %c0_16] : memref<1x28x4xf32, #tpu.memory_space<vmem>>, vector<1x16x4xf32>
    %20 = vector.shape_cast %19 : vector<1x16x4xf32> to vector<16x4xf32>
    %c12 = arith.constant 12 : index
    %c0_17 = arith.constant 0 : index
    %21 = vector.load %arg2[%c12, %c0_17] : memref<36x4xf32, #tpu.memory_space<vmem>>, vector<4x4xf32>
    %cst_18 = arith.constant dense<0.000000e+00> : vector<16x4xf32>
    %22 = tpu.matmul %20, %21, %cst_18 {dimension_numbers = #tpu.dot_dimension_numbers<[1], [0], [0], [1], [0, 0, 1, 1], [], []>} : vector<16x4xf32>, vector<4x4xf32>, vector<16x4xf32> -> vector<16x4xf32>
    %23 = arith.addf %18, %22 : vector<16x4xf32>
    %c0_19 = arith.constant 0 : index
    %c6 = arith.constant 6 : index
    %c0_20 = arith.constant 0 : index
    %24 = vector.load %arg1[%c0_19, %c6, %c0_20] : memref<1x28x4xf32, #tpu.memory_space<vmem>>, vector<1x16x4xf32>
    %25 = vector.shape_cast %24 : vector<1x16x4xf32> to vector<16x4xf32>
    %c16 = arith.constant 16 : index
    %c0_21 = arith.constant 0 : index
    %26 = vector.load %arg2[%c16, %c0_21] : memref<36x4xf32, #tpu.memory_space<vmem>>, vector<4x4xf32>
    %cst_22 = arith.constant dense<0.000000e+00> : vector<16x4xf32>
    %27 = tpu.matmul %25, %26, %cst_22 {dimension_numbers = #tpu.dot_dimension_numbers<[1], [0], [0], [1], [0, 0, 1, 1], [], []>} : vector<16x4xf32>, vector<4x4xf32>, vector<16x4xf32> -> vector<16x4xf32>
    %28 = arith.addf %23, %27 : vector<16x4xf32>
    %c0_23 = arith.constant 0 : index
    %c7 = arith.constant 7 : index
    %c0_24 = arith.constant 0 : index
    %29 = vector.load %arg1[%c0_23, %c7, %c0_24] : memref<1x28x4xf32, #tpu.memory_space<vmem>>, vector<1x16x4xf32>
    %30 = vector.shape_cast %29 : vector<1x16x4xf32> to vector<16x4xf32>
    %c20 = arith.constant 20 : index
    %c0_25 = arith.constant 0 : index
    %31 = vector.load %arg2[%c20, %c0_25] : memref<36x4xf32, #tpu.memory_space<vmem>>, vector<4x4xf32>
    %cst_26 = arith.constant dense<0.000000e+00> : vector<16x4xf32>
    %32 = tpu.matmul %30, %31, %cst_26 {dimension_numbers = #tpu.dot_dimension_numbers<[1], [0], [0], [1], [0, 0, 1, 1], [], []>} : vector<16x4xf32>, vector<4x4xf32>, vector<16x4xf32> -> vector<16x4xf32>
    %33 = arith.addf %28, %32 : vector<16x4xf32>
    %c0_27 = arith.constant 0 : index
    %c10 = arith.constant 10 : index
    %c0_28 = arith.constant 0 : index
    %34 = vector.load %arg1[%c0_27, %c10, %c0_28] : memref<1x28x4xf32, #tpu.memory_space<vmem>>, vector<1x16x4xf32>
    %35 = vector.shape_cast %34 : vector<1x16x4xf32> to vector<16x4xf32>
    %c24 = arith.constant 24 : index
    %c0_29 = arith.constant 0 : index
    %36 = vector.load %arg2[%c24, %c0_29] : memref<36x4xf32, #tpu.memory_space<vmem>>, vector<4x4xf32>
    %cst_30 = arith.constant dense<0.000000e+00> : vector<16x4xf32>
    %37 = tpu.matmul %35, %36, %cst_30 {dimension_numbers = #tpu.dot_dimension_numbers<[1], [0], [0], [1], [0, 0, 1, 1], [], []>} : vector<16x4xf32>, vector<4x4xf32>, vector<16x4xf32> -> vector<16x4xf32>
    %38 = arith.addf %33, %37 : vector<16x4xf32>
    %c0_31 = arith.constant 0 : index
    %c11 = arith.constant 11 : index
    %c0_32 = arith.constant 0 : index
    %39 = vector.load %arg1[%c0_31, %c11, %c0_32] : memref<1x28x4xf32, #tpu.memory_space<vmem>>, vector<1x16x4xf32>
    %40 = vector.shape_cast %39 : vector<1x16x4xf32> to vector<16x4xf32>
    %c28 = arith.constant 28 : index
    %c0_33 = arith.constant 0 : index
    %41 = vector.load %arg2[%c28, %c0_33] : memref<36x4xf32, #tpu.memory_space<vmem>>, vector<4x4xf32>
    %cst_34 = arith.constant dense<0.000000e+00> : vector<16x4xf32>
    %42 = tpu.matmul %40, %41, %cst_34 {dimension_numbers = #tpu.dot_dimension_numbers<[1], [0], [0], [1], [0, 0, 1, 1], [], []>} : vector<16x4xf32>, vector<4x4xf32>, vector<16x4xf32> -> vector<16x4xf32>
    %43 = arith.addf %38, %42 : vector<16x4xf32>
    %c0_35 = arith.constant 0 : index
    %c12_36 = arith.constant 12 : index
    %c0_37 = arith.constant 0 : index
    %44 = vector.load %arg1[%c0_35, %c12_36, %c0_37] : memref<1x28x4xf32, #tpu.memory_space<vmem>>, vector<1x16x4xf32>
    %45 = vector.shape_cast %44 : vector<1x16x4xf32> to vector<16x4xf32>
    %c32 = arith.constant 32 : index
    %c0_38 = arith.constant 0 : index
    %46 = vector.load %arg2[%c32, %c0_38] : memref<36x4xf32, #tpu.memory_space<vmem>>, vector<4x4xf32>
    %cst_39 = arith.constant dense<0.000000e+00> : vector<16x4xf32>
    %47 = tpu.matmul %45, %46, %cst_39 {dimension_numbers = #tpu.dot_dimension_numbers<[1], [0], [0], [1], [0, 0, 1, 1], [], []>} : vector<16x4xf32>, vector<4x4xf32>, vector<16x4xf32> -> vector<16x4xf32>
    %48 = arith.addf %43, %47 : vector<16x4xf32>
    %cst_40 = arith.constant 0.000000e+00 : f32
    %49 = vector.broadcast %cst_40 : f32 to vector<16x4xf32>
    %50 = arith.maximumf %48, %49 : vector<16x4xf32>
    %c0_41 = arith.constant 0 : index
    %c0_42 = arith.constant 0 : index
    %c0_43 = arith.constant 0 : index
    %51 = vector.load %arg4[%c0_41, %c0_42, %c0_43] : memref<1x16x4xf32, #tpu.memory_space<vmem>>, vector<1x16x4xf32>
    %52 = vector.shape_cast %51 : vector<1x16x4xf32> to vector<16x4xf32>
    %53 = vector.shape_cast %50 : vector<16x4xf32> to vector<1x16x4xf32>
    tpu.vector_store %arg4[%c0_41, %c0_42, %c0_43], %53 {strides = array<i32>} : memref<1x16x4xf32, #tpu.memory_space<vmem>>, vector<1x16x4xf32>,
    return
  }
  func.func @transform_0(%arg0: i32) -> (i32, i32, i32) {
    %c0_i32 = arith.constant 0 : i32
    %c0_i32_0 = arith.constant 0 : i32
    %c0_i32_1 = arith.constant 0 : i32
    return %arg0, %c0_i32, %c0_i32_0 : i32, i32, i32
  }
  func.func @transform_1(%arg0: i32) -> (i32, i32) {
    %c0_i32 = arith.constant 0 : i32
    %c0_i32_0 = arith.constant 0 : i32
    %c0_i32_1 = arith.constant 0 : i32
    return %c0_i32, %c0_i32_0 : i32, i32
  }
  func.func @transform_2(%arg0: i32) -> (i32, i32) {
    %c0_i32 = arith.constant 0 : i32
    %c0_i32_0 = arith.constant 0 : i32
    %c0_i32_1 = arith.constant 0 : i32
    return %c0_i32, %c0_i32_0 : i32, i32
  }
  func.func @transform_3(%arg0: i32) -> (i32, i32, i32) {
    %c0_i32 = arith.constant 0 : i32
    %c0_i32_0 = arith.constant 0 : i32
    %c0_i32_1 = arith.constant 0 : i32
    return %arg0, %c0_i32, %c0_i32_0 : i32, i32, i32
  }
}

module attributes {stable_mosaic.version = 11 : i64} {
  func.func @_conv3x3_taps_kernel(%arg0: i32, %arg1: memref<1x28x4xf32, #tpu.memory_space<vmem>>, %arg2: memref<36x4xf32, #tpu.memory_space<vmem>>, %arg3: memref<1x4xf32, #tpu.memory_space<vmem>>, %arg4: memref<1x16x4xf32, #tpu.memory_space<vmem>>) attributes {dimension_semantics = [#tpu.dimension_semantics<parallel>], iteration_bounds = array<i64: 2>, scalar_prefetch = 0 : i64, scratch_operands = 0 : i64, tpu.core_type = #tpu.core_type<tc>, window_params = [{transform_indices = @transform_0, window_bounds = array<i64: 1, 28, 4>}, {pipeline_mode = #tpu.pipeline_mode<synchronous>, transform_indices = @transform_1, window_bounds = array<i64: 36, 4>}, {pipeline_mode = #tpu.pipeline_mode<synchronous>, transform_indices = @transform_2, window_bounds = array<i64: 1, 4>}, {transform_indices = @transform_3, window_bounds = array<i64: 1, 16, 4>}]} {
    %cst = arith.constant 0.000000e+00 : f32
    %0 = vector.broadcast %cst : f32 to vector<16x4xf32>
    %c0 = arith.constant 0 : index
    %c0_0 = arith.constant 0 : index
    %1 = vector.load %arg3[%c0, %c0_0] : memref<1x4xf32, #tpu.memory_space<vmem>>, vector<1x4xf32>
    %2 = vector.broadcast %1 : vector<1x4xf32> to vector<16x4xf32>
    %3 = arith.addf %0, %2 : vector<16x4xf32>
    %c0_1 = arith.constant 0 : index
    %c0_2 = arith.constant 0 : index
    %c0_3 = arith.constant 0 : index
    %4 = vector.load %arg1[%c0_1, %c0_2, %c0_3] : memref<1x28x4xf32, #tpu.memory_space<vmem>>, vector<1x16x4xf32>
    %5 = vector.shape_cast %4 : vector<1x16x4xf32> to vector<16x4xf32>
    %c0_4 = arith.constant 0 : index
    %c0_5 = arith.constant 0 : index
    %6 = vector.load %arg2[%c0_4, %c0_5] : memref<36x4xf32, #tpu.memory_space<vmem>>, vector<4x4xf32>
    %cst_6 = arith.constant dense<0.000000e+00> : vector<16x4xf32>
    %7 = tpu.matmul %5, %6, %cst_6 {dimension_numbers = #tpu.dot_dimension_numbers<[1], [0], [0], [1], [0, 0, 1, 1], [], []>} : vector<16x4xf32>, vector<4x4xf32>, vector<16x4xf32> -> vector<16x4xf32>
    %8 = arith.addf %3, %7 : vector<16x4xf32>
    %c0_7 = arith.constant 0 : index
    %c1 = arith.constant 1 : index
    %c0_8 = arith.constant 0 : index
    %9 = vector.load %arg1[%c0_7, %c1, %c0_8] : memref<1x28x4xf32, #tpu.memory_space<vmem>>, vector<1x16x4xf32>
    %10 = vector.shape_cast %9 : vector<1x16x4xf32> to vector<16x4xf32>
    %c4 = arith.constant 4 : index
    %c0_9 = arith.constant 0 : index
    %11 = vector.load %arg2[%c4, %c0_9] : memref<36x4xf32, #tpu.memory_space<vmem>>, vector<4x4xf32>
    %cst_10 = arith.constant dense<0.000000e+00> : vector<16x4xf32>
    %12 = tpu.matmul %10, %11, %cst_10 {dimension_numbers = #tpu.dot_dimension_numbers<[1], [0], [0], [1], [0, 0, 1, 1], [], []>} : vector<16x4xf32>, vector<4x4xf32>, vector<16x4xf32> -> vector<16x4xf32>
    %13 = arith.addf %8, %12 : vector<16x4xf32>
    %c0_11 = arith.constant 0 : index
    %c2 = arith.constant 2 : index
    %c0_12 = arith.constant 0 : index
    %14 = vector.load %arg1[%c0_11, %c2, %c0_12] : memref<1x28x4xf32, #tpu.memory_space<vmem>>, vector<1x16x4xf32>
    %15 = vector.shape_cast %14 : vector<1x16x4xf32> to vector<16x4xf32>
    %c8 = arith.constant 8 : index
    %c0_13 = arith.constant 0 : index
    %16 = vector.load %arg2[%c8, %c0_13] : memref<36x4xf32, #tpu.memory_space<vmem>>, vector<4x4xf32>
    %cst_14 = arith.constant dense<0.000000e+00> : vector<16x4xf32>
    %17 = tpu.matmul %15, %16, %cst_14 {dimension_numbers = #tpu.dot_dimension_numbers<[1], [0], [0], [1], [0, 0, 1, 1], [], []>} : vector<16x4xf32>, vector<4x4xf32>, vector<16x4xf32> -> vector<16x4xf32>
    %18 = arith.addf %13, %17 : vector<16x4xf32>
    %c0_15 = arith.constant 0 : index
    %c5 = arith.constant 5 : index
    %c0_16 = arith.constant 0 : index
    %19 = vector.load %arg1[%c0_15, %c5, %c0_16] : memref<1x28x4xf32, #tpu.memory_space<vmem>>, vector<1x16x4xf32>
    %20 = vector.shape_cast %19 : vector<1x16x4xf32> to vector<16x4xf32>
    %c12 = arith.constant 12 : index
    %c0_17 = arith.constant 0 : index
    %21 = vector.load %arg2[%c12, %c0_17] : memref<36x4xf32, #tpu.memory_space<vmem>>, vector<4x4xf32>
    %cst_18 = arith.constant dense<0.000000e+00> : vector<16x4xf32>
    %22 = tpu.matmul %20, %21, %cst_18 {dimension_numbers = #tpu.dot_dimension_numbers<[1], [0], [0], [1], [0, 0, 1, 1], [], []>} : vector<16x4xf32>, vector<4x4xf32>, vector<16x4xf32> -> vector<16x4xf32>
    %23 = arith.addf %18, %22 : vector<16x4xf32>
    %c0_19 = arith.constant 0 : index
    %c6 = arith.constant 6 : index
    %c0_20 = arith.constant 0 : index
    %24 = vector.load %arg1[%c0_19, %c6, %c0_20] : memref<1x28x4xf32, #tpu.memory_space<vmem>>, vector<1x16x4xf32>
    %25 = vector.shape_cast %24 : vector<1x16x4xf32> to vector<16x4xf32>
    %c16 = arith.constant 16 : index
    %c0_21 = arith.constant 0 : index
    %26 = vector.load %arg2[%c16, %c0_21] : memref<36x4xf32, #tpu.memory_space<vmem>>, vector<4x4xf32>
    %cst_22 = arith.constant dense<0.000000e+00> : vector<16x4xf32>
    %27 = tpu.matmul %25, %26, %cst_22 {dimension_numbers = #tpu.dot_dimension_numbers<[1], [0], [0], [1], [0, 0, 1, 1], [], []>} : vector<16x4xf32>, vector<4x4xf32>, vector<16x4xf32> -> vector<16x4xf32>
    %28 = arith.addf %23, %27 : vector<16x4xf32>
    %c0_23 = arith.constant 0 : index
    %c7 = arith.constant 7 : index
    %c0_24 = arith.constant 0 : index
    %29 = vector.load %arg1[%c0_23, %c7, %c0_24] : memref<1x28x4xf32, #tpu.memory_space<vmem>>, vector<1x16x4xf32>
    %30 = vector.shape_cast %29 : vector<1x16x4xf32> to vector<16x4xf32>
    %c20 = arith.constant 20 : index
    %c0_25 = arith.constant 0 : index
    %31 = vector.load %arg2[%c20, %c0_25] : memref<36x4xf32, #tpu.memory_space<vmem>>, vector<4x4xf32>
    %cst_26 = arith.constant dense<0.000000e+00> : vector<16x4xf32>
    %32 = tpu.matmul %30, %31, %cst_26 {dimension_numbers = #tpu.dot_dimension_numbers<[1], [0], [0], [1], [0, 0, 1, 1], [], []>} : vector<16x4xf32>, vector<4x4xf32>, vector<16x4xf32> -> vector<16x4xf32>
    %33 = arith.addf %28, %32 : vector<16x4xf32>
    %c0_27 = arith.constant 0 : index
    %c10 = arith.constant 10 : index
    %c0_28 = arith.constant 0 : index
    %34 = vector.load %arg1[%c0_27, %c10, %c0_28] : memref<1x28x4xf32, #tpu.memory_space<vmem>>, vector<1x16x4xf32>
    %35 = vector.shape_cast %34 : vector<1x16x4xf32> to vector<16x4xf32>
    %c24 = arith.constant 24 : index
    %c0_29 = arith.constant 0 : index
    %36 = vector.load %arg2[%c24, %c0_29] : memref<36x4xf32, #tpu.memory_space<vmem>>, vector<4x4xf32>
    %cst_30 = arith.constant dense<0.000000e+00> : vector<16x4xf32>
    %37 = tpu.matmul %35, %36, %cst_30 {dimension_numbers = #tpu.dot_dimension_numbers<[1], [0], [0], [1], [0, 0, 1, 1], [], []>} : vector<16x4xf32>, vector<4x4xf32>, vector<16x4xf32> -> vector<16x4xf32>
    %38 = arith.addf %33, %37 : vector<16x4xf32>
    %c0_31 = arith.constant 0 : index
    %c11 = arith.constant 11 : index
    %c0_32 = arith.constant 0 : index
    %39 = vector.load %arg1[%c0_31, %c11, %c0_32] : memref<1x28x4xf32, #tpu.memory_space<vmem>>, vector<1x16x4xf32>
    %40 = vector.shape_cast %39 : vector<1x16x4xf32> to vector<16x4xf32>
    %c28 = arith.constant 28 : index
    %c0_33 = arith.constant 0 : index
    %41 = vector.load %arg2[%c28, %c0_33] : memref<36x4xf32, #tpu.memory_space<vmem>>, vector<4x4xf32>
    %cst_34 = arith.constant dense<0.000000e+00> : vector<16x4xf32>
    %42 = tpu.matmul %40, %41, %cst_34 {dimension_numbers = #tpu.dot_dimension_numbers<[1], [0], [0], [1], [0, 0, 1, 1], [], []>} : vector<16x4xf32>, vector<4x4xf32>, vector<16x4xf32> -> vector<16x4xf32>
    %43 = arith.addf %38, %42 : vector<16x4xf32>
    %c0_35 = arith.constant 0 : index
    %c12_36 = arith.constant 12 : index
    %c0_37 = arith.constant 0 : index
    %44 = vector.load %arg1[%c0_35, %c12_36, %c0_37] : memref<1x28x4xf32, #tpu.memory_space<vmem>>, vector<1x16x4xf32>
    %45 = vector.shape_cast %44 : vector<1x16x4xf32> to vector<16x4xf32>
    %c32 = arith.constant 32 : index
    %c0_38 = arith.constant 0 : index
    %46 = vector.load %arg2[%c32, %c0_38] : memref<36x4xf32, #tpu.memory_space<vmem>>, vector<4x4xf32>
    %cst_39 = arith.constant dense<0.000000e+00> : vector<16x4xf32>
    %47 = tpu.matmul %45, %46, %cst_39 {dimension_numbers = #tpu.dot_dimension_numbers<[1], [0], [0], [1], [0, 0, 1, 1], [], []>} : vector<16x4xf32>, vector<4x4xf32>, vector<16x4xf32> -> vector<16x4xf32>
    %48 = arith.addf %43, %47 : vector<16x4xf32>
    %c0_40 = arith.constant 0 : index
    %c0_41 = arith.constant 0 : index
    %c0_42 = arith.constant 0 : index
    %49 = vector.load %arg4[%c0_40, %c0_41, %c0_42] : memref<1x16x4xf32, #tpu.memory_space<vmem>>, vector<1x16x4xf32>
    %50 = vector.shape_cast %49 : vector<1x16x4xf32> to vector<16x4xf32>
    %51 = vector.shape_cast %48 : vector<16x4xf32> to vector<1x16x4xf32>
    tpu.vector_store %arg4[%c0_40, %c0_41, %c0_42], %51 {strides = array<i32>} : memref<1x16x4xf32, #tpu.memory_space<vmem>>, vector<1x16x4xf32>,
    return
  }
  func.func @transform_0(%arg0: i32) -> (i32, i32, i32) {
    %c0_i32 = arith.constant 0 : i32
    %c0_i32_0 = arith.constant 0 : i32
    %c0_i32_1 = arith.constant 0 : i32
    return %arg0, %c0_i32, %c0_i32_0 : i32, i32, i32
  }
  func.func @transform_1(%arg0: i32) -> (i32, i32) {
    %c0_i32 = arith.constant 0 : i32
    %c0_i32_0 = arith.constant 0 : i32
    %c0_i32_1 = arith.constant 0 : i32
    return %c0_i32, %c0_i32_0 : i32, i32
  }
  func.func @transform_2(%arg0: i32) -> (i32, i32) {
    %c0_i32 = arith.constant 0 : i32
    %c0_i32_0 = arith.constant 0 : i32
    %c0_i32_1 = arith.constant 0 : i32
    return %c0_i32, %c0_i32_0 : i32, i32
  }
  func.func @transform_3(%arg0: i32) -> (i32, i32, i32) {
    %c0_i32 = arith.constant 0 : i32
    %c0_i32_0 = arith.constant 0 : i32
    %c0_i32_1 = arith.constant 0 : i32
    return %arg0, %c0_i32, %c0_i32_0 : i32, i32, i32
  }
}

module attributes {stable_mosaic.version = 11 : i64} {
  func.func @_esa_tail_kernel(%arg0: i32, %arg1: i32, %arg2: memref<512x9xf32, #tpu.memory_space<vmem>>, %arg3: memref<1x9x4xf32, #tpu.memory_space<vmem>>, %arg4: memref<1x512x4xbf16, #tpu.memory_space<vmem>>, %arg5: memref<1x512x16xf32, #tpu.memory_space<vmem>>, %arg6: memref<4x4xf32, #tpu.memory_space<vmem>>, %arg7: memref<1x4xf32, #tpu.memory_space<vmem>>, %arg8: memref<4x16xf32, #tpu.memory_space<vmem>>, %arg9: memref<1x16xf32, #tpu.memory_space<vmem>>, %arg10: memref<1x512x16xf32, #tpu.memory_space<vmem>>) attributes {dimension_semantics = [#tpu.dimension_semantics<parallel>, #tpu.dimension_semantics<parallel>], iteration_bounds = array<i64: 2, 2>, scalar_prefetch = 0 : i64, scratch_operands = 0 : i64, tpu.core_type = #tpu.core_type<tc>, window_params = [{transform_indices = @transform_0, window_bounds = array<i64: 512, 9>}, {transform_indices = @transform_1, window_bounds = array<i64: 1, 9, 4>}, {transform_indices = @transform_2, window_bounds = array<i64: 1, 512, 4>}, {transform_indices = @transform_3, window_bounds = array<i64: 1, 512, 16>}, {pipeline_mode = #tpu.pipeline_mode<synchronous>, transform_indices = @transform_4, window_bounds = array<i64: 4, 4>}, {pipeline_mode = #tpu.pipeline_mode<synchronous>, transform_indices = @transform_5, window_bounds = array<i64: 1, 4>}, {pipeline_mode = #tpu.pipeline_mode<synchronous>, transform_indices = @transform_6, window_bounds = array<i64: 4, 16>}, {pipeline_mode = #tpu.pipeline_mode<synchronous>, transform_indices = @transform_7, window_bounds = array<i64: 1, 16>}, {transform_indices = @transform_8, window_bounds = array<i64: 1, 512, 16>}]} {
    %c0 = arith.constant 0 : index
    %c0_0 = arith.constant 0 : index
    %0 = vector.load %arg2[%c0, %c0_0] : memref<512x9xf32, #tpu.memory_space<vmem>>, vector<512x9xf32>
    %c0_1 = arith.constant 0 : index
    %c0_2 = arith.constant 0 : index
    %c0_3 = arith.constant 0 : index
    %1 = vector.load %arg3[%c0_1, %c0_2, %c0_3] : memref<1x9x4xf32, #tpu.memory_space<vmem>>, vector<1x9x4xf32>
    %2 = vector.shape_cast %1 : vector<1x9x4xf32> to vector<9x4xf32>
    %cst = arith.constant dense<0.000000e+00> : vector<512x4xf32>
    %3 = tpu.matmul %0, %2, %cst {dimension_numbers = #tpu.dot_dimension_numbers<[1], [0], [0], [1], [0, 0, 1, 1], [], []>} : vector<512x9xf32>, vector<9x4xf32>, vector<512x4xf32> -> vector<512x4xf32>
    %c0_4 = arith.constant 0 : index
    %c0_5 = arith.constant 0 : index
    %c0_6 = arith.constant 0 : index
    %4 = vector.load %arg4[%c0_4, %c0_5, %c0_6] : memref<1x512x4xbf16, #tpu.memory_space<vmem>>, vector<1x512x4xbf16>
    %5 = vector.shape_cast %4 : vector<1x512x4xbf16> to vector<512x4xbf16>
    %6 = arith.extf %5 : vector<512x4xbf16> to vector<512x4xf32>
    %c0_7 = arith.constant 0 : index
    %c0_8 = arith.constant 0 : index
    %7 = vector.load %arg6[%c0_7, %c0_8] : memref<4x4xf32, #tpu.memory_space<vmem>>, vector<4x4xf32>
    %cst_9 = arith.constant dense<0.000000e+00> : vector<512x4xf32>
    %8 = tpu.matmul %6, %7, %cst_9 {dimension_numbers = #tpu.dot_dimension_numbers<[1], [0], [0], [1], [0, 0, 1, 1], [], []>} : vector<512x4xf32>, vector<4x4xf32>, vector<512x4xf32> -> vector<512x4xf32>
    %c0_10 = arith.constant 0 : index
    %c0_11 = arith.constant 0 : index
    %9 = vector.load %arg7[%c0_10, %c0_11] : memref<1x4xf32, #tpu.memory_space<vmem>>, vector<1x4xf32>
    %10 = vector.broadcast %9 : vector<1x4xf32> to vector<512x4xf32>
    %11 = arith.addf %8, %10 : vector<512x4xf32>
    %12 = arith.addf %3, %11 : vector<512x4xf32>
    %c0_12 = arith.constant 0 : index
    %c0_13 = arith.constant 0 : index
    %13 = vector.load %arg8[%c0_12, %c0_13] : memref<4x16xf32, #tpu.memory_space<vmem>>, vector<4x16xf32>
    %cst_14 = arith.constant dense<0.000000e+00> : vector<512x16xf32>
    %14 = tpu.matmul %12, %13, %cst_14 {dimension_numbers = #tpu.dot_dimension_numbers<[1], [0], [0], [1], [0, 0, 1, 1], [], []>} : vector<512x4xf32>, vector<4x16xf32>, vector<512x16xf32> -> vector<512x16xf32>
    %c0_15 = arith.constant 0 : index
    %c0_16 = arith.constant 0 : index
    %15 = vector.load %arg9[%c0_15, %c0_16] : memref<1x16xf32, #tpu.memory_space<vmem>>, vector<1x16xf32>
    %16 = vector.broadcast %15 : vector<1x16xf32> to vector<512x16xf32>
    %17 = arith.addf %14, %16 : vector<512x16xf32>
    %cst_17 = arith.constant -3.000000e+01 : f32
    %cst_18 = arith.constant 3.000000e+01 : f32
    %18 = vector.broadcast %cst_17 : f32 to vector<512x16xf32>
    %19 = arith.maximumf %18, %17 : vector<512x16xf32>
    %20 = vector.broadcast %cst_18 : f32 to vector<512x16xf32>
    %21 = arith.minimumf %20, %19 : vector<512x16xf32>
    %cst_19 = arith.constant 0.000000e+00 : f32
    %22 = vector.broadcast %cst_19 : f32 to vector<512x16xf32>
    %23 = arith.subf %22, %21 : vector<512x16xf32>
    %24 = math.exp %23 : vector<512x16xf32>
    %cst_20 = arith.constant 1.000000e+00 : f32
    %25 = vector.broadcast %cst_20 : f32 to vector<512x16xf32>
    %26 = arith.addf %25, %24 : vector<512x16xf32>
    %27 = tpu.reciprocal %26 {approx = true} : vector<512x16xf32> -> vector<512x16xf32>
    %c0_21 = arith.constant 0 : index
    %c0_22 = arith.constant 0 : index
    %c0_23 = arith.constant 0 : index
    %28 = vector.load %arg5[%c0_21, %c0_22, %c0_23] : memref<1x512x16xf32, #tpu.memory_space<vmem>>, vector<1x512x16xf32>
    %29 = vector.shape_cast %28 : vector<1x512x16xf32> to vector<512x16xf32>
    %30 = arith.mulf %29, %27 : vector<512x16xf32>
    %c0_24 = arith.constant 0 : index
    %c0_25 = arith.constant 0 : index
    %c0_26 = arith.constant 0 : index
    %31 = vector.load %arg10[%c0_24, %c0_25, %c0_26] : memref<1x512x16xf32, #tpu.memory_space<vmem>>, vector<1x512x16xf32>
    %32 = vector.shape_cast %31 : vector<1x512x16xf32> to vector<512x16xf32>
    %33 = vector.shape_cast %30 : vector<512x16xf32> to vector<1x512x16xf32>
    tpu.vector_store %arg10[%c0_24, %c0_25, %c0_26], %33 {strides = array<i32>} : memref<1x512x16xf32, #tpu.memory_space<vmem>>, vector<1x512x16xf32>,
    return
  }
  func.func @transform_0(%arg0: i32, %arg1: i32) -> (i32, i32) {
    %c0_i32 = arith.constant 0 : i32
    %c0_i32_0 = arith.constant 0 : i32
    return %arg1, %c0_i32 : i32, i32
  }
  func.func @transform_1(%arg0: i32, %arg1: i32) -> (i32, i32, i32) {
    %c0_i32 = arith.constant 0 : i32
    %c0_i32_0 = arith.constant 0 : i32
    %c0_i32_1 = arith.constant 0 : i32
    return %arg0, %c0_i32, %c0_i32_0 : i32, i32, i32
  }
  func.func @transform_2(%arg0: i32, %arg1: i32) -> (i32, i32, i32) {
    %c0_i32 = arith.constant 0 : i32
    %c0_i32_0 = arith.constant 0 : i32
    return %arg0, %arg1, %c0_i32 : i32, i32, i32
  }
  func.func @transform_3(%arg0: i32, %arg1: i32) -> (i32, i32, i32) {
    %c0_i32 = arith.constant 0 : i32
    %c0_i32_0 = arith.constant 0 : i32
    return %arg0, %arg1, %c0_i32 : i32, i32, i32
  }
  func.func @transform_4(%arg0: i32, %arg1: i32) -> (i32, i32) {
    %c0_i32 = arith.constant 0 : i32
    %c0_i32_0 = arith.constant 0 : i32
    %c0_i32_1 = arith.constant 0 : i32
    return %c0_i32, %c0_i32_0 : i32, i32
  }
  func.func @transform_5(%arg0: i32, %arg1: i32) -> (i32, i32) {
    %c0_i32 = arith.constant 0 : i32
    %c0_i32_0 = arith.constant 0 : i32
    %c0_i32_1 = arith.constant 0 : i32
    return %c0_i32, %c0_i32_0 : i32, i32
  }
  func.func @transform_6(%arg0: i32, %arg1: i32) -> (i32, i32) {
    %c0_i32 = arith.constant 0 : i32
    %c0_i32_0 = arith.constant 0 : i32
    %c0_i32_1 = arith.constant 0 : i32
    return %c0_i32, %c0_i32_0 : i32, i32
  }
  func.func @transform_7(%arg0: i32, %arg1: i32) -> (i32, i32) {
    %c0_i32 = arith.constant 0 : i32
    %c0_i32_0 = arith.constant 0 : i32
    %c0_i32_1 = arith.constant 0 : i32
    return %c0_i32, %c0_i32_0 : i32, i32
  }
  func.func @transform_8(%arg0: i32, %arg1: i32) -> (i32, i32, i32) {
    %c0_i32 = arith.constant 0 : i32
    %c0_i32_0 = arith.constant 0 : i32
    return %arg0, %arg1, %c0_i32 : i32, i32, i32
  }
}

</mosaic_0001>

<bundles_post_ra>
// kernel: esa_forward.6
= control target key start
LH: loop header
LB: loop body
LE: loop exit
PB: predicated region body
PF: predicated region fallthrough
CT: control target
= control target key end

     0   :  { %s2377_s12 = smov 0   ;;  %s2989_s0 = inlined_call_operand.vmem [shape: f32[2048,16], index: 0, kind: input, shape index: {}]   ;;  %s2990_s1 = inlined_call_operand.vmem [shape: f32[16,4], index: 1, kind: input, shape index: {}]   ;;  %s2991_s2 = inlined_call_operand.vmem [shape: f32[1,4], index: 2, kind: input, shape index: {}]   ;;  %s2992_s3 = inlined_call_operand.vmem [shape: bf16[2048,4], index: 3, kind: output, shape index: {}]  }
   0x1 LB: > { %s1812_s13 = sadd.s32 4294967295, %s2355_s12   ;;  %p1816_p0 = scmp.ge.s32.totalorder %s2355_s12, 1  ;;  %s2355_s12 = sphi %s2377_s12, %s13_s12  }
   0x2   : > { %p138_p1 = scmp.lt.s32.totalorder %s2355_s12, 3 }
   0x4   : > { %p139_p2 = pnand %p1816_p0, %p138_p1 }
   0x5   : > { %s1817_s18 = sshll.u32 (!%p139_p2), %s1812_s13, 7 }
   0x6   : > { %142 = sbr.rel (%p139_p2) target bundleno = 343 (0x157), region = 32  ;;  %p163_p3 = scmp.lt.s32.totalorder (!%p139_p2), %s1817_s18, 255 }
   0xb   : > { %v367_v0 = vld [vmem:[%s2990_s1] sm:$0xff]  ;;  %v368_v1 = vld [vmem:[%s2990_s1 + $0x8] sm:$0xff]  ;;  %s2994_s18 = smov (!%p163_p3, %s1817_s18), 255  ;;  %vm377_vm0 = vcmask 130048   ;;  %vm1627_vm1 = vcmask 27648  }
   0xc   : > { %v369_v2 = vpack.c.bf16 %v368_v1, %v367_v0  ;;  %s1818_s19 = sshll.u32 %s2994_s18, 3  ;;  %s1820_s25 = sshll.u32 %s2994_s18, 2 }
   0xd   : > { %s2397_s22 = scalar_lea.vmem %s2989_s0, %s1818_s19  ;;  %s2601_s28 = scalar_lea.vmem %s2992_s3, %s1820_s25 }
   0xe   : > { %2209 = vmatprep.subr.bf16.mxu0 %v369_v2  ;;  %2339 = vmatprep.subr.bf16.mxu1 %v369_v2  ;;  %v175_v3 = vld [vmem:[%s2397_s22] sm:$0xff]  ;;  %v176_v4 = vld [vmem:[%s2397_s22 + $0x8] sm:$0xff]  ;;  %v177_v8 = vld [vmem:[%s2397_s22 + $0x10] sm:$0xff] }
   0xf   : > { %2210 = vmatpush3.bf16.msra.mxu0 %v369_v2  ;;  %2340 = vmatpush3.bf16.msra.mxu1 %v369_v2  ;;  %v239_v5 = vld [vmem:[%s2397_s22 + $0x200] sm:$0xff]  ;;  %v303_v6 = vpack.c.bf16 %v176_v4, %v175_v3  ;;  %v240_v7 = vld [vmem:[%s2397_s22 + $0x208] sm:$0xff]  ;;  %v178_v9 = vld [vmem:[%s2397_s22 + $0x18] sm:$0xff] }
  0x10   : > { %v335_v10 = vpack.c.bf16 %v240_v7, %v239_v5  ;;  %v304_v11 = vpack.c.bf16 %v178_v9, %v177_v8  ;;  %v241_v12 = vld [vmem:[%s2397_s22 + $0x210] sm:$0xff]  ;;  %v242_v13 = vld [vmem:[%s2397_s22 + $0x218] sm:$0xff]  ;;  %v179_v14 = vld [vmem:[%s2397_s22 + $0x20] sm:$0xff] }
  0x11   : > { %2211 = vmatprep.mubr.msk.bf16.mxu0 %vm377_vm0, %v303_v6  ;;  %v336_v15 = vpack.c.bf16 %v242_v13, %v241_v12  ;;  %v180_v16 = vld [vmem:[%s2397_s22 + $0x28] sm:$0xff]  ;;  %v243_v17 = vld [vmem:[%s2397_s22 + $0x220] sm:$0xff]  ;;  %v181_v21 = vld [vmem:[%s2397_s22 + $0x30] sm:$0xff] }
  0x12   : > { %v244_v18 = vld [vmem:[%s2397_s22 + $0x228] sm:$0xff]  ;;  %2275 = vmatprep.mubr.msk.bf16.mxu1 %vm377_vm0, %v335_v10  ;;  %2212 = vmatmul.mubr.msk.bf16.vlgmr.msra.gmra.mxu0 %vm377_vm0, %v304_v11  ;;  %v305_v19 = vpack.c.bf16 %v180_v16, %v179_v14  ;;  %v182_v22 = vld [vmem:[%s2397_s22 + $0x38] sm:$0xff]  ;;  %v245_v23 = vld [vmem:[%s2397_s22 + $0x230] sm:$0xff] }
  0x13   : > { %v337_v20 = vpack.c.bf16 %v244_v18, %v243_v17  ;;  %2276 = vmatmul.mubr.msk.bf16.vlgmr.msra.gmra.mxu1 %vm377_vm0, %v336_v15  ;;  %v246_v24 = vld [vmem:[%s2397_s22 + $0x238] sm:$0xff]  ;;  %v183_v25 = vld [vmem:[%s2397_s22 + $0x40] sm:$0xff]  ;;  %v184_v26 = vld [vmem:[%s2397_s22 + $0x48] sm:$0xff]  ;;  %v306_v29 = vpack.c.bf16 %v182_v22, %v181_v21 }
  0x14   : > { %2215 = vmatprep.mubr.msk.bf16.mxu0 %vm377_vm0, %v305_v19  ;;  %v247_v27 = vld [vmem:[%s2397_s22 + $0x240] sm:$0xff]  ;;  %v248_v28 = vld [vmem:[%s2397_s22 + $0x248] sm:$0xff]  ;;  %v338_v30 = vpack.c.bf16 %v246_v24, %v245_v23  ;;  %v307_v31 = vpack.c.bf16 %v184_v26, %v183_v25  ;;  %v185_v33 = vld [vmem:[%s2397_s22 + $0x50] sm:$0xff] }
  0x15   : > { %2279 = vmatprep.mubr.msk.bf16.mxu1 %vm377_vm0, %v337_v20  ;;  %v339_v32 = vpack.c.bf16 %v248_v28, %v247_v27  ;;  %v186_v34 = vld [vmem:[%s2397_s22 + $0x58] sm:$0xff]  ;;  %v249_v35 = vld [vmem:[%s2397_s22 + $0x250] sm:$0xff]  ;;  %v187_v37 = vld [vmem:[%s2397_s22 + $0x60] sm:$0xff] }
  0x16   : > { %v250_v36 = vld [vmem:[%s2397_s22 + $0x258] sm:$0xff]  ;;  %v188_v38 = vld [vmem:[%s2397_s22 + $0x68] sm:$0xff]  ;;  %v251_v39 = vld [vmem:[%s2397_s22 + $0x260] sm:$0xff]  ;;  %v308_v41 = vpack.c.bf16 %v186_v34, %v185_v33 }
  0x17   : > { %v252_v40 = vld [vmem:[%s2397_s22 + $0x268] sm:$0xff]  ;;  %v340_v42 = vpack.c.bf16 %v250_v36, %v249_v35  ;;  %v309_v43 = vpack.c.bf16 %v188_v38, %v187_v37  ;;  %v189_v45 = vld [vmem:[%s2397_s22 + $0x70] sm:$0xff]  ;;  %v190_v46 = vld [vmem:[%s2397_s22 + $0x78] sm:$0xff] }
  0x18   : > { %v341_v44 = vpack.c.bf16 %v252_v40, %v251_v39  ;;  %v253_v47 = vld [vmem:[%s2397_s22 + $0x270] sm:$0xff]  ;;  %v254_v48 = vld [vmem:[%s2397_s22 + $0x278] sm:$0xff]  ;;  %v191_v49 = vld [vmem:[%s2397_s22 + $0x80] sm:$0xff]  ;;  %v310_v53 = vpack.c.bf16 %v190_v46, %v189_v45 }
  0x19   : > { %v192_v50 = vld [vmem:[%s2397_s22 + $0x88] sm:$0xff]  ;;  %v255_v51 = vld [vmem:[%s2397_s22 + $0x280] sm:$0xff]  ;;  %v342_v54 = vpack.c.bf16 %v254_v48, %v253_v47  ;;  %v193_v57 = vld [vmem:[%s2397_s22 + $0x90] sm:$0xff] }
  0x1a   : > { %2216 = vmatmul.mubr.msk.bf16.gmra.mxu0 %vm377_vm0, %v306_v29  ;;  %v256_v52 = vld [vmem:[%s2397_s22 + $0x288] sm:$0xff]  ;;  %v311_v55 = vpack.c.bf16 %v192_v50, %v191_v49  ;;  %v194_v58 = vld [vmem:[%s2397_s22 + $0x98] sm:$0xff]  ;;  %v257_v59 = vld [vmem:[%s2397_s22 + $0x290] sm:$0xff] }
  0x1b   : > { %2280 = vmatmul.mubr.msk.bf16.gmra.mxu1 %vm377_vm0, %v338_v30  ;;  %2219 = vmatprep.mubr.msk.bf16.mxu0 %vm377_vm0, %v307_v31  ;;  %v343_v56 = vpack.c.bf16 %v256_v52, %v255_v51  ;;  %v258_v60 = vld [vmem:[%s2397_s22 + $0x298] sm:$0xff]  ;;  %v195_v61 = vld [vmem:[%s2397_s22 + $0xa0] sm:$0xff]  ;;  %v196_v62 = vld [vmem:[%s2397_s22 + $0xa8] sm:$0xff]  ;;  %v312_v1 = vpack.c.bf16 %v194_v58, %v193_v57 }
  0x1c   : > { %2283 = vmatprep.mubr.msk.bf16.mxu1 %vm377_vm0, %v339_v32  ;;  %v259_v63 = vld [vmem:[%s2397_s22 + $0x2a0] sm:$0xff]  ;;  %v260_v0 = vld [vmem:[%s2397_s22 + $0x2a8] sm:$0xff]  ;;  %v344_v2 = vpack.c.bf16 %v258_v60, %v257_v59  ;;  %v313_v3 = vpack.c.bf16 %v196_v62, %v195_v61  ;;  %v197_v5 = vld [vmem:[%s2397_s22 + $0xb0] sm:$0xff] }
  0x1d   : > { %v345_v4 = vpack.c.bf16 %v260_v0, %v259_v63  ;;  %v198_v6 = vld [vmem:[%s2397_s22 + $0xb8] sm:$0xff]  ;;  %v261_v7 = vld [vmem:[%s2397_s22 + $0x2b0] sm:$0xff]  ;;  %v199_v9 = vld [vmem:[%s2397_s22 + $0xc0] sm:$0xff] }
  0x1e   : > { %v262_v8 = vld [vmem:[%s2397_s22 + $0x2b8] sm:$0xff]  ;;  %v200_v10 = vld [vmem:[%s2397_s22 + $0xc8] sm:$0xff]  ;;  %v263_v11 = vld [vmem:[%s2397_s22 + $0x2c0] sm:$0xff]  ;;  %v314_v13 = vpack.c.bf16 %v198_v6, %v197_v5 }
  0x1f   : > { %v264_v12 = vld [vmem:[%s2397_s22 + $0x2c8] sm:$0xff]  ;;  %v346_v14 = vpack.c.bf16 %v262_v8, %v261_v7  ;;  %v315_v15 = vpack.c.bf16 %v200_v10, %v199_v9  ;;  %v201_v17 = vld [vmem:[%s2397_s22 + $0xd0] sm:$0xff]  ;;  %v202_v18 = vld [vmem:[%s2397_s22 + $0xd8] sm:$0xff] }
  0x20   : > { %v347_v16 = vpack.c.bf16 %v264_v12, %v263_v11  ;;  %v265_v19 = vld [vmem:[%s2397_s22 + $0x2d0] sm:$0xff]  ;;  %v266_v20 = vld [vmem:[%s2397_s22 + $0x2d8] sm:$0xff]  ;;  %v203_v21 = vld [vmem:[%s2397_s22 + $0xe0] sm:$0xff]  ;;  %v316_v25 = vpack.c.bf16 %v202_v18, %v201_v17 }
  0x21   : > { %v204_v22 = vld [vmem:[%s2397_s22 + $0xe8] sm:$0xff]  ;;  %v267_v23 = vld [vmem:[%s2397_s22 + $0x2e0] sm:$0xff]  ;;  %v348_v26 = vpack.c.bf16 %v266_v20, %v265_v19  ;;  %v205_v29 = vld [vmem:[%s2397_s22 + $0xf0] sm:$0xff] }
  0x22   : > { %2220 = vmatmul.mubr.msk.bf16.gmra.mxu0 %vm377_vm0, %v308_v41  ;;  %v268_v24 = vld [vmem:[%s2397_s22 + $0x2e8] sm:$0xff]  ;;  %v317_v27 = vpack.c.bf16 %v204_v22, %v203_v21  ;;  %v206_v30 = vld [vmem:[%s2397_s22 + $0xf8] sm:$0xff]  ;;  %v269_v31 = vld [vmem:[%s2397_s22 + $0x2f0] sm:$0xff] }
  0x23   : > { %2284 = vmatmul.mubr.msk.bf16.gmra.mxu1 %vm377_vm0, %v340_v42  ;;  %2223 = vmatprep.mubr.msk.bf16.mxu0 %vm377_vm0, %v309_v43  ;;  %v349_v28 = vpack.c.bf16 %v268_v24, %v267_v23  ;;  %v270_v32 = vld [vmem:[%s2397_s22 + $0x2f8] sm:$0xff]  ;;  %v207_v33 = vld [vmem:[%s2397_s22 + $0x100] sm:$0xff]  ;;  %v208_v34 = vld [vmem:[%s2397_s22 + $0x108] sm:$0xff]  ;;  %v318_v37 = vpack.c.bf16 %v206_v30, %v205_v29 }
  0x24   : > { %2287 = vmatprep.mubr.msk.bf16.mxu1 %vm377_vm0, %v341_v44  ;;  %v271_v35 = vld [vmem:[%s2397_s22 + $0x300] sm:$0xff]  ;;  %v272_v36 = vld [vmem:[%s2397_s22 + $0x308] sm:$0xff]  ;;  %v350_v38 = vpack.c.bf16 %v270_v32, %v269_v31  ;;  %v319_v39 = vpack.c.bf16 %v208_v34, %v207_v33  ;;  %v209_v41 = vld [vmem:[%s2397_s22 + $0x110] sm:$0xff] }
  0x25   : > { %v351_v40 = vpack.c.bf16 %v272_v36, %v271_v35  ;;  %v210_v42 = vld [vmem:[%s2397_s22 + $0x118] sm:$0xff]  ;;  %v273_v43 = vld [vmem:[%s2397_s22 + $0x310] sm:$0xff]  ;;  %v211_v45 = vld [vmem:[%s2397_s22 + $0x120] sm:$0xff] }
  0x26   : > { %v274_v44 = vld [vmem:[%s2397_s22 + $0x318] sm:$0xff]  ;;  %v212_v46 = vld [vmem:[%s2397_s22 + $0x128] sm:$0xff]  ;;  %v275_v47 = vld [vmem:[%s2397_s22 + $0x320] sm:$0xff]  ;;  %v320_v49 = vpack.c.bf16 %v210_v42, %v209_v41 }
  0x27   : > { %v276_v48 = vld [vmem:[%s2397_s22 + $0x328] sm:$0xff]  ;;  %v352_v50 = vpack.c.bf16 %v274_v44, %v273_v43  ;;  %v321_v51 = vpack.c.bf16 %v212_v46, %v211_v45  ;;  %v215_v57 = vld [vmem:[%s2397_s22 + $0x140] sm:$0xff] }
  0x28   : > { %v353_v52 = vpack.c.bf16 %v276_v48, %v275_v47  ;;  %v216_v58 = vld [vmem:[%s2397_s22 + $0x148] sm:$0xff]  ;;  %v279_v59 = vld [vmem:[%s2397_s22 + $0x340] sm:$0xff] }
  0x29   : > { %v280_v60 = vld [vmem:[%s2397_s22 + $0x348] sm:$0xff]  ;;  %v323_v63 = vpack.c.bf16 %v216_v58, %v215_v57  ;;  %v219_v5 = vld [vmem:[%s2397_s22 + $0x160] sm:$0xff] }
  0x2a   : > { %2224 = vmatmul.mubr.msk.bf16.gmra.mxu0 %vm377_vm0, %v310_v53  ;;  %v213_v53 = vld [vmem:[%s2397_s22 + $0x130] sm:$0xff]  ;;  %v355_v0 = vpack.c.bf16 %v280_v60, %v279_v59  ;;  %v220_v6 = vld [vmem:[%s2397_s22 + $0x168] sm:$0xff]  ;;  %v283_v7 = vld [vmem:[%s2397_s22 + $0x360] sm:$0xff] }
  0x2b   : > { %2288 = vmatmul.mubr.msk.bf16.gmra.mxu1 %vm377_vm0, %v342_v54  ;;  %2227 = vmatprep.mubr.msk.bf16.mxu0 %vm377_vm0, %v311_v55  ;;  %v214_v54 = vld [vmem:[%s2397_s22 + $0x138] sm:$0xff]  ;;  %v277_v55 = vld [vmem:[%s2397_s22 + $0x330] sm:$0xff]  ;;  %v284_v8 = vld [vmem:[%s2397_s22 + $0x368] sm:$0xff]  ;;  %v325_v11 = vpack.c.bf16 %v220_v6, %v219_v5 }
  0x2c   : > { %2291 = vmatprep.mubr.msk.bf16.mxu1 %vm377_vm0, %v343_v56  ;;  %v278_v56 = vld [vmem:[%s2397_s22 + $0x338] sm:$0xff]  ;;  %v322_v61 = vpack.c.bf16 %v214_v54, %v213_v53  ;;  %v357_v12 = vpack.c.bf16 %v284_v8, %v283_v7  ;;  %v223_v17 = vld [vmem:[%s2397_s22 + $0x180] sm:$0xff]  ;;  %v224_v18 = vld [vmem:[%s2397_s22 + $0x188] sm:$0xff] }
  0x2d   : > { %v354_v62 = vpack.c.bf16 %v278_v56, %v277_v55  ;;  %v287_v19 = vld [vmem:[%s2397_s22 + $0x380] sm:$0xff]  ;;  %v288_v20 = vld [vmem:[%s2397_s22 + $0x388] sm:$0xff]  ;;  %v327_v23 = vpack.c.bf16 %v224_v18, %v223_v17 }
  0x2e   : > { %v359_v24 = vpack.c.bf16 %v288_v20, %v287_v19  ;;  %v227_v29 = vld [vmem:[%s2397_s22 + $0x1a0] sm:$0xff]  ;;  %v228_v30 = vld [vmem:[%s2397_s22 + $0x1a8] sm:$0xff] }
  0x2f   : > { %v291_v31 = vld [vmem:[%s2397_s22 + $0x3a0] sm:$0xff]  ;;  %v292_v32 = vld [vmem:[%s2397_s22 + $0x3a8] sm:$0xff]  ;;  %v329_v35 = vpack.c.bf16 %v228_v30, %v227_v29 }
  0x30   : > { %v361_v36 = vpack.c.bf16 %v292_v32, %v291_v31  ;;  %v231_v41 = vld [vmem:[%s2397_s22 + $0x1c0] sm:$0xff]  ;;  %v232_v42 = vld [vmem:[%s2397_s22 + $0x1c8] sm:$0xff] }
  0x31   : > { %v295_v43 = vld [vmem:[%s2397_s22 + $0x3c0] sm:$0xff]  ;;  %v296_v44 = vld [vmem:[%s2397_s22 + $0x3c8] sm:$0xff]  ;;  %v331_v47 = vpack.c.bf16 %v232_v42, %v231_v41 }
  0x32   : > { %2228 = vmatmul.mubr.msk.bf16.gmra.mxu0 %vm377_vm0, %v312_v1  ;;  %v217_v1 = vld [vmem:[%s2397_s22 + $0x150] sm:$0xff]  ;;  %v363_v48 = vpack.c.bf16 %v296_v44, %v295_v43  ;;  %v235_v53 = vld [vmem:[%s2397_s22 + $0x1e0] sm:$0xff]  ;;  %v236_v54 = vld [vmem:[%s2397_s22 + $0x1e8] sm:$0xff] }
  0x33   : > { %2292 = vmatmul.mubr.msk.bf16.gmra.mxu1 %vm377_vm0, %v344_v2  ;;  %2231 = vmatprep.mubr.msk.bf16.mxu0 %vm377_vm0, %v313_v3  ;;  %v218_v2 = vld [vmem:[%s2397_s22 + $0x158] sm:$0xff]  ;;  %v281_v3 = vld [vmem:[%s2397_s22 + $0x350] sm:$0xff]  ;;  %v299_v55 = vld [vmem:[%s2397_s22 + $0x3e0] sm:$0xff]  ;;  %v333_v59 = vpack.c.bf16 %v236_v54, %v235_v53 }
  0x34   : > { %2295 = vmatprep.mubr.msk.bf16.mxu1 %vm377_vm0, %v345_v4  ;;  %v282_v4 = vld [vmem:[%s2397_s22 + $0x358] sm:$0xff]  ;;  %v324_v9 = vpack.c.bf16 %v218_v2, %v217_v1  ;;  %v300_v56 = vld [vmem:[%s2397_s22 + $0x3e8] sm:$0xff] }
  0x35   : > { %v356_v10 = vpack.c.bf16 %v282_v4, %v281_v3  ;;  %v365_v60 = vpack.c.bf16 %v300_v56, %v299_v55  ;;  %v2594_v3 = vld [vmem:[%s2991_s2] ss:$0 sm:$0xff] }
  0x3a   : > { %2232 = vmatmul.mubr.msk.bf16.gmra.mxu0 %vm377_vm0, %v314_v13  ;;  %v221_v13 = vld [vmem:[%s2397_s22 + $0x170] sm:$0xff] }
  0x3b   : > { %2296 = vmatmul.mubr.msk.bf16.gmra.mxu1 %vm377_vm0, %v346_v14  ;;  %2235 = vmatprep.mubr.msk.bf16.mxu0 %vm377_vm0, %v315_v15  ;;  %v222_v14 = vld [vmem:[%s2397_s22 + $0x178] sm:$0xff]  ;;  %v285_v15 = vld [vmem:[%s2397_s22 + $0x370] sm:$0xff] }
  0x3c   : > { %2299 = vmatprep.mubr.msk.bf16.mxu1 %vm377_vm0, %v347_v16  ;;  %v286_v16 = vld [vmem:[%s2397_s22 + $0x378] sm:$0xff]  ;;  %v326_v21 = vpack.c.bf16 %v222_v14, %v221_v13 }
  0x3d   : > { %v358_v22 = vpack.c.bf16 %v286_v16, %v285_v15 }
  0x42   : > { %2236 = vmatmul.mubr.msk.bf16.gmra.mxu0 %vm377_vm0, %v316_v25  ;;  %v225_v25 = vld [vmem:[%s2397_s22 + $0x190] sm:$0xff] }
  0x43   : > { %2300 = vmatmul.mubr.msk.bf16.gmra.mxu1 %vm377_vm0, %v348_v26  ;;  %2239 = vmatprep.mubr.msk.bf16.mxu0 %vm377_vm0, %v317_v27  ;;  %v226_v26 = vld [vmem:[%s2397_s22 + $0x198] sm:$0xff]  ;;  %v289_v27 = vld [vmem:[%s2397_s22 + $0x390] sm:$0xff] }
  0x44   : > { %2303 = vmatprep.mubr.msk.bf16.mxu1 %vm377_vm0, %v349_v28  ;;  %v290_v28 = vld [vmem:[%s2397_s22 + $0x398] sm:$0xff]  ;;  %v328_v33 = vpack.c.bf16 %v226_v26, %v225_v25 }
  0x45   : > { %v360_v34 = vpack.c.bf16 %v290_v28, %v289_v27 }
  0x4a   : > { %2240 = vmatmul.mubr.msk.bf16.gmra.mxu0 %vm377_vm0, %v318_v37  ;;  %v229_v37 = vld [vmem:[%s2397_s22 + $0x1b0] sm:$0xff] }
  0x4b   : > { %2304 = vmatmul.mubr.msk.bf16.gmra.mxu1 %vm377_vm0, %v350_v38  ;;  %2243 = vmatprep.mubr.msk.bf16.mxu0 %vm377_vm0, %v319_v39  ;;  %v230_v38 = vld [vmem:[%s2397_s22 + $0x1b8] sm:$0xff]  ;;  %v293_v39 = vld [vmem:[%s2397_s22 + $0x3b0] sm:$0xff] }
  0x4c   : > { %2307 = vmatprep.mubr.msk.bf16.mxu1 %vm377_vm0, %v351_v40  ;;  %v294_v40 = vld [vmem:[%s2397_s22 + $0x3b8] sm:$0xff]  ;;  %v330_v45 = vpack.c.bf16 %v230_v38, %v229_v37 }
  0x4d   : > { %v362_v46 = vpack.c.bf16 %v294_v40, %v293_v39 }
  0x52   : > { %2244 = vmatmul.mubr.msk.bf16.gmra.mxu0 %vm377_vm0, %v320_v49  ;;  %v233_v49 = vld [vmem:[%s2397_s22 + $0x1d0] sm:$0xff] }
  0x53   : > { %2308 = vmatmul.mubr.msk.bf16.gmra.mxu1 %vm377_vm0, %v352_v50  ;;  %2247 = vmatprep.mubr.msk.bf16.mxu0 %vm377_vm0, %v321_v51  ;;  %v234_v50 = vld [vmem:[%s2397_s22 + $0x1d8] sm:$0xff]  ;;  %v297_v51 = vld [vmem:[%s2397_s22 + $0x3d0] sm:$0xff] }
  0x54   : > { %2311 = vmatprep.mubr.msk.bf16.mxu1 %vm377_vm0, %v353_v52  ;;  %v298_v52 = vld [vmem:[%s2397_s22 + $0x3d8] sm:$0xff]  ;;  %v332_v57 = vpack.c.bf16 %v234_v50, %v233_v49 }
  0x55   : > { %v364_v58 = vpack.c.bf16 %v298_v52, %v297_v51 }
  0x5a   : > { %2248 = vmatmul.mubr.msk.bf16.gmra.mxu0 %vm377_vm0, %v322_v61  ;;  %v237_v61 = vld [vmem:[%s2397_s22 + $0x1f0] sm:$0xff] }
  0x5b   : > { %2312 = vmatmul.mubr.msk.bf16.gmra.mxu1 %vm377_vm0, %v354_v62  ;;  %2251 = vmatprep.mubr.msk.bf16.mxu0 %vm377_vm0, %v323_v63  ;;  %v238_v62 = vld [vmem:[%s2397_s22 + $0x1f8] sm:$0xff]  ;;  %v301_v63 = vld [vmem:[%s2397_s22 + $0x3f0] sm:$0xff] }
  0x5c   : > { %2315 = vmatprep.mubr.msk.bf16.mxu1 %vm377_vm0, %v355_v0  ;;  %v302_v0 = vld [vmem:[%s2397_s22 + $0x3f8] sm:$0xff]  ;;  %v334_v1 = vpack.c.bf16 %v238_v62, %v237_v61 }
  0x5d   : > { %v366_v2 = vpack.c.bf16 %v302_v0, %v301_v63 }
  0x62   : > { %2252 = vmatmul.mubr.msk.bf16.gmra.mxu0 %vm377_vm0, %v324_v9 }
  0x63   : > { %2316 = vmatmul.mubr.msk.bf16.gmra.mxu1 %vm377_vm0, %v356_v10  ;;  %2255 = vmatprep.mubr.msk.bf16.mxu0 %vm377_vm0, %v325_v11 }
  0x64   : > { %2319 = vmatprep.mubr.msk.bf16.mxu1 %vm377_vm0, %v357_v12 }
  0x6a   : > { %2256 = vmatmul.mubr.msk.bf16.gmra.mxu0 %vm377_vm0, %v326_v21 }
  0x6b   : > { %2320 = vmatmul.mubr.msk.bf16.gmra.mxu1 %vm377_vm0, %v358_v22  ;;  %2259 = vmatprep.mubr.msk.bf16.mxu0 %vm377_vm0, %v327_v23 }
  0x6c   : > { %2323 = vmatprep.mubr.msk.bf16.mxu1 %vm377_vm0, %v359_v24 }
  0x72   : > { %2260 = vmatmul.mubr.msk.bf16.gmra.mxu0 %vm377_vm0, %v328_v33 }
  0x73   : > { %2324 = vmatmul.mubr.msk.bf16.gmra.mxu1 %vm377_vm0, %v360_v34  ;;  %2263 = vmatprep.mubr.msk.bf16.mxu0 %vm377_vm0, %v329_v35 }
  0x74   : > { %2327 = vmatprep.mubr.msk.bf16.mxu1 %vm377_vm0, %v361_v36 }
  0x7a   : > { %2264 = vmatmul.mubr.msk.bf16.gmra.mxu0 %vm377_vm0, %v330_v45 }
  0x7b   : > { %2328 = vmatmul.mubr.msk.bf16.gmra.mxu1 %vm377_vm0, %v362_v46  ;;  %2267 = vmatprep.mubr.msk.bf16.mxu0 %vm377_vm0, %v331_v47 }
  0x7c   : > { %2331 = vmatprep.mubr.msk.bf16.mxu1 %vm377_vm0, %v363_v48 }
  0x82   : > { %2268 = vmatmul.mubr.msk.bf16.gmra.mxu0 %vm377_vm0, %v332_v57 }
  0x83   : > { %2332 = vmatmul.mubr.msk.bf16.gmra.mxu1 %vm377_vm0, %v364_v58  ;;  %2271 = vmatprep.mubr.msk.bf16.mxu0 %vm377_vm0, %v333_v59 }
  0x84   : > { %2335 = vmatprep.mubr.msk.bf16.mxu1 %vm377_vm0, %v365_v60 }
  0x8a   : > { %2272 = vmatmul.mubr.msk.bf16.gmra.mxu0 %vm377_vm0, %v334_v1 }
  0x8b   : > { %2336 = vmatmul.mubr.msk.bf16.gmra.mxu1 %vm377_vm0, %v366_v2 }
  0xd2   : > { %v2213_v4 = vpop.f32.mrf.mxu0 }
  0xd3   : > { %v613_v5 = vadd.f32 %v2213_v4, %v2594_v3  ;;  %v2277_v6 = vpop.f32.mrf.mxu1 }
  0xd4   : > { %v869_v7 = vadd.f32 %v2277_v6, %v2594_v3  ;;  %v604_v8 = vpop.f32.mrf.mxu0 }
  0xd5   : > { %v2018_v9 = vpack.c.bf16 %v613_v5, %v613_v5  ;;  %v605_v10 = vadd.f32 %v2594_v3, %v604_v8  ;;  %v860_v11 = vpop.f32.mrf.mxu1 }
  0xd6   : > { %v2082_v12 = vpack.c.bf16 %v869_v7, %v869_v7  ;;  %v861_v13 = vadd.f32 %v2594_v3, %v860_v11  ;;  %v2214_v14 = vpop.f32.mrf.mxu0 }
  0xd7   : > { %1630 = vst.msk [vmem:[%s2601_s28 + $0x8] sm:$0xf] %vm1627_vm1, %v2018_v9  ;;  %v2016_v15 = vpack.c.bf16 %v605_v10, %v605_v10  ;;  %v616_v16 = vadd.f32 %v2214_v14, %v2594_v3  ;;  %v2278_v17 = vpop.f32.mrf.mxu1 }
  0xd8   : > { %1694 = vst.msk [vmem:[%s2601_s28 + $0x108] sm:$0xf] %vm1627_vm1, %v2082_v12  ;;  %v2080_v18 = vpack.c.bf16 %v861_v13, %v861_v13  ;;  %v872_v19 = vadd.f32 %v2278_v17, %v2594_v3  ;;  %v607_v20 = vpop.f32.mrf.mxu0 }
  0xd9   : > { %1628 = vst.msk [vmem:[%s2601_s28] sm:$0xf] %vm1627_vm1, %v2016_v15  ;;  %v2019_v21 = vpack.c.bf16 %v616_v16, %v616_v16  ;;  %v608_v22 = vadd.f32 %v2594_v3, %v607_v20  ;;  %v863_v23 = vpop.f32.mrf.mxu1 }
  0xda   : > { %1692 = vst.msk [vmem:[%s2601_s28 + $0x100] sm:$0xf] %vm1627_vm1, %v2080_v18  ;;  %v2083_v24 = vpack.c.bf16 %v872_v19, %v872_v19  ;;  %v864_v25 = vadd.f32 %v2594_v3, %v863_v23  ;;  %v2217_v26 = vpop.f32.mrf.mxu0 }
  0xdb   : > { %1631 = vst.msk [vmem:[%s2601_s28 + $0xc] sm:$0xf] %vm1627_vm1, %v2019_v21  ;;  %v2017_v27 = vpack.c.bf16 %v608_v22, %v608_v22  ;;  %v629_v28 = vadd.f32 %v2217_v26, %v2594_v3  ;;  %v2281_v29 = vpop.f32.mrf.mxu1 }
  0xdc   : > { %1695 = vst.msk [vmem:[%s2601_s28 + $0x10c] sm:$0xf] %vm1627_vm1, %v2083_v24  ;;  %v2081_v30 = vpack.c.bf16 %v864_v25, %v864_v25  ;;  %v885_v31 = vadd.f32 %v2281_v29, %v2594_v3  ;;  %v620_v32 = vpop.f32.mrf.mxu0 }
  0xdd   : > { %1629 = vst.msk [vmem:[%s2601_s28 + $0x4] sm:$0xf] %vm1627_vm1, %v2017_v27  ;;  %v2022_v33 = vpack.c.bf16 %v629_v28, %v629_v28  ;;  %v621_v34 = vadd.f32 %v2594_v3, %v620_v32  ;;  %v876_v35 = vpop.f32.mrf.mxu1 }
  0xde   : > { %1693 = vst.msk [vmem:[%s2601_s28 + $0x104] sm:$0xf] %vm1627_vm1, %v2081_v30  ;;  %v2086_v36 = vpack.c.bf16 %v885_v31, %v885_v31  ;;  %v877_v37 = vadd.f32 %v2594_v3, %v876_v35  ;;  %v2218_v38 = vpop.f32.mrf.mxu0 }
  0xdf   : > { %1634 = vst.msk [vmem:[%s2601_s28 + $0x18] sm:$0xf] %vm1627_vm1, %v2022_v33  ;;  %v2020_v39 = vpack.c.bf16 %v621_v34, %v621_v34  ;;  %v632_v40 = vadd.f32 %v2218_v38, %v2594_v3  ;;  %v2282_v41 = vpop.f32.mrf.mxu1 }
  0xe0   : > { %1698 = vst.msk [vmem:[%s2601_s28 + $0x118] sm:$0xf] %vm1627_vm1, %v2086_v36  ;;  %v2084_v42 = vpack.c.bf16 %v877_v37, %v877_v37  ;;  %v888_v43 = vadd.f32 %v2282_v41, %v2594_v3  ;;  %v623_v44 = vpop.f32.mrf.mxu0 }
  0xe1   : > { %1632 = vst.msk [vmem:[%s2601_s28 + $0x10] sm:$0xf] %vm1627_vm1, %v2020_v39  ;;  %v2023_v45 = vpack.c.bf16 %v632_v40, %v632_v40  ;;  %v624_v46 = vadd.f32 %v2594_v3, %v623_v44  ;;  %v879_v47 = vpop.f32.mrf.mxu1 }
  0xe2   : > { %1696 = vst.msk [vmem:[%s2601_s28 + $0x110] sm:$0xf] %vm1627_vm1, %v2084_v42  ;;  %v2087_v48 = vpack.c.bf16 %v888_v43, %v888_v43  ;;  %v880_v49 = vadd.f32 %v2594_v3, %v879_v47  ;;  %v2221_v50 = vpop.f32.mrf.mxu0 }
  0xe3   : > { %1635 = vst.msk [vmem:[%s2601_s28 + $0x1c] sm:$0xf] %vm1627_vm1, %v2023_v45  ;;  %v2021_v51 = vpack.c.bf16 %v624_v46, %v624_v46  ;;  %v645_v52 = vadd.f32 %v2221_v50, %v2594_v3  ;;  %v2285_v53 = vpop.f32.mrf.mxu1 }
  0xe4   : > { %1699 = vst.msk [vmem:[%s2601_s28 + $0x11c] sm:$0xf] %vm1627_vm1, %v2087_v48  ;;  %v2085_v54 = vpack.c.bf16 %v880_v49, %v880_v49  ;;  %v901_v55 = vadd.f32 %v2285_v53, %v2594_v3  ;;  %v636_v56 = vpop.f32.mrf.mxu0 }
  0xe5   : > { %1633 = vst.msk [vmem:[%s2601_s28 + $0x14] sm:$0xf] %vm1627_vm1, %v2021_v51  ;;  %v2026_v57 = vpack.c.bf16 %v645_v52, %v645_v52  ;;  %v637_v58 = vadd.f32 %v2594_v3, %v636_v56  ;;  %v892_v59 = vpop.f32.mrf.mxu1 }
  0xe6   : > { %1697 = vst.msk [vmem:[%s2601_s28 + $0x114] sm:$0xf] %vm1627_vm1, %v2085_v54  ;;  %v2090_v60 = vpack.c.bf16 %v901_v55, %v901_v55  ;;  %v893_v61 = vadd.f32 %v2594_v3, %v892_v59  ;;  %v2222_v62 = vpop.f32.mrf.mxu0 }
  0xe7   : > { %1638 = vst.msk [vmem:[%s2601_s28 + $0x28] sm:$0xf] %vm1627_vm1, %v2026_v57  ;;  %v2024_v63 = vpack.c.bf16 %v637_v58, %v637_v58  ;;  %v648_v0 = vadd.f32 %v2222_v62, %v2594_v3  ;;  %v2286_v1 = vpop.f32.mrf.mxu1 }
  0xe8   : > { %1702 = vst.msk [vmem:[%s2601_s28 + $0x128] sm:$0xf] %vm1627_vm1, %v2090_v60  ;;  %v2088_v2 = vpack.c.bf16 %v893_v61, %v893_v61  ;;  %v904_v4 = vadd.f32 %v2286_v1, %v2594_v3  ;;  %v639_v5 = vpop.f32.mrf.mxu0 }
  0xe9   : > { %1636 = vst.msk [vmem:[%s2601_s28 + $0x20] sm:$0xf] %vm1627_vm1, %v2024_v63  ;;  %v2027_v6 = vpack.c.bf16 %v648_v0, %v648_v0  ;;  %v640_v7 = vadd.f32 %v2594_v3, %v639_v5  ;;  %v895_v8 = vpop.f32.mrf.mxu1 }
  0xea   : > { %1700 = vst.msk [vmem:[%s2601_s28 + $0x120] sm:$0xf] %vm1627_vm1, %v2088_v2  ;;  %v2091_v9 = vpack.c.bf16 %v904_v4, %v904_v4  ;;  %v896_v10 = vadd.f32 %v2594_v3, %v895_v8  ;;  %v2225_v11 = vpop.f32.mrf.mxu0 }
  0xeb   : > { %1639 = vst.msk [vmem:[%s2601_s28 + $0x2c] sm:$0xf] %vm1627_vm1, %v2027_v6  ;;  %v2025_v12 = vpack.c.bf16 %v640_v7, %v640_v7  ;;  %v661_v13 = vadd.f32 %v2225_v11, %v2594_v3  ;;  %v2289_v14 = vpop.f32.mrf.mxu1 }
  0xec   : > { %1703 = vst.msk [vmem:[%s2601_s28 + $0x12c] sm:$0xf] %vm1627_vm1, %v2091_v9  ;;  %v2089_v15 = vpack.c.bf16 %v896_v10, %v896_v10  ;;  %v917_v16 = vadd.f32 %v2289_v14, %v2594_v3  ;;  %v652_v17 = vpop.f32.mrf.mxu0 }
  0xed   : > { %1637 = vst.msk [vmem:[%s2601_s28 + $0x24] sm:$0xf] %vm1627_vm1, %v2025_v12  ;;  %v2030_v18 = vpack.c.bf16 %v661_v13, %v661_v13  ;;  %v653_v19 = vadd.f32 %v2594_v3, %v652_v17  ;;  %v908_v20 = vpop.f32.mrf.mxu1 }
  0xee   : > { %1701 = vst.msk [vmem:[%s2601_s28 + $0x124] sm:$0xf] %vm1627_vm1, %v2089_v15  ;;  %v2094_v21 = vpack.c.bf16 %v917_v16, %v917_v16  ;;  %v909_v22 = vadd.f32 %v2594_v3, %v908_v20  ;;  %v2226_v23 = vpop.f32.mrf.mxu0 }
  0xef   : > { %1642 = vst.msk [vmem:[%s2601_s28 + $0x38] sm:$0xf] %vm1627_vm1, %v2030_v18  ;;  %v2028_v24 = vpack.c.bf16 %v653_v19, %v653_v19  ;;  %v664_v25 = vadd.f32 %v2226_v23, %v2594_v3  ;;  %v2290_v26 = vpop.f32.mrf.mxu1 }
  0xf0   : > { %1706 = vst.msk [vmem:[%s2601_s28 + $0x138] sm:$0xf] %vm1627_vm1, %v2094_v21  ;;  %v2092_v27 = vpack.c.bf16 %v909_v22, %v909_v22  ;;  %v920_v28 = vadd.f32 %v2290_v26, %v2594_v3  ;;  %v655_v29 = vpop.f32.mrf.mxu0 }
  0xf1   : > { %1640 = vst.msk [vmem:[%s2601_s28 + $0x30] sm:$0xf] %vm1627_vm1, %v2028_v24  ;;  %v2031_v30 = vpack.c.bf16 %v664_v25, %v664_v25  ;;  %v656_v31 = vadd.f32 %v2594_v3, %v655_v29  ;;  %v911_v32 = vpop.f32.mrf.mxu1 }
  0xf2   : > { %1704 = vst.msk [vmem:[%s2601_s28 + $0x130] sm:$0xf] %vm1627_vm1, %v2092_v27  ;;  %v2095_v33 = vpack.c.bf16 %v920_v28, %v920_v28  ;;  %v912_v34 = vadd.f32 %v2594_v3, %v911_v32  ;;  %v2229_v35 = vpop.f32.mrf.mxu0 }
  0xf3   : > { %1643 = vst.msk [vmem:[%s2601_s28 + $0x3c] sm:$0xf] %vm1627_vm1, %v2031_v30  ;;  %v2029_v36 = vpack.c.bf16 %v656_v31, %v656_v31  ;;  %v677_v37 = vadd.f32 %v2229_v35, %v2594_v3  ;;  %v2293_v38 = vpop.f32.mrf.mxu1 }
  0xf4   : > { %1707 = vst.msk [vmem:[%s2601_s28 + $0x13c] sm:$0xf] %vm1627_vm1, %v2095_v33  ;;  %v2093_v39 = vpack.c.bf16 %v912_v34, %v912_v34  ;;  %v933_v40 = vadd.f32 %v2293_v38, %v2594_v3  ;;  %v668_v41 = vpop.f32.mrf.mxu0 }
  0xf5   : > { %1641 = vst.msk [vmem:[%s2601_s28 + $0x34] sm:$0xf] %vm1627_vm1, %v2029_v36  ;;  %v2034_v42 = vpack.c.bf16 %v677_v37, %v677_v37  ;;  %v669_v43 = vadd.f32 %v2594_v3, %v668_v41  ;;  %v924_v44 = vpop.f32.mrf.mxu1 }
  0xf6   : > { %1705 = vst.msk [vmem:[%s2601_s28 + $0x134] sm:$0xf] %vm1627_vm1, %v2093_v39  ;;  %v2098_v45 = vpack.c.bf16 %v933_v40, %v933_v40  ;;  %v925_v46 = vadd.f32 %v2594_v3, %v924_v44  ;;  %v2230_v47 = vpop.f32.mrf.mxu0 }
  0xf7   : > { %1646 = vst.msk [vmem:[%s2601_s28 + $0x48] sm:$0xf] %vm1627_vm1, %v2034_v42  ;;  %v2032_v48 = vpack.c.bf16 %v669_v43, %v669_v43  ;;  %v680_v49 = vadd.f32 %v2230_v47, %v2594_v3  ;;  %v2294_v50 = vpop.f32.mrf.mxu1 }
  0xf8   : > { %1710 = vst.msk [vmem:[%s2601_s28 + $0x148] sm:$0xf] %vm1627_vm1, %v2098_v45  ;;  %v2096_v51 = vpack.c.bf16 %v925_v46, %v925_v46  ;;  %v936_v52 = vadd.f32 %v2294_v50, %v2594_v3  ;;  %v671_v53 = vpop.f32.mrf.mxu0 }
  0xf9   : > { %1644 = vst.msk [vmem:[%s2601_s28 + $0x40] sm:$0xf] %vm1627_vm1, %v2032_v48  ;;  %v2035_v54 = vpack.c.bf16 %v680_v49, %v680_v49  ;;  %v672_v55 = vadd.f32 %v2594_v3, %v671_v53  ;;  %v927_v56 = vpop.f32.mrf.mxu1 }
  0xfa   : > { %1708 = vst.msk [vmem:[%s2601_s28 + $0x140] sm:$0xf] %vm1627_vm1, %v2096_v51  ;;  %v2099_v57 = vpack.c.bf16 %v936_v52, %v936_v52  ;;  %v928_v58 = vadd.f32 %v2594_v3, %v927_v56  ;;  %v2233_v59 = vpop.f32.mrf.mxu0 }
  0xfb   : > { %1647 = vst.msk [vmem:[%s2601_s28 + $0x4c] sm:$0xf] %vm1627_vm1, %v2035_v54  ;;  %v2033_v60 = vpack.c.bf16 %v672_v55, %v672_v55  ;;  %v693_v61 = vadd.f32 %v2233_v59, %v2594_v3  ;;  %v2297_v62 = vpop.f32.mrf.mxu1 }
  0xfc   : > { %1711 = vst.msk [vmem:[%s2601_s28 + $0x14c] sm:$0xf] %vm1627_vm1, %v2099_v57  ;;  %v2097_v63 = vpack.c.bf16 %v928_v58, %v928_v58  ;;  %v949_v0 = vadd.f32 %v2297_v62, %v2594_v3  ;;  %v684_v1 = vpop.f32.mrf.mxu0 }
  0xfd   : > { %1645 = vst.msk [vmem:[%s2601_s28 + $0x44] sm:$0xf] %vm1627_vm1, %v2033_v60  ;;  %v2038_v2 = vpack.c.bf16 %v693_v61, %v693_v61  ;;  %v685_v4 = vadd.f32 %v2594_v3, %v684_v1  ;;  %v940_v5 = vpop.f32.mrf.mxu1 }
  0xfe   : > { %1709 = vst.msk [vmem:[%s2601_s28 + $0x144] sm:$0xf] %vm1627_vm1, %v2097_v63  ;;  %v2102_v6 = vpack.c.bf16 %v949_v0, %v949_v0  ;;  %v941_v7 = vadd.f32 %v2594_v3, %v940_v5  ;;  %v2234_v8 = vpop.f32.mrf.mxu0 }
  0xff   : > { %1650 = vst.msk [vmem:[%s2601_s28 + $0x58] sm:$0xf] %vm1627_vm1, %v2038_v2  ;;  %v2036_v9 = vpack.c.bf16 %v685_v4, %v685_v4  ;;  %v696_v10 = vadd.f32 %v2234_v8, %v2594_v3  ;;  %v2298_v11 = vpop.f32.mrf.mxu1 }
 0x100   : > { %1714 = vst.msk [vmem:[%s2601_s28 + $0x158] sm:$0xf] %vm1627_vm1, %v2102_v6  ;;  %v2100_v12 = vpack.c.bf16 %v941_v7, %v941_v7  ;;  %v952_v13 = vadd.f32 %v2298_v11, %v2594_v3  ;;  %v687_v14 = vpop.f32.mrf.mxu0 }
 0x101   : > { %1648 = vst.msk [vmem:[%s2601_s28 + $0x50] sm:$0xf] %vm1627_vm1, %v2036_v9  ;;  %v2039_v15 = vpack.c.bf16 %v696_v10, %v696_v10  ;;  %v688_v16 = vadd.f32 %v2594_v3, %v687_v14  ;;  %v943_v17 = vpop.f32.mrf.mxu1 }
 0x102   : > { %1712 = vst.msk [vmem:[%s2601_s28 + $0x150] sm:$0xf] %vm1627_vm1, %v2100_v12  ;;  %v2103_v18 = vpack.c.bf16 %v952_v13, %v952_v13  ;;  %v944_v19 = vadd.f32 %v2594_v3, %v943_v17  ;;  %v2237_v20 = vpop.f32.mrf.mxu0 }
 0x103   : > { %1651 = vst.msk [vmem:[%s2601_s28 + $0x5c] sm:$0xf] %vm1627_vm1, %v2039_v15  ;;  %v2037_v21 = vpack.c.bf16 %v688_v16, %v688_v16  ;;  %v709_v22 = vadd.f32 %v2237_v20, %v2594_v3  ;;  %v2301_v23 = vpop.f32.mrf.mxu1 }
 0x104   : > { %1715 = vst.msk [vmem:[%s2601_s28 + $0x15c] sm:$0xf] %vm1627_vm1, %v2103_v18  ;;  %v2101_v24 = vpack.c.bf16 %v944_v19, %v944_v19  ;;  %v965_v25 = vadd.f32 %v2301_v23, %v2594_v3  ;;  %v700_v26 = vpop.f32.mrf.mxu0 }
 0x105   : > { %1649 = vst.msk [vmem:[%s2601_s28 + $0x54] sm:$0xf] %vm1627_vm1, %v2037_v21  ;;  %v2042_v27 = vpack.c.bf16 %v709_v22, %v709_v22  ;;  %v701_v28 = vadd.f32 %v2594_v3, %v700_v26  ;;  %v956_v29 = vpop.f32.mrf.mxu1 }
 0x106   : > { %1713 = vst.msk [vmem:[%s2601_s28 + $0x154] sm:$0xf] %vm1627_vm1, %v2101_v24  ;;  %v2106_v30 = vpack.c.bf16 %v965_v25, %v965_v25  ;;  %v957_v31 = vadd.f32 %v2594_v3, %v956_v29  ;;  %v2238_v32 = vpop.f32.mrf.mxu0 }
 0x107   : > { %1654 = vst.msk [vmem:[%s2601_s28 + $0x68] sm:$0xf] %vm1627_vm1, %v2042_v27  ;;  %v2040_v33 = vpack.c.bf16 %v701_v28, %v701_v28  ;;  %v712_v34 = vadd.f32 %v2238_v32, %v2594_v3  ;;  %v2302_v35 = vpop.f32.mrf.mxu1 }
 0x108   : > { %1718 = vst.msk [vmem:[%s2601_s28 + $0x168] sm:$0xf] %vm1627_vm1, %v2106_v30  ;;  %v2104_v36 = vpack.c.bf16 %v957_v31, %v957_v31  ;;  %v968_v37 = vadd.f32 %v2302_v35, %v2594_v3  ;;  %v703_v38 = vpop.f32.mrf.mxu0 }
 0x109   : > { %1652 = vst.msk [vmem:[%s2601_s28 + $0x60] sm:$0xf] %vm1627_vm1, %v2040_v33  ;;  %v2043_v39 = vpack.c.bf16 %v712_v34, %v712_v34  ;;  %v704_v40 = vadd.f32 %v2594_v3, %v703_v38  ;;  %v959_v41 = vpop.f32.mrf.mxu1 }
 0x10a   : > { %1716 = vst.msk [vmem:[%s2601_s28 + $0x160] sm:$0xf] %vm1627_vm1, %v2104_v36  ;;  %v2107_v42 = vpack.c.bf16 %v968_v37, %v968_v37  ;;  %v960_v43 = vadd.f32 %v2594_v3, %v959_v41  ;;  %v2241_v44 = vpop.f32.mrf.mxu0 }
 0x10b   : > { %1655 = vst.msk [vmem:[%s2601_s28 + $0x6c] sm:$0xf] %vm1627_vm1, %v2043_v39  ;;  %v2041_v45 = vpack.c.bf16 %v704_v40, %v704_v40  ;;  %v725_v46 = vadd.f32 %v2241_v44, %v2594_v3  ;;  %v2305_v47 = vpop.f32.mrf.mxu1 }
 0x10c   : > { %1719 = vst.msk [vmem:[%s2601_s28 + $0x16c] sm:$0xf] %vm1627_vm1, %v2107_v42  ;;  %v2105_v48 = vpack.c.bf16 %v960_v43, %v960_v43  ;;  %v981_v49 = vadd.f32 %v2305_v47, %v2594_v3  ;;  %v716_v50 = vpop.f32.mrf.mxu0 }
 0x10d   : > { %1653 = vst.msk [vmem:[%s2601_s28 + $0x64] sm:$0xf] %vm1627_vm1, %v2041_v45  ;;  %v2046_v51 = vpack.c.bf16 %v725_v46, %v725_v46  ;;  %v717_v52 = vadd.f32 %v2594_v3, %v716_v50  ;;  %v972_v53 = vpop.f32.mrf.mxu1 }
 0x10e   : > { %1717 = vst.msk [vmem:[%s2601_s28 + $0x164] sm:$0xf] %vm1627_vm1, %v2105_v48  ;;  %v2110_v54 = vpack.c.bf16 %v981_v49, %v981_v49  ;;  %v973_v55 = vadd.f32 %v2594_v3, %v972_v53  ;;  %v2242_v56 = vpop.f32.mrf.mxu0 }
 0x10f   : > { %1658 = vst.msk [vmem:[%s2601_s28 + $0x78] sm:$0xf] %vm1627_vm1, %v2046_v51  ;;  %v2044_v57 = vpack.c.bf16 %v717_v52, %v717_v52  ;;  %v728_v58 = vadd.f32 %v2242_v56, %v2594_v3  ;;  %v2306_v59 = vpop.f32.mrf.mxu1 }
 0x110   : > { %1722 = vst.msk [vmem:[%s2601_s28 + $0x178] sm:$0xf] %vm1627_vm1, %v2110_v54  ;;  %v2108_v60 = vpack.c.bf16 %v973_v55, %v973_v55  ;;  %v984_v61 = vadd.f32 %v2306_v59, %v2594_v3  ;;  %v719_v62 = vpop.f32.mrf.mxu0 }
 0x111   : > { %1656 = vst.msk [vmem:[%s2601_s28 + $0x70] sm:$0xf] %vm1627_vm1, %v2044_v57  ;;  %v2047_v63 = vpack.c.bf16 %v728_v58, %v728_v58  ;;  %v720_v0 = vadd.f32 %v2594_v3, %v719_v62  ;;  %v975_v1 = vpop.f32.mrf.mxu1 }
 0x112   : > { %1720 = vst.msk [vmem:[%s2601_s28 + $0x170] sm:$0xf] %vm1627_vm1, %v2108_v60  ;;  %v2111_v2 = vpack.c.bf16 %v984_v61, %v984_v61  ;;  %v976_v4 = vadd.f32 %v2594_v3, %v975_v1  ;;  %v2245_v5 = vpop.f32.mrf.mxu0 }
 0x113   : > { %1659 = vst.msk [vmem:[%s2601_s28 + $0x7c] sm:$0xf] %vm1627_vm1, %v2047_v63  ;;  %v2045_v6 = vpack.c.bf16 %v720_v0, %v720_v0  ;;  %v741_v7 = vadd.f32 %v2245_v5, %v2594_v3  ;;  %v2309_v8 = vpop.f32.mrf.mxu1 }
 0x114   : > { %1723 = vst.msk [vmem:[%s2601_s28 + $0x17c] sm:$0xf] %vm1627_vm1, %v2111_v2  ;;  %v2109_v9 = vpack.c.bf16 %v976_v4, %v976_v4  ;;  %v997_v10 = vadd.f32 %v2309_v8, %v2594_v3  ;;  %v732_v11 = vpop.f32.mrf.mxu0 }
 0x115   : > { %1657 = vst.msk [vmem:[%s2601_s28 + $0x74] sm:$0xf] %vm1627_vm1, %v2045_v6  ;;  %v2050_v12 = vpack.c.bf16 %v741_v7, %v741_v7  ;;  %v733_v13 = vadd.f32 %v2594_v3, %v732_v11  ;;  %v988_v14 = vpop.f32.mrf.mxu1 }
 0x116   : > { %1721 = vst.msk [vmem:[%s2601_s28 + $0x174] sm:$0xf] %vm1627_vm1, %v2109_v9  ;;  %v2114_v15 = vpack.c.bf16 %v997_v10, %v997_v10  ;;  %v989_v16 = vadd.f32 %v2594_v3, %v988_v14  ;;  %v2246_v17 = vpop.f32.mrf.mxu0 }
 0x117   : > { %1662 = vst.msk [vmem:[%s2601_s28 + $0x88] sm:$0xf] %vm1627_vm1, %v2050_v12  ;;  %v2048_v18 = vpack.c.bf16 %v733_v13, %v733_v13  ;;  %v744_v19 = vadd.f32 %v2246_v17, %v2594_v3  ;;  %v2310_v20 = vpop.f32.mrf.mxu1 }
 0x118   : > { %1726 = vst.msk [vmem:[%s2601_s28 + $0x188] sm:$0xf] %vm1627_vm1, %v2114_v15  ;;  %v2112_v21 = vpack.c.bf16 %v989_v16, %v989_v16  ;;  %v1000_v22 = vadd.f32 %v2310_v20, %v2594_v3  ;;  %v735_v23 = vpop.f32.mrf.mxu0 }
 0x119   : > { %1660 = vst.msk [vmem:[%s2601_s28 + $0x80] sm:$0xf] %vm1627_vm1, %v2048_v18  ;;  %v2051_v24 = vpack.c.bf16 %v744_v19, %v744_v19  ;;  %v736_v25 = vadd.f32 %v2594_v3, %v735_v23  ;;  %v991_v26 = vpop.f32.mrf.mxu1 }
 0x11a   : > { %1724 = vst.msk [vmem:[%s2601_s28 + $0x180] sm:$0xf] %vm1627_vm1, %v2112_v21  ;;  %v2115_v27 = vpack.c.bf16 %v1000_v22, %v1000_v22  ;;  %v992_v28 = vadd.f32 %v2594_v3, %v991_v26  ;;  %v2249_v29 = vpop.f32.mrf.mxu0 }
 0x11b   : > { %1663 = vst.msk [vmem:[%s2601_s28 + $0x8c] sm:$0xf] %vm1627_vm1, %v2051_v24  ;;  %v2049_v30 = vpack.c.bf16 %v736_v25, %v736_v25  ;;  %v757_v31 = vadd.f32 %v2249_v29, %v2594_v3  ;;  %v2313_v32 = vpop.f32.mrf.mxu1 }
 0x11c   : > { %1727 = vst.msk [vmem:[%s2601_s28 + $0x18c] sm:$0xf] %vm1627_vm1, %v2115_v27  ;;  %v2113_v33 = vpack.c.bf16 %v992_v28, %v992_v28  ;;  %v1013_v34 = vadd.f32 %v2313_v32, %v2594_v3  ;;  %v748_v35 = vpop.f32.mrf.mxu0 }
 0x11d   : > { %1661 = vst.msk [vmem:[%s2601_s28 + $0x84] sm:$0xf] %vm1627_vm1, %v2049_v30  ;;  %v2054_v36 = vpack.c.bf16 %v757_v31, %v757_v31  ;;  %v749_v37 = vadd.f32 %v2594_v3, %v748_v35  ;;  %v1004_v38 = vpop.f32.mrf.mxu1 }
 0x11e   : > { %1725 = vst.msk [vmem:[%s2601_s28 + $0x184] sm:$0xf] %vm1627_vm1, %v2113_v33  ;;  %v2118_v39 = vpack.c.bf16 %v1013_v34, %v1013_v34  ;;  %v1005_v40 = vadd.f32 %v2594_v3, %v1004_v38  ;;  %v2250_v41 = vpop.f32.mrf.mxu0 }
 0x11f   : > { %1666 = vst.msk [vmem:[%s2601_s28 + $0x98] sm:$0xf] %vm1627_vm1, %v2054_v36  ;;  %v2052_v42 = vpack.c.bf16 %v749_v37, %v749_v37  ;;  %v760_v43 = vadd.f32 %v2250_v41, %v2594_v3  ;;  %v2314_v44 = vpop.f32.mrf.mxu1 }
 0x120   : > { %1730 = vst.msk [vmem:[%s2601_s28 + $0x198] sm:$0xf] %vm1627_vm1, %v2118_v39  ;;  %v2116_v45 = vpack.c.bf16 %v1005_v40, %v1005_v40  ;;  %v1016_v46 = vadd.f32 %v2314_v44, %v2594_v3  ;;  %v751_v47 = vpop.f32.mrf.mxu0 }
 0x121   : > { %1664 = vst.msk [vmem:[%s2601_s28 + $0x90] sm:$0xf] %vm1627_vm1, %v2052_v42  ;;  %v2055_v48 = vpack.c.bf16 %v760_v43, %v760_v43  ;;  %v752_v49 = vadd.f32 %v2594_v3, %v751_v47  ;;  %v1007_v50 = vpop.f32.mrf.mxu1 }
 0x122   : > { %1728 = vst.msk [vmem:[%s2601_s28 + $0x190] sm:$0xf] %vm1627_vm1, %v2116_v45  ;;  %v2119_v51 = vpack.c.bf16 %v1016_v46, %v1016_v46  ;;  %v1008_v52 = vadd.f32 %v2594_v3, %v1007_v50  ;;  %v2253_v53 = vpop.f32.mrf.mxu0 }
 0x123   : > { %1667 = vst.msk [vmem:[%s2601_s28 + $0x9c] sm:$0xf] %vm1627_vm1, %v2055_v48  ;;  %v2053_v54 = vpack.c.bf16 %v752_v49, %v752_v49  ;;  %v773_v55 = vadd.f32 %v2253_v53, %v2594_v3  ;;  %v2317_v56 = vpop.f32.mrf.mxu1 }
 0x124   : > { %1731 = vst.msk [vmem:[%s2601_s28 + $0x19c] sm:$0xf] %vm1627_vm1, %v2119_v51  ;;  %v2117_v57 = vpack.c.bf16 %v1008_v52, %v1008_v52  ;;  %v1029_v58 = vadd.f32 %v2317_v56, %v2594_v3  ;;  %v764_v59 = vpop.f32.mrf.mxu0 }
 0x125   : > { %1665 = vst.msk [vmem:[%s2601_s28 + $0x94] sm:$0xf] %vm1627_vm1, %v2053_v54  ;;  %v2058_v60 = vpack.c.bf16 %v773_v55, %v773_v55  ;;  %v765_v61 = vadd.f32 %v2594_v3, %v764_v59  ;;  %v1020_v62 = vpop.f32.mrf.mxu1 }
 0x126   : > { %1729 = vst.msk [vmem:[%s2601_s28 + $0x194] sm:$0xf] %vm1627_vm1, %v2117_v57  ;;  %v2122_v63 = vpack.c.bf16 %v1029_v58, %v1029_v58  ;;  %v1021_v0 = vadd.f32 %v2594_v3, %v1020_v62  ;;  %v2254_v1 = vpop.f32.mrf.mxu0 }
 0x127   : > { %1670 = vst.msk [vmem:[%s2601_s28 + $0xa8] sm:$0xf] %vm1627_vm1, %v2058_v60  ;;  %v2056_v2 = vpack.c.bf16 %v765_v61, %v765_v61  ;;  %v776_v4 = vadd.f32 %v2254_v1, %v2594_v3  ;;  %v2318_v5 = vpop.f32.mrf.mxu1 }
 0x128   : > { %1734 = vst.msk [vmem:[%s2601_s28 + $0x1a8] sm:$0xf] %vm1627_vm1, %v2122_v63  ;;  %v2120_v6 = vpack.c.bf16 %v1021_v0, %v1021_v0  ;;  %v1032_v7 = vadd.f32 %v2318_v5, %v2594_v3  ;;  %v767_v8 = vpop.f32.mrf.mxu0 }
 0x129   : > { %1668 = vst.msk [vmem:[%s2601_s28 + $0xa0] sm:$0xf] %vm1627_vm1, %v2056_v2  ;;  %v2059_v9 = vpack.c.bf16 %v776_v4, %v776_v4  ;;  %v768_v10 = vadd.f32 %v2594_v3, %v767_v8  ;;  %v1023_v11 = vpop.f32.mrf.mxu1 }
 0x12a   : > { %1732 = vst.msk [vmem:[%s2601_s28 + $0x1a0] sm:$0xf] %vm1627_vm1, %v2120_v6  ;;  %v2123_v12 = vpack.c.bf16 %v1032_v7, %v1032_v7  ;;  %v1024_v13 = vadd.f32 %v2594_v3, %v1023_v11  ;;  %v2257_v14 = vpop.f32.mrf.mxu0 }
 0x12b   : > { %1671 = vst.msk [vmem:[%s2601_s28 + $0xac] sm:$0xf] %vm1627_vm1, %v2059_v9  ;;  %v2057_v15 = vpack.c.bf16 %v768_v10, %v768_v10  ;;  %v789_v16 = vadd.f32 %v2257_v14, %v2594_v3  ;;  %v2321_v17 = vpop.f32.mrf.mxu1 }
 0x12c   : > { %1735 = vst.msk [vmem:[%s2601_s28 + $0x1ac] sm:$0xf] %vm1627_vm1, %v2123_v12  ;;  %v2121_v18 = vpack.c.bf16 %v1024_v13, %v1024_v13  ;;  %v1045_v19 = vadd.f32 %v2321_v17, %v2594_v3  ;;  %v780_v20 = vpop.f32.mrf.mxu0 }
 0x12d   : > { %1669 = vst.msk [vmem:[%s2601_s28 + $0xa4] sm:$0xf] %vm1627_vm1, %v2057_v15  ;;  %v2062_v21 = vpack.c.bf16 %v789_v16, %v789_v16  ;;  %v781_v22 = vadd.f32 %v2594_v3, %v780_v20  ;;  %v1036_v23 = vpop.f32.mrf.mxu1 }
 0x12e   : > { %1733 = vst.msk [vmem:[%s2601_s28 + $0x1a4] sm:$0xf] %vm1627_vm1, %v2121_v18  ;;  %v2126_v24 = vpack.c.bf16 %v1045_v19, %v1045_v19  ;;  %v1037_v25 = vadd.f32 %v2594_v3, %v1036_v23  ;;  %v2258_v26 = vpop.f32.mrf.mxu0 }
 0x12f   : > { %1674 = vst.msk [vmem:[%s2601_s28 + $0xb8] sm:$0xf] %vm1627_vm1, %v2062_v21  ;;  %v2060_v27 = vpack.c.bf16 %v781_v22, %v781_v22  ;;  %v792_v28 = vadd.f32 %v2258_v26, %v2594_v3  ;;  %v2322_v29 = vpop.f32.mrf.mxu1 }
 0x130   : > { %1738 = vst.msk [vmem:[%s2601_s28 + $0x1b8] sm:$0xf] %vm1627_vm1, %v2126_v24  ;;  %v2124_v30 = vpack.c.bf16 %v1037_v25, %v1037_v25  ;;  %v1048_v31 = vadd.f32 %v2322_v29, %v2594_v3  ;;  %v783_v32 = vpop.f32.mrf.mxu0 }
 0x131   : > { %1672 = vst.msk [vmem:[%s2601_s28 + $0xb0] sm:$0xf] %vm1627_vm1, %v2060_v27  ;;  %v2063_v33 = vpack.c.bf16 %v792_v28, %v792_v28  ;;  %v784_v34 = vadd.f32 %v2594_v3, %v783_v32  ;;  %v1039_v35 = vpop.f32.mrf.mxu1 }
 0x132   : > { %1736 = vst.msk [vmem:[%s2601_s28 + $0x1b0] sm:$0xf] %vm1627_vm1, %v2124_v30  ;;  %v2127_v36 = vpack.c.bf16 %v1048_v31, %v1048_v31  ;;  %v1040_v37 = vadd.f32 %v2594_v3, %v1039_v35  ;;  %v2261_v38 = vpop.f32.mrf.mxu0 }
 0x133   : > { %1675 = vst.msk [vmem:[%s2601_s28 + $0xbc] sm:$0xf] %vm1627_vm1, %v2063_v33  ;;  %v2061_v39 = vpack.c.bf16 %v784_v34, %v784_v34  ;;  %v805_v40 = vadd.f32 %v2261_v38, %v2594_v3  ;;  %v2325_v41 = vpop.f32.mrf.mxu1 }
 0x134   : > { %1739 = vst.msk [vmem:[%s2601_s28 + $0x1bc] sm:$0xf] %vm1627_vm1, %v2127_v36  ;;  %v2125_v42 = vpack.c.bf16 %v1040_v37, %v1040_v37  ;;  %v1061_v43 = vadd.f32 %v2325_v41, %v2594_v3  ;;  %v796_v44 = vpop.f32.mrf.mxu0 }
 0x135   : > { %1673 = vst.msk [vmem:[%s2601_s28 + $0xb4] sm:$0xf] %vm1627_vm1, %v2061_v39  ;;  %v2066_v45 = vpack.c.bf16 %v805_v40, %v805_v40  ;;  %v797_v46 = vadd.f32 %v2594_v3, %v796_v44  ;;  %v1052_v47 = vpop.f32.mrf.mxu1 }
 0x136   : > { %1737 = vst.msk [vmem:[%s2601_s28 + $0x1b4] sm:$0xf] %vm1627_vm1, %v2125_v42  ;;  %v2130_v48 = vpack.c.bf16 %v1061_v43, %v1061_v43  ;;  %v1053_v49 = vadd.f32 %v2594_v3, %v1052_v47  ;;  %v2262_v50 = vpop.f32.mrf.mxu0 }
 0x137   : > { %1678 = vst.msk [vmem:[%s2601_s28 + $0xc8] sm:$0xf] %vm1627_vm1, %v2066_v45  ;;  %v2064_v51 = vpack.c.bf16 %v797_v46, %v797_v46  ;;  %v808_v52 = vadd.f32 %v2262_v50, %v2594_v3  ;;  %v2326_v53 = vpop.f32.mrf.mxu1 }
 0x138   : > { %1742 = vst.msk [vmem:[%s2601_s28 + $0x1c8] sm:$0xf] %vm1627_vm1, %v2130_v48  ;;  %v2128_v54 = vpack.c.bf16 %v1053_v49, %v1053_v49  ;;  %v1064_v55 = vadd.f32 %v2326_v53, %v2594_v3  ;;  %v799_v56 = vpop.f32.mrf.mxu0 }
 0x139   : > { %1676 = vst.msk [vmem:[%s2601_s28 + $0xc0] sm:$0xf] %vm1627_vm1, %v2064_v51  ;;  %v2067_v57 = vpack.c.bf16 %v808_v52, %v808_v52  ;;  %v800_v58 = vadd.f32 %v2594_v3, %v799_v56  ;;  %v1055_v59 = vpop.f32.mrf.mxu1 }
 0x13a   : > { %1740 = vst.msk [vmem:[%s2601_s28 + $0x1c0] sm:$0xf] %vm1627_vm1, %v2128_v54  ;;  %v2131_v60 = vpack.c.bf16 %v1064_v55, %v1064_v55  ;;  %v1056_v61 = vadd.f32 %v2594_v3, %v1055_v59  ;;  %v2265_v62 = vpop.f32.mrf.mxu0 }
 0x13b   : > { %1679 = vst.msk [vmem:[%s2601_s28 + $0xcc] sm:$0xf] %vm1627_vm1, %v2067_v57  ;;  %v2065_v63 = vpack.c.bf16 %v800_v58, %v800_v58  ;;  %v821_v0 = vadd.f32 %v2265_v62, %v2594_v3  ;;  %v2329_v1 = vpop.f32.mrf.mxu1 }
 0x13c   : > { %1743 = vst.msk [vmem:[%s2601_s28 + $0x1cc] sm:$0xf] %vm1627_vm1, %v2131_v60  ;;  %v2129_v2 = vpack.c.bf16 %v1056_v61, %v1056_v61  ;;  %v1077_v4 = vadd.f32 %v2329_v1, %v2594_v3  ;;  %v812_v5 = vpop.f32.mrf.mxu0 }
 0x13d   : > { %1677 = vst.msk [vmem:[%s2601_s28 + $0xc4] sm:$0xf] %vm1627_vm1, %v2065_v63  ;;  %v2070_v6 = vpack.c.bf16 %v821_v0, %v821_v0  ;;  %v813_v7 = vadd.f32 %v2594_v3, %v812_v5  ;;  %v1068_v8 = vpop.f32.mrf.mxu1 }
 0x13e   : > { %1741 = vst.msk [vmem:[%s2601_s28 + $0x1c4] sm:$0xf] %vm1627_vm1, %v2129_v2  ;;  %v2134_v9 = vpack.c.bf16 %v1077_v4, %v1077_v4  ;;  %v1069_v10 = vadd.f32 %v2594_v3, %v1068_v8  ;;  %v2266_v11 = vpop.f32.mrf.mxu0 }
 0x13f   : > { %1682 = vst.msk [vmem:[%s2601_s28 + $0xd8] sm:$0xf] %vm1627_vm1, %v2070_v6  ;;  %v2068_v12 = vpack.c.bf16 %v813_v7, %v813_v7  ;;  %v824_v13 = vadd.f32 %v2266_v11, %v2594_v3  ;;  %v2330_v14 = vpop.f32.mrf.mxu1 }
 0x140   : > { %1746 = vst.msk [vmem:[%s2601_s28 + $0x1d8] sm:$0xf] %vm1627_vm1, %v2134_v9  ;;  %v2132_v15 = vpack.c.bf16 %v1069_v10, %v1069_v10  ;;  %v1080_v16 = vadd.f32 %v2330_v14, %v2594_v3  ;;  %v815_v17 = vpop.f32.mrf.mxu0 }
 0x141   : > { %1680 = vst.msk [vmem:[%s2601_s28 + $0xd0] sm:$0xf] %vm1627_vm1, %v2068_v12  ;;  %v2071_v18 = vpack.c.bf16 %v824_v13, %v824_v13  ;;  %v816_v19 = vadd.f32 %v2594_v3, %v815_v17  ;;  %v1071_v20 = vpop.f32.mrf.mxu1 }
 0x142   : > { %1744 = vst.msk [vmem:[%s2601_s28 + $0x1d0] sm:$0xf] %vm1627_vm1, %v2132_v15  ;;  %v2135_v21 = vpack.c.bf16 %v1080_v16, %v1080_v16  ;;  %v1072_v22 = vadd.f32 %v2594_v3, %v1071_v20  ;;  %v2269_v23 = vpop.f32.mrf.mxu0 }
 0x143   : > { %1683 = vst.msk [vmem:[%s2601_s28 + $0xdc] sm:$0xf] %vm1627_vm1, %v2071_v18  ;;  %v2069_v24 = vpack.c.bf16 %v816_v19, %v816_v19  ;;  %v837_v25 = vadd.f32 %v2269_v23, %v2594_v3  ;;  %v2333_v26 = vpop.f32.mrf.mxu1 }
 0x144   : > { %1747 = vst.msk [vmem:[%s2601_s28 + $0x1dc] sm:$0xf] %vm1627_vm1, %v2135_v21  ;;  %v2133_v27 = vpack.c.bf16 %v1072_v22, %v1072_v22  ;;  %v1093_v28 = vadd.f32 %v2333_v26, %v2594_v3  ;;  %v828_v29 = vpop.f32.mrf.mxu0 }
 0x145   : > { %1681 = vst.msk [vmem:[%s2601_s28 + $0xd4] sm:$0xf] %vm1627_vm1, %v2069_v24  ;;  %v2074_v30 = vpack.c.bf16 %v837_v25, %v837_v25  ;;  %v829_v31 = vadd.f32 %v2594_v3, %v828_v29  ;;  %v1084_v32 = vpop.f32.mrf.mxu1 }
 0x146   : > { %1745 = vst.msk [vmem:[%s2601_s28 + $0x1d4] sm:$0xf] %vm1627_vm1, %v2133_v27  ;;  %v2138_v33 = vpack.c.bf16 %v1093_v28, %v1093_v28  ;;  %v1085_v34 = vadd.f32 %v2594_v3, %v1084_v32  ;;  %v2270_v35 = vpop.f32.mrf.mxu0 }
 0x147   : > { %1686 = vst.msk [vmem:[%s2601_s28 + $0xe8] sm:$0xf] %vm1627_vm1, %v2074_v30  ;;  %v2072_v36 = vpack.c.bf16 %v829_v31, %v829_v31  ;;  %v840_v37 = vadd.f32 %v2270_v35, %v2594_v3  ;;  %v2334_v38 = vpop.f32.mrf.mxu1 }
 0x148   : > { %1750 = vst.msk [vmem:[%s2601_s28 + $0x1e8] sm:$0xf] %vm1627_vm1, %v2138_v33  ;;  %v2136_v39 = vpack.c.bf16 %v1085_v34, %v1085_v34  ;;  %v1096_v40 = vadd.f32 %v2334_v38, %v2594_v3  ;;  %v831_v41 = vpop.f32.mrf.mxu0 }
 0x149   : > { %1684 = vst.msk [vmem:[%s2601_s28 + $0xe0] sm:$0xf] %vm1627_vm1, %v2072_v36  ;;  %v2075_v42 = vpack.c.bf16 %v840_v37, %v840_v37  ;;  %v832_v43 = vadd.f32 %v2594_v3, %v831_v41  ;;  %v1087_v44 = vpop.f32.mrf.mxu1 }
 0x14a   : > { %1748 = vst.msk [vmem:[%s2601_s28 + $0x1e0] sm:$0xf] %vm1627_vm1, %v2136_v39  ;;  %v2139_v45 = vpack.c.bf16 %v1096_v40, %v1096_v40  ;;  %v1088_v46 = vadd.f32 %v2594_v3, %v1087_v44  ;;  %v2273_v47 = vpop.f32.mrf.mxu0 }
 0x14b   : > { %1687 = vst.msk [vmem:[%s2601_s28 + $0xec] sm:$0xf] %vm1627_vm1, %v2075_v42  ;;  %v2073_v48 = vpack.c.bf16 %v832_v43, %v832_v43  ;;  %v853_v49 = vadd.f32 %v2273_v47, %v2594_v3  ;;  %v2337_v50 = vpop.f32.mrf.mxu1 }
 0x14c   : > { %1751 = vst.msk [vmem:[%s2601_s28 + $0x1ec] sm:$0xf] %vm1627_vm1, %v2139_v45  ;;  %v2137_v51 = vpack.c.bf16 %v1088_v46, %v1088_v46  ;;  %v1109_v52 = vadd.f32 %v2337_v50, %v2594_v3  ;;  %v844_v53 = vpop.f32.mrf.mxu0 }
 0x14d   : > { %1685 = vst.msk [vmem:[%s2601_s28 + $0xe4] sm:$0xf] %vm1627_vm1, %v2073_v48  ;;  %v2078_v54 = vpack.c.bf16 %v853_v49, %v853_v49  ;;  %v845_v55 = vadd.f32 %v2594_v3, %v844_v53  ;;  %v1100_v56 = vpop.f32.mrf.mxu1 }
 0x14e   : > { %1749 = vst.msk [vmem:[%s2601_s28 + $0x1e4] sm:$0xf] %vm1627_vm1, %v2137_v51  ;;  %v2142_v57 = vpack.c.bf16 %v1109_v52, %v1109_v52  ;;  %v1101_v58 = vadd.f32 %v2594_v3, %v1100_v56  ;;  %v2274_v59 = vpop.f32.mrf.mxu0 }
 0x14f   : > { %1690 = vst.msk [vmem:[%s2601_s28 + $0xf8] sm:$0xf] %vm1627_vm1, %v2078_v54  ;;  %v2076_v60 = vpack.c.bf16 %v845_v55, %v845_v55  ;;  %v856_v61 = vadd.f32 %v2274_v59, %v2594_v3  ;;  %v2338_v62 = vpop.f32.mrf.mxu1 }
 0x150   : > { %1754 = vst.msk [vmem:[%s2601_s28 + $0x1f8] sm:$0xf] %vm1627_vm1, %v2142_v57  ;;  %v2140_v63 = vpack.c.bf16 %v1101_v58, %v1101_v58  ;;  %v1112_v0 = vadd.f32 %v2338_v62, %v2594_v3  ;;  %v847_v1 = vpop.f32.mrf.mxu0 }
 0x151   : > { %1688 = vst.msk [vmem:[%s2601_s28 + $0xf0] sm:$0xf] %vm1627_vm1, %v2076_v60  ;;  %v2079_v2 = vpack.c.bf16 %v856_v61, %v856_v61  ;;  %v848_v4 = vadd.f32 %v2594_v3, %v847_v1  ;;  %v1103_v5 = vpop.f32.mrf.mxu1 }
 0x152   : > { %1752 = vst.msk [vmem:[%s2601_s28 + $0x1f0] sm:$0xf] %vm1627_vm1, %v2140_v63  ;;  %v2143_v6 = vpack.c.bf16 %v1112_v0, %v1112_v0  ;;  %v1104_v7 = vadd.f32 %v2594_v3, %v1103_v5 }
 0x153   : > { %1691 = vst.msk [vmem:[%s2601_s28 + $0xfc] sm:$0xf] %vm1627_vm1, %v2079_v2  ;;  %v2077_v8 = vpack.c.bf16 %v848_v4, %v848_v4 }
 0x154   : > { %1755 = vst.msk [vmem:[%s2601_s28 + $0x1fc] sm:$0xf] %vm1627_vm1, %v2143_v6  ;;  %v2141_v9 = vpack.c.bf16 %v1104_v7, %v1104_v7 }
 0x155   : > { %1689 = vst.msk [vmem:[%s2601_s28 + $0xf4] sm:$0xf] %vm1627_vm1, %v2077_v8 }
 0x156   : > { %1753 = vst.msk [vmem:[%s2601_s28 + $0x1f4] sm:$0xf] %vm1627_vm1, %v2141_v9 }
 0x157 PF: > { %s13_s12 = sadd.s32 1, %s2355_s12  }
 0x158   : > { %p10_p4 = scmp.ge.s32.totalorder %s13_s12, 4  }
 0x15a   :  { %12 = sbr.rel (!%p10_p4) target bundleno = 1 (0x1), region = 62 }

// kernel: esa_forward.7
= control target key start
LH: loop header
LB: loop body
LE: loop exit
PB: predicated region body
PF: predicated region fallthrough
CT: control target
= control target key end

     0   :  { %vm312_vm0 = vcmask 1043456   ;;  %v1181_v0 = vmov 0.0   ;;  %vm140_vm1 = vcmask 293888   ;;  %vm1182_vm2 = vmmov 0   ;;  %s1780_s1 = inlined_call_operand.vmem [shape: f32[36,4], index: 1, kind: input, shape index: {}]   ;;  %s1781_s0 = inlined_call_operand.vmem [shape: bf16[456,36], index: 0, kind: input, shape index: {}]   ;;  %s1782_s2 = inlined_call_operand.vmem [shape: f32[1,4], index: 2, kind: input, shape index: {}]   ;;  %s1783_s3 = inlined_call_operand.vmem [shape: f32[456,4], index: 3, kind: output, shape index: {}]  }
   0x1   :  { %988 = vmatprep.subr.mxu0 %v1181_v0  ;;  %v132_v1 = vld [vmem:[%s1780_s1 + $0x20] sm:$0xf]  ;;  %1169 = vmatprep.subr.mxu1 %v1181_v0  ;;  %v131_v2 = vld [vmem:[%s1780_s1 + $0x18] sm:$0xff]  ;;  %v130_v3 = vld [vmem:[%s1780_s1 + $0x10] sm:$0xff]  ;;  %vm666_vm3 = vcmask 31744  }
   0x2   :  { %989 = vmatpush3.msk.msra.mxu0 %vm312_vm0, %v132_v1  ;;  %1174 = vmatpush3.msk.msra.mxu1 %vm312_vm0, %v132_v1  ;;  %v788_v4 = vld [vmem:[%s1781_s0] sm:$0xff]   ;;  %v129_v5 = vld [vmem:[%s1780_s1 + $0x8] sm:$0xff]  ;;  %v1227_v6 = vld [vmem:[%s1781_s0 + $0x70] sm:$0xff]  }
   0x3   :  { %990 = vmatprep.subr.mxu0 %v1181_v0  ;;  %1170 = vmatprep.subr.mxu1 %v1181_v0  ;;  %v128_v7 = vld [vmem:[%s1780_s1] sm:$0xff]  ;;  %v789_v8 = vunpack.c.l.bf16 %v788_v4  ;;  %v846_v9 = vunpack.c.h.bf16 %v1227_v6  ;;  %v913_v10 = vld [vmem:[%s1781_s0 + $0x78] sm:$0xff]   ;;  %v790_v11 = vunpack.c.h.bf16 %v788_v4  ;;  %v899_v12 = vld [vmem:[%s1781_s0 + $0x8] sm:$0xff]  }
   0x4   :  { %991 = vmatpush3.msra.mxu0 %v131_v2  ;;  %1175 = vmatpush3.msra.mxu1 %v131_v2  ;;  %v849_v13 = vunpack.c.l.bf16 %v913_v10  ;;  %v793_v14 = vunpack.c.l.bf16 %v899_v12  ;;  %v850_v15 = vunpack.c.h.bf16 %v913_v10  ;;  %v914_v16 = vld [vmem:[%s1781_s0 + $0x80] sm:$0xff]   ;;  %v794_v17 = vunpack.c.h.bf16 %v899_v12  ;;  %v900_v18 = vld [vmem:[%s1781_s0 + $0x10] sm:$0xff]   ;;  %v915_v22 = vld [vmem:[%s1781_s0 + $0x88] sm:$0xff]  }
   0x5   :  { %992 = vmatprep.subr.mxu0 %v1181_v0  ;;  %1171 = vmatprep.subr.mxu1 %v1181_v0  ;;  %v853_v19 = vunpack.c.l.bf16 %v914_v16  ;;  %v797_v20 = vunpack.c.l.bf16 %v900_v18  ;;  %v854_v21 = vunpack.c.h.bf16 %v914_v16  ;;  %v798_v23 = vunpack.c.h.bf16 %v900_v18  ;;  %v901_v24 = vld [vmem:[%s1781_s0 + $0x18] sm:$0xff]   ;;  %v916_v28 = vld [vmem:[%s1781_s0 + $0x90] sm:$0xff]   ;;  %v902_v30 = vld [vmem:[%s1781_s0 + $0x20] sm:$0xff]  }
   0x6   :  { %993 = vmatpush3.msra.mxu0 %v130_v3  ;;  %1176 = vmatpush3.msra.mxu1 %v130_v3  ;;  %v857_v25 = vunpack.c.l.bf16 %v915_v22  ;;  %v801_v26 = vunpack.c.l.bf16 %v901_v24  ;;  %v858_v27 = vunpack.c.h.bf16 %v915_v22  ;;  %v802_v29 = vunpack.c.h.bf16 %v901_v24  ;;  %v917_v34 = vld [vmem:[%s1781_s0 + $0x98] sm:$0xff]   ;;  %v903_v36 = vld [vmem:[%s1781_s0 + $0x28] sm:$0xff]   ;;  %v918_v40 = vld [vmem:[%s1781_s0 + $0xa0] sm:$0xff]  }
   0x7   :  { %994 = vmatprep.subr.mxu0 %v1181_v0  ;;  %1172 = vmatprep.subr.mxu1 %v1181_v0  ;;  %v861_v31 = vunpack.c.l.bf16 %v916_v28  ;;  %v805_v32 = vunpack.c.l.bf16 %v902_v30  ;;  %v862_v33 = vunpack.c.h.bf16 %v916_v28  ;;  %v806_v35 = vunpack.c.h.bf16 %v902_v30  ;;  %v904_v42 = vld [vmem:[%s1781_s0 + $0x30] sm:$0xff]   ;;  %v919_v46 = vld [vmem:[%s1781_s0 + $0xa8] sm:$0xff]   ;;  %v905_v48 = vld [vmem:[%s1781_s0 + $0x38] sm:$0xff]  }
   0x8   :  { %995 = vmatpush3.msra.mxu0 %v129_v5  ;;  %1177 = vmatpush3.msra.mxu1 %v129_v5  ;;  %v865_v37 = vunpack.c.l.bf16 %v917_v34  ;;  %v809_v38 = vunpack.c.l.bf16 %v903_v36  ;;  %v866_v39 = vunpack.c.h.bf16 %v917_v34  ;;  %v810_v41 = vunpack.c.h.bf16 %v903_v36  ;;  %v920_v52 = vld [vmem:[%s1781_s0 + $0xb0] sm:$0xff]   ;;  %v906_v54 = vld [vmem:[%s1781_s0 + $0x40] sm:$0xff]   ;;  %v921_v58 = vld [vmem:[%s1781_s0 + $0xb8] sm:$0xff]  }
   0x9   :  { %996 = vmatprep.subr.mxu0 %v1181_v0  ;;  %998 = vmatprep.mubr.msk.f32.mxu0 %vm1182_vm2, %v1181_v0  ;;  %v869_v43 = vunpack.c.l.bf16 %v918_v40  ;;  %v813_v44 = vunpack.c.l.bf16 %v904_v42  ;;  %v870_v45 = vunpack.c.h.bf16 %v918_v40  ;;  %v814_v47 = vunpack.c.h.bf16 %v904_v42  ;;  %v907_v60 = vld [vmem:[%s1781_s0 + $0x48] sm:$0xff]   ;;  %v922_v1 = vld [vmem:[%s1781_s0 + $0xc0] sm:$0xff]   ;;  %v908_v3 = vld [vmem:[%s1781_s0 + $0x50] sm:$0xff]  }
   0xa   :  { %997 = vmatpush3.msra.mxu0 %v128_v7  ;;  %1173 = vmatprep.subr.mxu1 %v1181_v0  ;;  %v873_v49 = vunpack.c.l.bf16 %v919_v46  ;;  %v817_v50 = vunpack.c.l.bf16 %v905_v48  ;;  %v874_v51 = vunpack.c.h.bf16 %v919_v46  ;;  %v818_v53 = vunpack.c.h.bf16 %v905_v48  ;;  %v909_v10 = vld [vmem:[%s1781_s0 + $0x58] sm:$0xff]   ;;  %v910_v16 = vld [vmem:[%s1781_s0 + $0x60] sm:$0xff]   ;;  %v911_v22 = vld [vmem:[%s1781_s0 + $0x68] sm:$0xff]  }
   0xb   :  { %999 = vmatmul.mubr.msk.f32.vlgmr.msra.gmra.mxu0 %vm140_vm1, %v789_v8  ;;  %1178 = vmatpush3.msra.mxu1 %v128_v7  ;;  %v877_v55 = vunpack.c.l.bf16 %v920_v52  ;;  %v821_v56 = vunpack.c.l.bf16 %v906_v54  ;;  %v878_v57 = vunpack.c.h.bf16 %v920_v52  ;;  %v822_v59 = vunpack.c.h.bf16 %v906_v54  ;;  %v923_v8 = vld [vmem:[%s1781_s0 + $0xc8] sm:$0xff]   ;;  %v1493_v30 = vld [vmem:[%s1782_s2] ss:$0 sm:$0xff] }
   0xc   :  { %1085 = vmatprep.mubr.msk.f32.mxu1 %vm1182_vm2, %v1181_v0  ;;  %1001 = vmatprep.mubr.msk.f32.mxu0 %vm1182_vm2, %v1181_v0  ;;  %v881_v61 = vunpack.c.l.bf16 %v921_v58  ;;  %v825_v62 = vunpack.c.l.bf16 %v907_v60  ;;  %v882_v63 = vunpack.c.h.bf16 %v921_v58  ;;  %v826_v2 = vunpack.c.h.bf16 %v907_v60 }
   0xd   :  { %1086 = vmatmul.mubr.msk.f32.vlgmr.msra.gmra.mxu1 %vm140_vm1, %v846_v9  ;;  %v885_v4 = vunpack.c.l.bf16 %v922_v1  ;;  %v829_v5 = vunpack.c.l.bf16 %v908_v3  ;;  %v886_v7 = vunpack.c.h.bf16 %v922_v1  ;;  %v830_v9 = vunpack.c.h.bf16 %v908_v3 }
   0xe   :  { %1088 = vmatprep.mubr.msk.f32.mxu1 %vm1182_vm2, %v1181_v0  ;;  %v833_v12 = vunpack.c.l.bf16 %v909_v10  ;;  %v837_v18 = vunpack.c.l.bf16 %v910_v16  ;;  %v841_v24 = vunpack.c.l.bf16 %v911_v22 }
   0xf   :  { %1002 = vmatmul.mubr.msk.f32.gmra.mxu0 %vm140_vm1, %v790_v11  ;;  %v889_v11 = vunpack.c.l.bf16 %v923_v8 }
  0x10   :  { %1004 = vmatprep.mubr.msk.f32.mxu0 %vm1182_vm2, %v1181_v0 }
  0x11   :  { %1089 = vmatmul.mubr.msk.f32.gmra.mxu1 %vm140_vm1, %v849_v13  ;;  %v890_v13 = vunpack.c.h.bf16 %v923_v8 }
  0x12   :  { %1091 = vmatprep.mubr.msk.f32.mxu1 %vm1182_vm2, %v1181_v0 }
  0x13   :  { %1005 = vmatmul.mubr.msk.f32.gmra.mxu0 %vm140_vm1, %v793_v14  ;;  %v924_v14 = vld [vmem:[%s1781_s0 + $0xd0] sm:$0xff]  }
  0x14   :  { %1007 = vmatprep.mubr.msk.f32.mxu0 %vm1182_vm2, %v1181_v0 }
  0x15   :  { %1092 = vmatmul.mubr.msk.f32.gmra.mxu1 %vm140_vm1, %v850_v15  ;;  %v834_v15 = vunpack.c.h.bf16 %v909_v10 }
  0x16   :  { %1094 = vmatprep.mubr.msk.f32.mxu1 %vm1182_vm2, %v1181_v0 }
  0x17   :  { %1008 = vmatmul.mubr.msk.f32.gmra.mxu0 %vm140_vm1, %v794_v17  ;;  %v893_v17 = vunpack.c.l.bf16 %v924_v14 }
  0x18   :  { %1010 = vmatprep.mubr.msk.f32.mxu0 %vm1182_vm2, %v1181_v0 }
  0x19   :  { %1095 = vmatmul.mubr.msk.f32.gmra.mxu1 %vm140_vm1, %v853_v19  ;;  %v894_v19 = vunpack.c.h.bf16 %v924_v14 }
  0x1a   :  { %1097 = vmatprep.mubr.msk.f32.mxu1 %vm1182_vm2, %v1181_v0 }
  0x1b   :  { %1011 = vmatmul.mubr.msk.f32.gmra.mxu0 %vm140_vm1, %v797_v20  ;;  %v925_v20 = vld [vmem:[%s1781_s0 + $0xd8] sm:$0xff]  }
  0x1c   :  { %1013 = vmatprep.mubr.msk.f32.mxu0 %vm1182_vm2, %v1181_v0 }
  0x1d   :  { %1098 = vmatmul.mubr.msk.f32.gmra.mxu1 %vm140_vm1, %v854_v21  ;;  %v838_v21 = vunpack.c.h.bf16 %v910_v16 }
  0x1e   :  { %1100 = vmatprep.mubr.msk.f32.mxu1 %vm1182_vm2, %v1181_v0 }
  0x1f   :  { %1014 = vmatmul.mubr.msk.f32.gmra.mxu0 %vm140_vm1, %v798_v23  ;;  %v897_v23 = vunpack.c.l.bf16 %v925_v20 }
  0x20   :  { %1016 = vmatprep.mubr.msk.f32.mxu0 %vm1182_vm2, %v1181_v0 }
  0x21   :  { %1101 = vmatmul.mubr.msk.f32.gmra.mxu1 %vm140_vm1, %v857_v25  ;;  %v898_v25 = vunpack.c.h.bf16 %v925_v20 }
  0x22   :  { %1103 = vmatprep.mubr.msk.f32.mxu1 %vm1182_vm2, %v1181_v0 }
  0x23   :  { %1017 = vmatmul.mubr.msk.f32.gmra.mxu0 %vm140_vm1, %v801_v26  ;;  %v70_v26 = vld [vmem:[%s1781_s0 + $0xe0] sm:$0xf] }
  0x24   :  { %1019 = vmatprep.mubr.msk.f32.mxu0 %vm1182_vm2, %v1181_v0  ;;  %v127_v28 = vunpack.c.l.bf16 %v70_v26 }
  0x25   :  { %1104 = vmatmul.mubr.msk.f32.gmra.mxu1 %vm140_vm1, %v858_v27  ;;  %v842_v27 = vunpack.c.h.bf16 %v911_v22 }
  0x26   :  { %1106 = vmatprep.mubr.msk.f32.mxu1 %vm1182_vm2, %v1181_v0 }
  0x27   :  { %1020 = vmatmul.mubr.msk.f32.gmra.mxu0 %vm140_vm1, %v802_v29  ;;  %v845_v29 = vunpack.c.l.bf16 %v1227_v6 }
  0x28   :  { %1022 = vmatprep.mubr.msk.f32.mxu0 %vm1182_vm2, %v1181_v0 }
  0x29   :  { %1107 = vmatmul.mubr.msk.f32.gmra.mxu1 %vm140_vm1, %v861_v31 }
  0x2a   :  { %1109 = vmatprep.mubr.msk.f32.mxu1 %vm1182_vm2, %v1181_v0 }
  0x2b   :  { %1023 = vmatmul.mubr.msk.f32.gmra.mxu0 %vm140_vm1, %v805_v32 }
  0x2c   :  { %1025 = vmatprep.mubr.msk.f32.mxu0 %vm1182_vm2, %v1181_v0 }
  0x2d   :  { %1110 = vmatmul.mubr.msk.f32.gmra.mxu1 %vm140_vm1, %v862_v33 }
  0x2e   :  { %1112 = vmatprep.mubr.msk.f32.mxu1 %vm1182_vm2, %v1181_v0 }
  0x2f   :  { %1026 = vmatmul.mubr.msk.f32.gmra.mxu0 %vm140_vm1, %v806_v35 }
  0x30   :  { %1028 = vmatprep.mubr.msk.f32.mxu0 %vm1182_vm2, %v1181_v0 }
  0x31   :  { %1113 = vmatmul.mubr.msk.f32.gmra.mxu1 %vm140_vm1, %v865_v37 }
  0x32   :  { %1115 = vmatprep.mubr.msk.f32.mxu1 %vm1182_vm2, %v1181_v0 }
  0x33   :  { %1029 = vmatmul.mubr.msk.f32.gmra.mxu0 %vm140_vm1, %v809_v38 }
  0x34   :  { %1031 = vmatprep.mubr.msk.f32.mxu0 %vm1182_vm2, %v1181_v0 }
  0x35   :  { %1116 = vmatmul.mubr.msk.f32.gmra.mxu1 %vm140_vm1, %v866_v39 }
  0x36   :  { %1118 = vmatprep.mubr.msk.f32.mxu1 %vm1182_vm2, %v1181_v0 }
  0x37   :  { %1032 = vmatmul.mubr.msk.f32.gmra.mxu0 %vm140_vm1, %v810_v41 }
  0x38   :  { %1034 = vmatprep.mubr.msk.f32.mxu0 %vm1182_vm2, %v1181_v0 }
  0x39   :  { %1119 = vmatmul.mubr.msk.f32.gmra.mxu1 %vm140_vm1, %v869_v43 }
  0x3a   :  { %1121 = vmatprep.mubr.msk.f32.mxu1 %vm1182_vm2, %v1181_v0 }
  0x3b   :  { %1035 = vmatmul.mubr.msk.f32.gmra.mxu0 %vm140_vm1, %v813_v44 }
  0x3c   :  { %1037 = vmatprep.mubr.msk.f32.mxu0 %vm1182_vm2, %v1181_v0 }
  0x3d   :  { %1122 = vmatmul.mubr.msk.f32.gmra.mxu1 %vm140_vm1, %v870_v45 }
  0x3e   :  { %1124 = vmatprep.mubr.msk.f32.mxu1 %vm1182_vm2, %v1181_v0 }
  0x3f   :  { %1038 = vmatmul.mubr.msk.f32.gmra.mxu0 %vm140_vm1, %v814_v47 }
  0x40   :  { %1040 = vmatprep.mubr.msk.f32.mxu0 %vm1182_vm2, %v1181_v0 }
  0x41   :  { %1125 = vmatmul.mubr.msk.f32.gmra.mxu1 %vm140_vm1, %v873_v49 }
  0x42   :  { %1127 = vmatprep.mubr.msk.f32.mxu1 %vm1182_vm2, %v1181_v0 }
  0x43   :  { %1041 = vmatmul.mubr.msk.f32.gmra.mxu0 %vm140_vm1, %v817_v50 }
  0x44   :  { %1043 = vmatprep.mubr.msk.f32.mxu0 %vm1182_vm2, %v1181_v0 }
  0x45   :  { %1128 = vmatmul.mubr.msk.f32.gmra.mxu1 %vm140_vm1, %v874_v51 }
  0x46   :  { %1130 = vmatprep.mubr.msk.f32.mxu1 %vm1182_vm2, %v1181_v0 }
  0x47   :  { %1044 = vmatmul.mubr.msk.f32.gmra.mxu0 %vm140_vm1, %v818_v53 }
  0x48   :  { %1046 = vmatprep.mubr.msk.f32.mxu0 %vm1182_vm2, %v1181_v0 }
  0x49   :  { %1131 = vmatmul.mubr.msk.f32.gmra.mxu1 %vm140_vm1, %v877_v55 }
  0x4a   :  { %1133 = vmatprep.mubr.msk.f32.mxu1 %vm1182_vm2, %v1181_v0 }
  0x4b   :  { %1047 = vmatmul.mubr.msk.f32.gmra.mxu0 %vm140_vm1, %v821_v56 }
  0x4c   :  { %1049 = vmatprep.mubr.msk.f32.mxu0 %vm1182_vm2, %v1181_v0 }
  0x4d   :  { %1134 = vmatmul.mubr.msk.f32.gmra.mxu1 %vm140_vm1, %v878_v57 }
  0x4e   :  { %1136 = vmatprep.mubr.msk.f32.mxu1 %vm1182_vm2, %v1181_v0 }
  0x4f   :  { %1050 = vmatmul.mubr.msk.f32.gmra.mxu0 %vm140_vm1, %v822_v59 }
  0x50   :  { %1052 = vmatprep.mubr.msk.f32.mxu0 %vm1182_vm2, %v1181_v0 }
  0x51   :  { %1137 = vmatmul.mubr.msk.f32.gmra.mxu1 %vm140_vm1, %v881_v61 }
  0x52   :  { %1139 = vmatprep.mubr.msk.f32.mxu1 %vm1182_vm2, %v1181_v0 }
  0x53   :  { %1053 = vmatmul.mubr.msk.f32.gmra.mxu0 %vm140_vm1, %v825_v62 }
  0x54   :  { %1055 = vmatprep.mubr.msk.f32.mxu0 %vm1182_vm2, %v1181_v0 }
  0x55   :  { %1140 = vmatmul.mubr.msk.f32.gmra.mxu1 %vm140_vm1, %v882_v63 }
  0x56   :  { %1142 = vmatprep.mubr.msk.f32.mxu1 %vm1182_vm2, %v1181_v0 }
  0x57   :  { %1056 = vmatmul.mubr.msk.f32.gmra.mxu0 %vm140_vm1, %v826_v2 }
  0x58   :  { %1058 = vmatprep.mubr.msk.f32.mxu0 %vm1182_vm2, %v1181_v0 }
  0x59   :  { %1143 = vmatmul.mubr.msk.f32.gmra.mxu1 %vm140_vm1, %v885_v4 }
  0x5a   :  { %1145 = vmatprep.mubr.msk.f32.mxu1 %vm1182_vm2, %v1181_v0 }
  0x5b   :  { %1059 = vmatmul.mubr.msk.f32.gmra.mxu0 %vm140_vm1, %v829_v5 }
  0x5c   :  { %1061 = vmatprep.mubr.msk.f32.mxu0 %vm1182_vm2, %v1181_v0 }
  0x5d   :  { %1146 = vmatmul.mubr.msk.f32.gmra.mxu1 %vm140_vm1, %v886_v7 }
  0x5e   :  { %1148 = vmatprep.mubr.msk.f32.mxu1 %vm1182_vm2, %v1181_v0 }
  0x5f   :  { %1062 = vmatmul.mubr.msk.f32.gmra.mxu0 %vm140_vm1, %v830_v9 }
  0x60   :  { %1064 = vmatprep.mubr.msk.f32.mxu0 %vm1182_vm2, %v1181_v0 }
  0x61   :  { %1149 = vmatmul.mubr.msk.f32.gmra.mxu1 %vm140_vm1, %v889_v11 }
  0x62   :  { %1151 = vmatprep.mubr.msk.f32.mxu1 %vm1182_vm2, %v1181_v0 }
  0x63   :  { %1065 = vmatmul.mubr.msk.f32.gmra.mxu0 %vm140_vm1, %v833_v12 }
  0x64   :  { %1067 = vmatprep.mubr.msk.f32.mxu0 %vm1182_vm2, %v1181_v0 }
  0x65   :  { %1152 = vmatmul.mubr.msk.f32.gmra.mxu1 %vm140_vm1, %v890_v13 }
  0x66   :  { %1154 = vmatprep.mubr.msk.f32.mxu1 %vm1182_vm2, %v1181_v0 }
  0x67   :  { %1068 = vmatmul.mubr.msk.f32.gmra.mxu0 %vm140_vm1, %v834_v15 }
  0x68   :  { %1070 = vmatprep.mubr.msk.f32.mxu0 %vm1182_vm2, %v1181_v0 }
  0x69   :  { %1155 = vmatmul.mubr.msk.f32.gmra.mxu1 %vm140_vm1, %v893_v17 }
  0x6a   :  { %1157 = vmatprep.mubr.msk.f32.mxu1 %vm1182_vm2, %v1181_v0 }
  0x6b   :  { %1071 = vmatmul.mubr.msk.f32.gmra.mxu0 %vm140_vm1, %v837_v18 }
  0x6c   :  { %1073 = vmatprep.mubr.msk.f32.mxu0 %vm1182_vm2, %v1181_v0 }
  0x6d   :  { %1158 = vmatmul.mubr.msk.f32.gmra.mxu1 %vm140_vm1, %v894_v19 }
  0x6e   :  { %1160 = vmatprep.mubr.msk.f32.mxu1 %vm1182_vm2, %v1181_v0 }
  0x6f   :  { %1074 = vmatmul.mubr.msk.f32.gmra.mxu0 %vm140_vm1, %v838_v21 }
  0x70   :  { %1076 = vmatprep.mubr.msk.f32.mxu0 %vm1182_vm2, %v1181_v0 }
  0x71   :  { %1161 = vmatmul.mubr.msk.f32.gmra.mxu1 %vm140_vm1, %v897_v23 }
  0x72   :  { %1163 = vmatprep.mubr.msk.f32.mxu1 %vm1182_vm2, %v1181_v0 }
  0x73   :  { %1077 = vmatmul.mubr.msk.f32.gmra.mxu0 %vm140_vm1, %v841_v24 }
  0x74   :  { %1079 = vmatprep.mubr.msk.f32.mxu0 %vm1182_vm2, %v1181_v0 }
  0x75   :  { %1164 = vmatmul.mubr.msk.f32.gmra.mxu1 %vm140_vm1, %v898_v25 }
  0x76   :  { %1166 = vmatprep.mubr.msk.f32.mxu1 %vm1182_vm2, %v1181_v0 }
  0x77   :  { %1080 = vmatmul.mubr.msk.f32.gmra.mxu0 %vm140_vm1, %v842_v27 }
  0x78   :  { %1082 = vmatprep.mubr.msk.f32.mxu0 %vm1182_vm2, %v1181_v0 }
  0x79   :  { %1167 = vmatmul.mubr.msk.f32.gmra.mxu1 %vm140_vm1, %v127_v28 }
  0x7b   :  { %1083 = vmatmul.mubr.msk.f32.gmra.mxu0 %vm140_vm1, %v845_v29 }
  0xcb   :  { %v382_v31 = vpop.f32.mrf.mxu0 }
  0xcc   :  { %v383_v32 = vadd.f32 %v1493_v30, %v382_v31 }
  0xcd   :  { %v1000_v33 = vpop.f32.mrf.mxu0  ;;  %v527_v34 = vpop.f32.mrf.mxu1 }
  0xce   :  { %667 = vst.msk [vmem:[%s1783_s3] sm:$0xff] %vm666_vm3, %v383_v32  ;;  %v528_v0 = vadd.f32 %v1493_v30, %v527_v34 }
  0xcf   :  { %v387_v6 = vpop.f32.mrf.mxu0  ;;  %v1087_v35 = vpop.f32.mrf.mxu1 }
  0xd0   :  { %696 = vst.msk [vmem:[%s1783_s3 + $0xe8] sm:$0xff] %vm666_vm3, %v528_v0  ;;  %v388_v36 = vadd.f32 %v1493_v30, %v387_v6 }
  0xd1   :  { %v1003_v37 = vpop.f32.mrf.mxu0  ;;  %v532_v38 = vpop.f32.mrf.mxu1 }
  0xd2   :  { %668 = vst.msk [vmem:[%s1783_s3 + $0x8] sm:$0xff] %vm666_vm3, %v388_v36  ;;  %v533_v39 = vadd.f32 %v1493_v30, %v532_v38 }
  0xd3   :  { %v392_v40 = vpop.f32.mrf.mxu0  ;;  %v1090_v41 = vpop.f32.mrf.mxu1 }
  0xd4   :  { %697 = vst.msk [vmem:[%s1783_s3 + $0xf0] sm:$0xff] %vm666_vm3, %v533_v39  ;;  %v393_v42 = vadd.f32 %v1493_v30, %v392_v40 }
  0xd5   :  { %v1006_v43 = vpop.f32.mrf.mxu0  ;;  %v537_v44 = vpop.f32.mrf.mxu1 }
  0xd6   :  { %669 = vst.msk [vmem:[%s1783_s3 + $0x10] sm:$0xff] %vm666_vm3, %v393_v42  ;;  %v538_v45 = vadd.f32 %v1493_v30, %v537_v44 }
  0xd7   :  { %v397_v46 = vpop.f32.mrf.mxu0  ;;  %v1093_v47 = vpop.f32.mrf.mxu1 }
  0xd8   :  { %698 = vst.msk [vmem:[%s1783_s3 + $0xf8] sm:$0xff] %vm666_vm3, %v538_v45  ;;  %v398_v48 = vadd.f32 %v1493_v30, %v397_v46 }
  0xd9   :  { %v1009_v49 = vpop.f32.mrf.mxu0  ;;  %v542_v50 = vpop.f32.mrf.mxu1 }
  0xda   :  { %670 = vst.msk [vmem:[%s1783_s3 + $0x18] sm:$0xff] %vm666_vm3, %v398_v48  ;;  %v543_v51 = vadd.f32 %v1493_v30, %v542_v50 }
  0xdb   :  { %v402_v52 = vpop.f32.mrf.mxu0  ;;  %v1096_v53 = vpop.f32.mrf.mxu1 }
  0xdc   :  { %699 = vst.msk [vmem:[%s1783_s3 + $0x100] sm:$0xff] %vm666_vm3, %v543_v51  ;;  %v403_v54 = vadd.f32 %v1493_v30, %v402_v52 }
  0xdd   :  { %v1012_v55 = vpop.f32.mrf.mxu0  ;;  %v547_v56 = vpop.f32.mrf.mxu1 }
  0xde   :  { %671 = vst.msk [vmem:[%s1783_s3 + $0x20] sm:$0xff] %vm666_vm3, %v403_v54  ;;  %v548_v57 = vadd.f32 %v1493_v30, %v547_v56 }
  0xdf   :  { %v407_v58 = vpop.f32.mrf.mxu0  ;;  %v1099_v59 = vpop.f32.mrf.mxu1 }
  0xe0   :  { %700 = vst.msk [vmem:[%s1783_s3 + $0x108] sm:$0xff] %vm666_vm3, %v548_v57  ;;  %v408_v60 = vadd.f32 %v1493_v30, %v407_v58 }
  0xe1   :  { %v1015_v61 = vpop.f32.mrf.mxu0  ;;  %v552_v62 = vpop.f32.mrf.mxu1 }
  0xe2   :  { %672 = vst.msk [vmem:[%s1783_s3 + $0x28] sm:$0xff] %vm666_vm3, %v408_v60  ;;  %v553_v63 = vadd.f32 %v1493_v30, %v552_v62 }
  0xe3   :  { %v412_v1 = vpop.f32.mrf.mxu0  ;;  %v1102_v2 = vpop.f32.mrf.mxu1 }
  0xe4   :  { %701 = vst.msk [vmem:[%s1783_s3 + $0x110] sm:$0xff] %vm666_vm3, %v553_v63  ;;  %v413_v3 = vadd.f32 %v1493_v30, %v412_v1 }
  0xe5   :  { %v1018_v4 = vpop.f32.mrf.mxu0  ;;  %v557_v5 = vpop.f32.mrf.mxu1 }
  0xe6   :  { %673 = vst.msk [vmem:[%s1783_s3 + $0x30] sm:$0xff] %vm666_vm3, %v413_v3  ;;  %v558_v7 = vadd.f32 %v1493_v30, %v557_v5 }
  0xe7   :  { %v417_v8 = vpop.f32.mrf.mxu0  ;;  %v1105_v9 = vpop.f32.mrf.mxu1 }
  0xe8   :  { %702 = vst.msk [vmem:[%s1783_s3 + $0x118] sm:$0xff] %vm666_vm3, %v558_v7  ;;  %v418_v10 = vadd.f32 %v1493_v30, %v417_v8 }
  0xe9   :  { %v1021_v11 = vpop.f32.mrf.mxu0  ;;  %v562_v12 = vpop.f32.mrf.mxu1 }
  0xea   :  { %674 = vst.msk [vmem:[%s1783_s3 + $0x38] sm:$0xff] %vm666_vm3, %v418_v10  ;;  %v563_v13 = vadd.f32 %v1493_v30, %v562_v12 }
  0xeb   :  { %v422_v14 = vpop.f32.mrf.mxu0  ;;  %v1108_v15 = vpop.f32.mrf.mxu1 }
  0xec   :  { %703 = vst.msk [vmem:[%s1783_s3 + $0x120] sm:$0xff] %vm666_vm3, %v563_v13  ;;  %v423_v16 = vadd.f32 %v1493_v30, %v422_v14 }
  0xed   :  { %v1024_v17 = vpop.f32.mrf.mxu0  ;;  %v567_v18 = vpop.f32.mrf.mxu1 }
  0xee   :  { %675 = vst.msk [vmem:[%s1783_s3 + $0x40] sm:$0xff] %vm666_vm3, %v423_v16  ;;  %v568_v19 = vadd.f32 %v1493_v30, %v567_v18 }
  0xef   :  { %v427_v20 = vpop.f32.mrf.mxu0  ;;  %v1111_v21 = vpop.f32.mrf.mxu1 }
  0xf0   :  { %704 = vst.msk [vmem:[%s1783_s3 + $0x128] sm:$0xff] %vm666_vm3, %v568_v19  ;;  %v428_v22 = vadd.f32 %v1493_v30, %v427_v20 }
  0xf1   :  { %v1027_v23 = vpop.f32.mrf.mxu0  ;;  %v572_v24 = vpop.f32.mrf.mxu1 }
  0xf2   :  { %676 = vst.msk [vmem:[%s1783_s3 + $0x48] sm:$0xff] %vm666_vm3, %v428_v22  ;;  %v573_v25 = vadd.f32 %v1493_v30, %v572_v24 }
  0xf3   :  { %v432_v26 = vpop.f32.mrf.mxu0  ;;  %v1114_v27 = vpop.f32.mrf.mxu1 }
  0xf4   :  { %705 = vst.msk [vmem:[%s1783_s3 + $0x130] sm:$0xff] %vm666_vm3, %v573_v25  ;;  %v433_v28 = vadd.f32 %v1493_v30, %v432_v26 }
  0xf5   :  { %v1030_v29 = vpop.f32.mrf.mxu0  ;;  %v577_v31 = vpop.f32.mrf.mxu1 }
  0xf6   :  { %677 = vst.msk [vmem:[%s1783_s3 + $0x50] sm:$0xff] %vm666_vm3, %v433_v28  ;;  %v578_v32 = vadd.f32 %v1493_v30, %v577_v31 }
  0xf7   :  { %v437_v33 = vpop.f32.mrf.mxu0  ;;  %v1117_v34 = vpop.f32.mrf.mxu1 }
  0xf8   :  { %706 = vst.msk [vmem:[%s1783_s3 + $0x138] sm:$0xff] %vm666_vm3, %v578_v32  ;;  %v438_v0 = vadd.f32 %v1493_v30, %v437_v33 }
  0xf9   :  { %v1033_v6 = vpop.f32.mrf.mxu0  ;;  %v582_v35 = vpop.f32.mrf.mxu1 }
  0xfa   :  { %678 = vst.msk [vmem:[%s1783_s3 + $0x58] sm:$0xff] %vm666_vm3, %v438_v0  ;;  %v583_v36 = vadd.f32 %v1493_v30, %v582_v35 }
  0xfb   :  { %v442_v37 = vpop.f32.mrf.mxu0  ;;  %v1120_v38 = vpop.f32.mrf.mxu1 }
  0xfc   :  { %707 = vst.msk [vmem:[%s1783_s3 + $0x140] sm:$0xff] %vm666_vm3, %v583_v36  ;;  %v443_v39 = vadd.f32 %v1493_v30, %v442_v37 }
  0xfd   :  { %v1036_v40 = vpop.f32.mrf.mxu0  ;;  %v587_v41 = vpop.f32.mrf.mxu1 }
  0xfe   :  { %679 = vst.msk [vmem:[%s1783_s3 + $0x60] sm:$0xff] %vm666_vm3, %v443_v39  ;;  %v588_v42 = vadd.f32 %v1493_v30, %v587_v41 }
  0xff   :  { %v447_v43 = vpop.f32.mrf.mxu0  ;;  %v1123_v44 = vpop.f32.mrf.mxu1 }
 0x100   :  { %708 = vst.msk [vmem:[%s1783_s3 + $0x148] sm:$0xff] %vm666_vm3, %v588_v42  ;;  %v448_v45 = vadd.f32 %v1493_v30, %v447_v43 }
 0x101   :  { %v1039_v46 = vpop.f32.mrf.mxu0  ;;  %v592_v47 = vpop.f32.mrf.mxu1 }
 0x102   :  { %680 = vst.msk [vmem:[%s1783_s3 + $0x68] sm:$0xff] %vm666_vm3, %v448_v45  ;;  %v593_v48 = vadd.f32 %v1493_v30, %v592_v47 }
 0x103   :  { %v452_v49 = vpop.f32.mrf.mxu0  ;;  %v1126_v50 = vpop.f32.mrf.mxu1 }
 0x104   :  { %709 = vst.msk [vmem:[%s1783_s3 + $0x150] sm:$0xff] %vm666_vm3, %v593_v48  ;;  %v453_v51 = vadd.f32 %v1493_v30, %v452_v49 }
 0x105   :  { %v1042_v52 = vpop.f32.mrf.mxu0  ;;  %v597_v53 = vpop.f32.mrf.mxu1 }
 0x106   :  { %681 = vst.msk [vmem:[%s1783_s3 + $0x70] sm:$0xff] %vm666_vm3, %v453_v51  ;;  %v598_v54 = vadd.f32 %v1493_v30, %v597_v53 }
 0x107   :  { %v457_v55 = vpop.f32.mrf.mxu0  ;;  %v1129_v56 = vpop.f32.mrf.mxu1 }
 0x108   :  { %710 = vst.msk [vmem:[%s1783_s3 + $0x158] sm:$0xff] %vm666_vm3, %v598_v54  ;;  %v458_v57 = vadd.f32 %v1493_v30, %v457_v55 }
 0x109   :  { %v1045_v58 = vpop.f32.mrf.mxu0  ;;  %v602_v59 = vpop.f32.mrf.mxu1 }
 0x10a   :  { %682 = vst.msk [vmem:[%s1783_s3 + $0x78] sm:$0xff] %vm666_vm3, %v458_v57  ;;  %v603_v60 = vadd.f32 %v1493_v30, %v602_v59 }
 0x10b   :  { %v462_v61 = vpop.f32.mrf.mxu0  ;;  %v1132_v62 = vpop.f32.mrf.mxu1 }
 0x10c   :  { %711 = vst.msk [vmem:[%s1783_s3 + $0x160] sm:$0xff] %vm666_vm3, %v603_v60  ;;  %v463_v63 = vadd.f32 %v1493_v30, %v462_v61 }
 0x10d   :  { %v1048_v1 = vpop.f32.mrf.mxu0  ;;  %v607_v2 = vpop.f32.mrf.mxu1 }
 0x10e   :  { %683 = vst.msk [vmem:[%s1783_s3 + $0x80] sm:$0xff] %vm666_vm3, %v463_v63  ;;  %v608_v3 = vadd.f32 %v1493_v30, %v607_v2 }
 0x10f   :  { %v467_v4 = vpop.f32.mrf.mxu0  ;;  %v1135_v5 = vpop.f32.mrf.mxu1 }
 0x110   :  { %712 = vst.msk [vmem:[%s1783_s3 + $0x168] sm:$0xff] %vm666_vm3, %v608_v3  ;;  %v468_v7 = vadd.f32 %v1493_v30, %v467_v4 }
 0x111   :  { %v1051_v8 = vpop.f32.mrf.mxu0  ;;  %v612_v9 = vpop.f32.mrf.mxu1 }
 0x112   :  { %684 = vst.msk [vmem:[%s1783_s3 + $0x88] sm:$0xff] %vm666_vm3, %v468_v7  ;;  %v613_v10 = vadd.f32 %v1493_v30, %v612_v9 }
 0x113   :  { %v472_v11 = vpop.f32.mrf.mxu0  ;;  %v1138_v12 = vpop.f32.mrf.mxu1 }
 0x114   :  { %713 = vst.msk [vmem:[%s1783_s3 + $0x170] sm:$0xff] %vm666_vm3, %v613_v10  ;;  %v473_v13 = vadd.f32 %v1493_v30, %v472_v11 }
 0x115   :  { %v1054_v14 = vpop.f32.mrf.mxu0  ;;  %v617_v15 = vpop.f32.mrf.mxu1 }
 0x116   :  { %685 = vst.msk [vmem:[%s1783_s3 + $0x90] sm:$0xff] %vm666_vm3, %v473_v13  ;;  %v618_v16 = vadd.f32 %v1493_v30, %v617_v15 }
 0x117   :  { %v477_v17 = vpop.f32.mrf.mxu0  ;;  %v1141_v18 = vpop.f32.mrf.mxu1 }
 0x118   :  { %714 = vst.msk [vmem:[%s1783_s3 + $0x178] sm:$0xff] %vm666_vm3, %v618_v16  ;;  %v478_v19 = vadd.f32 %v1493_v30, %v477_v17 }
 0x119   :  { %v1057_v20 = vpop.f32.mrf.mxu0  ;;  %v622_v21 = vpop.f32.mrf.mxu1 }
 0x11a   :  { %686 = vst.msk [vmem:[%s1783_s3 + $0x98] sm:$0xff] %vm666_vm3, %v478_v19  ;;  %v623_v22 = vadd.f32 %v1493_v30, %v622_v21 }
 0x11b   :  { %v482_v23 = vpop.f32.mrf.mxu0  ;;  %v1144_v24 = vpop.f32.mrf.mxu1 }
 0x11c   :  { %715 = vst.msk [vmem:[%s1783_s3 + $0x180] sm:$0xff] %vm666_vm3, %v623_v22  ;;  %v483_v25 = vadd.f32 %v1493_v30, %v482_v23 }
 0x11d   :  { %v1060_v26 = vpop.f32.mrf.mxu0  ;;  %v627_v27 = vpop.f32.mrf.mxu1 }
 0x11e   :  { %687 = vst.msk [vmem:[%s1783_s3 + $0xa0] sm:$0xff] %vm666_vm3, %v483_v25  ;;  %v628_v28 = vadd.f32 %v1493_v30, %v627_v27 }
 0x11f   :  { %v487_v29 = vpop.f32.mrf.mxu0  ;;  %v1147_v31 = vpop.f32.mrf.mxu1 }
 0x120   :  { %716 = vst.msk [vmem:[%s1783_s3 + $0x188] sm:$0xff] %vm666_vm3, %v628_v28  ;;  %v488_v32 = vadd.f32 %v1493_v30, %v487_v29 }
 0x121   :  { %v1063_v33 = vpop.f32.mrf.mxu0  ;;  %v632_v34 = vpop.f32.mrf.mxu1 }
 0x122   :  { %688 = vst.msk [vmem:[%s1783_s3 + $0xa8] sm:$0xff] %vm666_vm3, %v488_v32  ;;  %v633_v0 = vadd.f32 %v1493_v30, %v632_v34 }
 0x123   :  { %v492_v6 = vpop.f32.mrf.mxu0  ;;  %v1150_v35 = vpop.f32.mrf.mxu1 }
 0x124   :  { %717 = vst.msk [vmem:[%s1783_s3 + $0x190] sm:$0xff] %vm666_vm3, %v633_v0  ;;  %v493_v36 = vadd.f32 %v1493_v30, %v492_v6 }
 0x125   :  { %v1066_v37 = vpop.f32.mrf.mxu0  ;;  %v637_v38 = vpop.f32.mrf.mxu1 }
 0x126   :  { %689 = vst.msk [vmem:[%s1783_s3 + $0xb0] sm:$0xff] %vm666_vm3, %v493_v36  ;;  %v638_v39 = vadd.f32 %v1493_v30, %v637_v38 }
 0x127   :  { %v497_v40 = vpop.f32.mrf.mxu0  ;;  %v1153_v41 = vpop.f32.mrf.mxu1 }
 0x128   :  { %718 = vst.msk [vmem:[%s1783_s3 + $0x198] sm:$0xff] %vm666_vm3, %v638_v39  ;;  %v498_v42 = vadd.f32 %v1493_v30, %v497_v40 }
 0x129   :  { %v1069_v43 = vpop.f32.mrf.mxu0  ;;  %v642_v44 = vpop.f32.mrf.mxu1 }
 0x12a   :  { %690 = vst.msk [vmem:[%s1783_s3 + $0xb8] sm:$0xff] %vm666_vm3, %v498_v42  ;;  %v643_v45 = vadd.f32 %v1493_v30, %v642_v44 }
 0x12b   :  { %v502_v46 = vpop.f32.mrf.mxu0  ;;  %v1156_v47 = vpop.f32.mrf.mxu1 }
 0x12c   :  { %719 = vst.msk [vmem:[%s1783_s3 + $0x1a0] sm:$0xff] %vm666_vm3, %v643_v45  ;;  %v503_v48 = vadd.f32 %v1493_v30, %v502_v46 }
 0x12d   :  { %v1072_v49 = vpop.f32.mrf.mxu0  ;;  %v647_v50 = vpop.f32.mrf.mxu1 }
 0x12e   :  { %691 = vst.msk [vmem:[%s1783_s3 + $0xc0] sm:$0xff] %vm666_vm3, %v503_v48  ;;  %v648_v51 = vadd.f32 %v1493_v30, %v647_v50 }
 0x12f   :  { %v507_v52 = vpop.f32.mrf.mxu0  ;;  %v1159_v53 = vpop.f32.mrf.mxu1 }
 0x130   :  { %720 = vst.msk [vmem:[%s1783_s3 + $0x1a8] sm:$0xff] %vm666_vm3, %v648_v51  ;;  %v508_v54 = vadd.f32 %v1493_v30, %v507_v52 }
 0x131   :  { %v1075_v55 = vpop.f32.mrf.mxu0  ;;  %v652_v56 = vpop.f32.mrf.mxu1 }
 0x132   :  { %692 = vst.msk [vmem:[%s1783_s3 + $0xc8] sm:$0xff] %vm666_vm3, %v508_v54  ;;  %v653_v57 = vadd.f32 %v1493_v30, %v652_v56 }
 0x133   :  { %v512_v58 = vpop.f32.mrf.mxu0  ;;  %v1162_v59 = vpop.f32.mrf.mxu1 }
 0x134   :  { %721 = vst.msk [vmem:[%s1783_s3 + $0x1b0] sm:$0xff] %vm666_vm3, %v653_v57  ;;  %v513_v60 = vadd.f32 %v1493_v30, %v512_v58 }
 0x135   :  { %v1078_v61 = vpop.f32.mrf.mxu0  ;;  %v657_v62 = vpop.f32.mrf.mxu1 }
 0x136   :  { %693 = vst.msk [vmem:[%s1783_s3 + $0xd0] sm:$0xff] %vm666_vm3, %v513_v60  ;;  %v658_v63 = vadd.f32 %v1493_v30, %v657_v62 }
 0x137   :  { %v517_v1 = vpop.f32.mrf.mxu0  ;;  %v1165_v2 = vpop.f32.mrf.mxu1 }
 0x138   :  { %722 = vst.msk [vmem:[%s1783_s3 + $0x1b8] sm:$0xff] %vm666_vm3, %v658_v63  ;;  %v518_v3 = vadd.f32 %v1493_v30, %v517_v1 }
 0x139   :  { %v1081_v4 = vpop.f32.mrf.mxu0  ;;  %v662_v5 = vpop.f32.mrf.mxu1 }
 0x13a   :  { %694 = vst.msk [vmem:[%s1783_s3 + $0xd8] sm:$0xff] %vm666_vm3, %v518_v3  ;;  %v663_v7 = vadd.f32 %v1493_v30, %v662_v5 }
 0x13b   :  { %v522_v8 = vpop.f32.mrf.mxu0  ;;  %v1168_v9 = vpop.f32.mrf.mxu1 }
 0x13c   :  { %723 = vst.msk [vmem:[%s1783_s3 + $0x1c0] sm:$0xff] %vm666_vm3, %v663_v7  ;;  %v523_v10 = vadd.f32 %v1493_v30, %v522_v8 }
 0x13d   :  { %v1084_v11 = vpop.f32.mrf.mxu0 }
 0x13e   :  { %695 = vst.msk [vmem:[%s1783_s3 + $0xe0] sm:$0xff] %vm666_vm3, %v523_v10 }

// kernel: esa_forward.8
= control target key start
LH: loop header
LB: loop body
LE: loop exit
PB: predicated region body
PF: predicated region fallthrough
CT: control target
= control target key end

     0   :  { %s1190_s12 = smov 0   ;;  %s1298_s0 = inlined_call_operand.vmem [shape: f32[2,28,4], index: 0, kind: input, shape index: {}]   ;;  %s1299_s1 = inlined_call_operand.vmem [shape: f32[36,4], index: 1, kind: input, shape index: {}]   ;;  %s1300_s2 = inlined_call_operand.vmem [shape: f32[1,4], index: 2, kind: input, shape index: {}]   ;;  %s1301_s3 = inlined_call_operand.vmem [shape: f32[2,16,4], index: 3, kind: output, shape index: {}]  }
   0x1 LB: > { %s1041_s13 = sadd.s32 4294967295, %s1168_s12   ;;  %p1045_p0 = scmp.ge.s32.totalorder %s1168_s12, 1  ;;  %s1168_s12 = sphi %s1190_s12, %s13_s12  }
   0x2   : > { %p137_p1 = scmp.lt.s32.totalorder %s1168_s12, 3 }
   0x4   : > { %p138_p2 = pnand %p1045_p0, %p137_p1 }
   0x5   : > { %p161_p3 = scmp.lt.s32.totalorder (!%p138_p2), %s1041_s13, 1 }
   0x6   : > { %141 = sbr.rel (%p138_p2) target bundleno = 232 (0xe8), region = 32 }
   0xb   : > { %v181_v0 = vld [vmem:[%s1299_s1] sm:$0xf]  ;;  %vm189_vm0 = vcmask 1043456   ;;  %v272_v1 = vld [vmem:[%s1299_s1 + $0x4] sm:$0xf]  ;;  %s1303_s13 = smov (!%p161_p3, %s1041_s13), 1 }
   0xc   : > { %1109 = vmatprep.subr.msk.mxu0 %vm189_vm0, %v181_v0  ;;  %1114 = vmatprep.subr.msk.mxu1 %vm189_vm0, %v272_v1  ;;  %v361_v2 = vld [vmem:[%s1299_s1 + $0x8] sm:$0xf]  ;;  %v450_v3 = vld [vmem:[%s1299_s1 + $0xc] sm:$0xf]  ;;  %s1080_s22 = sshll.u32 %s1303_s13, 5  ;;  %vm182_vm1 = vcmask 31744  }
   0xd   : > { %1110 = vmatpush3.msk.msra.mxu0 %vm189_vm0, %v181_v0  ;;  %1115 = vmatpush3.msk.msra.mxu1 %vm189_vm0, %v272_v1  ;;  %s1222_s25 = scalar_lea.vmem %s1298_s0, %s1080_s22  ;;  %v539_v10 = vld [vmem:[%s1299_s1 + $0x10] sm:$0xf]  ;;  %v628_v11 = vld [vmem:[%s1299_s1 + $0x14] sm:$0xf]  ;;  %v717_v16 = vld [vmem:[%s1299_s1 + $0x18] sm:$0xf] }
   0xe   : > { %1119 = vmatprep.subr.msk.mxu0 %vm189_vm0, %v361_v2  ;;  %1124 = vmatprep.subr.msk.mxu1 %vm189_vm0, %v450_v3  ;;  %v179_v4 = vld [vmem:[%s1222_s25] sm:$0xff]  ;;  %v180_v6 = vld [vmem:[%s1222_s25 + $0x8] sm:$0xff]  ;;  %v806_v17 = vld [vmem:[%s1299_s1 + $0x1c] sm:$0xf]  ;;  %s1081_s11 = sshll.u32 %s1303_s13, 4 }
   0xf   : > { %v270_v5 = vld [vmem:[%s1222_s25 + $0x1] sm:$0xff]  ;;  %1111 = vmatprep.mubr.msk.f32.mxu0 %vm182_vm1, %v179_v4  ;;  %v271_v7 = vld [vmem:[%s1222_s25 + $0x9] sm:$0xff]  ;;  %v716_v22 = vld [vmem:[%s1222_s25 + $0x12] sm:$0xff]  ;;  %s170_s16 = scalar_lea.vmem %s1301_s3, %s1081_s11 }
  0x10   : > { %1116 = vmatprep.mubr.msk.f32.mxu1 %vm182_vm1, %v270_v5  ;;  %v359_v8 = vld [vmem:[%s1222_s25 + $0x2] sm:$0xff]  ;;  %1112 = vmatmul.mubr.msk.f32.vlgmr.msra.gmra.mxu0 %vm182_vm1, %v180_v6  ;;  %v360_v12 = vld [vmem:[%s1222_s25 + $0xa] sm:$0xff]  ;;  %v805_v23 = vld [vmem:[%s1222_s25 + $0x13] sm:$0xff] }
  0x11   : > { %v448_v9 = vld [vmem:[%s1222_s25 + $0x5] sm:$0xff]  ;;  %1117 = vmatmul.mubr.msk.f32.vlgmr.msra.gmra.mxu1 %vm182_vm1, %v271_v7  ;;  %1120 = vmatpush3.msk.msra.mxu0 %vm189_vm0, %v361_v2  ;;  %v449_v13 = vld [vmem:[%s1222_s25 + $0xd] sm:$0xff]  ;;  %v895_v21 = vld [vmem:[%s1299_s1 + $0x20] sm:$0xf] }
  0x12   : > { %1125 = vmatpush3.msk.msra.mxu1 %vm189_vm0, %v450_v3  ;;  %1121 = vmatprep.mubr.msk.f32.mxu0 %vm182_vm1, %v359_v8  ;;  %v537_v14 = vld [vmem:[%s1222_s25 + $0x6] sm:$0xff]  ;;  %v538_v18 = vld [vmem:[%s1222_s25 + $0xe] sm:$0xff]  ;;  %v1050_v26 = vld [vmem:[%s1300_s2] ss:$0 sm:$0xff] }
  0x13   : > { %1126 = vmatprep.mubr.msk.f32.mxu1 %vm182_vm1, %v448_v9  ;;  %1129 = vmatprep.subr.msk.mxu0 %vm189_vm0, %v539_v10  ;;  %v626_v15 = vld [vmem:[%s1222_s25 + $0x7] sm:$0xff]  ;;  %v627_v19 = vld [vmem:[%s1222_s25 + $0xf] sm:$0xff] }
  0x14   : > { %1134 = vmatprep.subr.msk.mxu1 %vm189_vm0, %v628_v11  ;;  %1122 = vmatmul.mubr.msk.f32.vlgmr.msra.gmra.mxu0 %vm182_vm1, %v360_v12  ;;  %v804_v20 = vld [vmem:[%s1222_s25 + $0xb] sm:$0xff]  ;;  %v894_v25 = vld [vmem:[%s1222_s25 + $0x14] sm:$0xff] }
  0x15   : > { %1127 = vmatmul.mubr.msk.f32.vlgmr.msra.gmra.mxu1 %vm182_vm1, %v449_v13  ;;  %1130 = vmatpush3.msk.msra.mxu0 %vm189_vm0, %v539_v10  ;;  %v893_v24 = vld [vmem:[%s1222_s25 + $0xc] sm:$0xff] }
  0x16   : > { %1135 = vmatpush3.msk.msra.mxu1 %vm189_vm0, %v628_v11  ;;  %1131 = vmatprep.mubr.msk.f32.mxu0 %vm182_vm1, %v537_v14 }
  0x17   : > { %1136 = vmatprep.mubr.msk.f32.mxu1 %vm182_vm1, %v626_v15  ;;  %1139 = vmatprep.subr.msk.mxu0 %vm189_vm0, %v717_v16 }
  0x18   : > { %1144 = vmatprep.subr.msk.mxu1 %vm189_vm0, %v806_v17  ;;  %1132 = vmatmul.mubr.msk.f32.vlgmr.msra.gmra.mxu0 %vm182_vm1, %v538_v18 }
  0x19   : > { %1137 = vmatmul.mubr.msk.f32.vlgmr.msra.gmra.mxu1 %vm182_vm1, %v627_v19  ;;  %1140 = vmatpush3.msk.msra.mxu0 %vm189_vm0, %v717_v16 }
  0x1a   : > { %1145 = vmatpush3.msk.msra.mxu1 %vm189_vm0, %v806_v17  ;;  %1141 = vmatprep.mubr.msk.f32.mxu0 %vm182_vm1, %v360_v12 }
  0x1b   : > { %1146 = vmatprep.mubr.msk.f32.mxu1 %vm182_vm1, %v804_v20  ;;  %1149 = vmatprep.subr.msk.mxu0 %vm189_vm0, %v895_v21 }
  0x1c   : > { %1142 = vmatmul.mubr.msk.f32.vlgmr.msra.gmra.mxu0 %vm182_vm1, %v716_v22 }
  0x1d   : > { %1147 = vmatmul.mubr.msk.f32.vlgmr.msra.gmra.mxu1 %vm182_vm1, %v805_v23  ;;  %1150 = vmatpush3.msk.msra.mxu0 %vm189_vm0, %v895_v21 }
  0x1e   : > { %1151 = vmatprep.mubr.msk.f32.mxu0 %vm182_vm1, %v893_v24 }
  0x20   : > { %1152 = vmatmul.mubr.msk.f32.vlgmr.msra.gmra.mxu0 %vm182_vm1, %v894_v25 }
  0xd0   : > { %v1113_v27 = vpop.f32.mrf.mxu0 }
  0xd1   : > { %v1118_v28 = vpop.f32.mrf.mxu1  ;;  %v269_v29 = vadd.f32 %v1113_v27, %v1050_v26 }
  0xd2   : > { %v259_v30 = vpop.f32.mrf.mxu0 }
  0xd3   : > { %v348_v31 = vpop.f32.mrf.mxu1  ;;  %v358_v32 = vadd.f32 %v1118_v28, %v269_v29  ;;  %v268_v33 = vadd.f32 %v1050_v26, %v259_v30 }
  0xd4   : > { %v1123_v34 = vpop.f32.mrf.mxu0 }
  0xd5   : > { %v1128_v35 = vpop.f32.mrf.mxu1  ;;  %v357_v36 = vadd.f32 %v348_v31, %v268_v33  ;;  %v447_v37 = vadd.f32 %v1123_v34, %v358_v32 }
  0xd6   : > { %v437_v38 = vpop.f32.mrf.mxu0 }
  0xd7   : > { %v526_v39 = vpop.f32.mrf.mxu1  ;;  %v536_v40 = vadd.f32 %v1128_v35, %v447_v37  ;;  %v446_v41 = vadd.f32 %v437_v38, %v357_v36 }
  0xd8   : > { %v1133_v42 = vpop.f32.mrf.mxu0 }
  0xd9   : > { %v1138_v43 = vpop.f32.mrf.mxu1  ;;  %v535_v44 = vadd.f32 %v526_v39, %v446_v41  ;;  %v625_v45 = vadd.f32 %v1133_v42, %v536_v40 }
  0xda   : > { %v615_v46 = vpop.f32.mrf.mxu0 }
  0xdb   : > { %v704_v47 = vpop.f32.mrf.mxu1  ;;  %v714_v48 = vadd.f32 %v1138_v43, %v625_v45  ;;  %v624_v49 = vadd.f32 %v615_v46, %v535_v44 }
  0xdc   : > { %v1143_v50 = vpop.f32.mrf.mxu0 }
  0xdd   : > { %v1148_v51 = vpop.f32.mrf.mxu1  ;;  %v713_v52 = vadd.f32 %v704_v47, %v624_v49  ;;  %v803_v53 = vadd.f32 %v1143_v50, %v714_v48 }
  0xde   : > { %v793_v54 = vpop.f32.mrf.mxu0 }
  0xdf   : > { %v892_v55 = vadd.f32 %v1148_v51, %v803_v53  ;;  %v802_v56 = vadd.f32 %v793_v54, %v713_v52  ;;  %v882_v57 = vpop.f32.mrf.mxu1 }
  0xe0   : > { %v1153_v58 = vpop.f32.mrf.mxu0 }
  0xe1   : > { %v891_v59 = vadd.f32 %v882_v57, %v802_v56  ;;  %v981_v60 = vadd.f32 %v1153_v58, %v892_v55 }
  0xe2   : > { %v971_v61 = vpop.f32.mrf.mxu0 }
  0xe3   : > { %v983_v62 = vmax.f32 %v981_v60, 0.0  ;;  %v980_v63 = vadd.f32 %v971_v61, %v891_v59 }
  0xe5   : > { %985 = vst.msk [vmem:[%s170_s16 + $0x8] sm:$0xff] %vm182_vm1, %v983_v62  ;;  %v982_v0 = vmax.f32 %v980_v63, 0.0 }
  0xe7   : > { %984 = vst.msk [vmem:[%s170_s16] sm:$0xff] %vm182_vm1, %v982_v0 }
  0xe8 PF: > { %s13_s12 = sadd.s32 1, %s1168_s12  }
  0xe9   : > { %p10_p4 = scmp.ge.s32.totalorder %s13_s12, 4  }
  0xeb   :  { %12 = sbr.rel (!%p10_p4) target bundleno = 1 (0x1), region = 62 }

// kernel: esa_forward.10
= control target key start
LH: loop header
LB: loop body
LE: loop exit
PB: predicated region body
PF: predicated region fallthrough
CT: control target
= control target key end

     0   :  { %s1188_s12 = smov 0   ;;  %s1296_s0 = inlined_call_operand.vmem [shape: f32[2,28,4], index: 0, kind: input, shape index: {}]   ;;  %s1297_s1 = inlined_call_operand.vmem [shape: f32[36,4], index: 1, kind: input, shape index: {}]   ;;  %s1298_s2 = inlined_call_operand.vmem [shape: f32[1,4], index: 2, kind: input, shape index: {}]   ;;  %s1299_s3 = inlined_call_operand.vmem [shape: f32[2,16,4], index: 3, kind: output, shape index: {}]  }
   0x1 LB: > { %s1039_s13 = sadd.s32 4294967295, %s1166_s12   ;;  %p1043_p0 = scmp.ge.s32.totalorder %s1166_s12, 1  ;;  %s1166_s12 = sphi %s1188_s12, %s13_s12  }
   0x2   : > { %p137_p1 = scmp.lt.s32.totalorder %s1166_s12, 3 }
   0x4   : > { %p138_p2 = pnand %p1043_p0, %p137_p1 }
   0x5   : > { %p161_p3 = scmp.lt.s32.totalorder (!%p138_p2), %s1039_s13, 1 }
   0x6   : > { %141 = sbr.rel (%p138_p2) target bundleno = 230 (0xe6), region = 32 }
   0xb   : > { %v181_v0 = vld [vmem:[%s1297_s1] sm:$0xf]  ;;  %vm189_vm0 = vcmask 1043456   ;;  %v272_v1 = vld [vmem:[%s1297_s1 + $0x4] sm:$0xf]  ;;  %s1301_s13 = smov (!%p161_p3, %s1039_s13), 1 }
   0xc   : > { %1107 = vmatprep.subr.msk.mxu0 %vm189_vm0, %v181_v0  ;;  %1112 = vmatprep.subr.msk.mxu1 %vm189_vm0, %v272_v1  ;;  %v361_v2 = vld [vmem:[%s1297_s1 + $0x8] sm:$0xf]  ;;  %v450_v3 = vld [vmem:[%s1297_s1 + $0xc] sm:$0xf]  ;;  %s1078_s22 = sshll.u32 %s1301_s13, 5  ;;  %vm182_vm1 = vcmask 31744  }
   0xd   : > { %1108 = vmatpush3.msk.msra.mxu0 %vm189_vm0, %v181_v0  ;;  %1113 = vmatpush3.msk.msra.mxu1 %vm189_vm0, %v272_v1  ;;  %s1220_s25 = scalar_lea.vmem %s1296_s0, %s1078_s22  ;;  %v539_v10 = vld [vmem:[%s1297_s1 + $0x10] sm:$0xf]  ;;  %v628_v11 = vld [vmem:[%s1297_s1 + $0x14] sm:$0xf]  ;;  %v717_v16 = vld [vmem:[%s1297_s1 + $0x18] sm:$0xf] }
   0xe   : > { %1117 = vmatprep.subr.msk.mxu0 %vm189_vm0, %v361_v2  ;;  %1122 = vmatprep.subr.msk.mxu1 %vm189_vm0, %v450_v3  ;;  %v179_v4 = vld [vmem:[%s1220_s25] sm:$0xff]  ;;  %v180_v6 = vld [vmem:[%s1220_s25 + $0x8] sm:$0xff]  ;;  %v806_v17 = vld [vmem:[%s1297_s1 + $0x1c] sm:$0xf]  ;;  %s1079_s11 = sshll.u32 %s1301_s13, 4 }
   0xf   : > { %v270_v5 = vld [vmem:[%s1220_s25 + $0x1] sm:$0xff]  ;;  %1109 = vmatprep.mubr.msk.f32.mxu0 %vm182_vm1, %v179_v4  ;;  %v271_v7 = vld [vmem:[%s1220_s25 + $0x9] sm:$0xff]  ;;  %v716_v22 = vld [vmem:[%s1220_s25 + $0x12] sm:$0xff]  ;;  %s170_s16 = scalar_lea.vmem %s1299_s3, %s1079_s11 }
  0x10   : > { %1114 = vmatprep.mubr.msk.f32.mxu1 %vm182_vm1, %v270_v5  ;;  %v359_v8 = vld [vmem:[%s1220_s25 + $0x2] sm:$0xff]  ;;  %1110 = vmatmul.mubr.msk.f32.vlgmr.msra.gmra.mxu0 %vm182_vm1, %v180_v6  ;;  %v360_v12 = vld [vmem:[%s1220_s25 + $0xa] sm:$0xff]  ;;  %v805_v23 = vld [vmem:[%s1220_s25 + $0x13] sm:$0xff] }
  0x11   : > { %v448_v9 = vld [vmem:[%s1220_s25 + $0x5] sm:$0xff]  ;;  %1115 = vmatmul.mubr.msk.f32.vlgmr.msra.gmra.mxu1 %vm182_vm1, %v271_v7  ;;  %1118 = vmatpush3.msk.msra.mxu0 %vm189_vm0, %v361_v2  ;;  %v449_v13 = vld [vmem:[%s1220_s25 + $0xd] sm:$0xff]  ;;  %v895_v21 = vld [vmem:[%s1297_s1 + $0x20] sm:$0xf] }
  0x12   : > { %1123 = vmatpush3.msk.msra.mxu1 %vm189_vm0, %v450_v3  ;;  %1119 = vmatprep.mubr.msk.f32.mxu0 %vm182_vm1, %v359_v8  ;;  %v537_v14 = vld [vmem:[%s1220_s25 + $0x6] sm:$0xff]  ;;  %v538_v18 = vld [vmem:[%s1220_s25 + $0xe] sm:$0xff]  ;;  %v1048_v26 = vld [vmem:[%s1298_s2] ss:$0 sm:$0xff] }
  0x13   : > { %1124 = vmatprep.mubr.msk.f32.mxu1 %vm182_vm1, %v448_v9  ;;  %1127 = vmatprep.subr.msk.mxu0 %vm189_vm0, %v539_v10  ;;  %v626_v15 = vld [vmem:[%s1220_s25 + $0x7] sm:$0xff]  ;;  %v627_v19 = vld [vmem:[%s1220_s25 + $0xf] sm:$0xff] }
  0x14   : > { %1132 = vmatprep.subr.msk.mxu1 %vm189_vm0, %v628_v11  ;;  %1120 = vmatmul.mubr.msk.f32.vlgmr.msra.gmra.mxu0 %vm182_vm1, %v360_v12  ;;  %v804_v20 = vld [vmem:[%s1220_s25 + $0xb] sm:$0xff]  ;;  %v894_v25 = vld [vmem:[%s1220_s25 + $0x14] sm:$0xff] }
  0x15   : > { %1125 = vmatmul.mubr.msk.f32.vlgmr.msra.gmra.mxu1 %vm182_vm1, %v449_v13  ;;  %1128 = vmatpush3.msk.msra.mxu0 %vm189_vm0, %v539_v10  ;;  %v893_v24 = vld [vmem:[%s1220_s25 + $0xc] sm:$0xff] }
  0x16   : > { %1133 = vmatpush3.msk.msra.mxu1 %vm189_vm0, %v628_v11  ;;  %1129 = vmatprep.mubr.msk.f32.mxu0 %vm182_vm1, %v537_v14 }
  0x17   : > { %1134 = vmatprep.mubr.msk.f32.mxu1 %vm182_vm1, %v626_v15  ;;  %1137 = vmatprep.subr.msk.mxu0 %vm189_vm0, %v717_v16 }
  0x18   : > { %1142 = vmatprep.subr.msk.mxu1 %vm189_vm0, %v806_v17  ;;  %1130 = vmatmul.mubr.msk.f32.vlgmr.msra.gmra.mxu0 %vm182_vm1, %v538_v18 }
  0x19   : > { %1135 = vmatmul.mubr.msk.f32.vlgmr.msra.gmra.mxu1 %vm182_vm1, %v627_v19  ;;  %1138 = vmatpush3.msk.msra.mxu0 %vm189_vm0, %v717_v16 }
  0x1a   : > { %1143 = vmatpush3.msk.msra.mxu1 %vm189_vm0, %v806_v17  ;;  %1139 = vmatprep.mubr.msk.f32.mxu0 %vm182_vm1, %v360_v12 }
  0x1b   : > { %1144 = vmatprep.mubr.msk.f32.mxu1 %vm182_vm1, %v804_v20  ;;  %1147 = vmatprep.subr.msk.mxu0 %vm189_vm0, %v895_v21 }
  0x1c   : > { %1140 = vmatmul.mubr.msk.f32.vlgmr.msra.gmra.mxu0 %vm182_vm1, %v716_v22 }
  0x1d   : > { %1145 = vmatmul.mubr.msk.f32.vlgmr.msra.gmra.mxu1 %vm182_vm1, %v805_v23  ;;  %1148 = vmatpush3.msk.msra.mxu0 %vm189_vm0, %v895_v21 }
  0x1e   : > { %1149 = vmatprep.mubr.msk.f32.mxu0 %vm182_vm1, %v893_v24 }
  0x20   : > { %1150 = vmatmul.mubr.msk.f32.vlgmr.msra.gmra.mxu0 %vm182_vm1, %v894_v25 }
  0xd0   : > { %v1111_v27 = vpop.f32.mrf.mxu0 }
  0xd1   : > { %v1116_v28 = vpop.f32.mrf.mxu1  ;;  %v269_v29 = vadd.f32 %v1111_v27, %v1048_v26 }
  0xd2   : > { %v259_v30 = vpop.f32.mrf.mxu0 }
  0xd3   : > { %v348_v31 = vpop.f32.mrf.mxu1  ;;  %v358_v32 = vadd.f32 %v1116_v28, %v269_v29  ;;  %v268_v33 = vadd.f32 %v1048_v26, %v259_v30 }
  0xd4   : > { %v1121_v34 = vpop.f32.mrf.mxu0 }
  0xd5   : > { %v1126_v35 = vpop.f32.mrf.mxu1  ;;  %v357_v36 = vadd.f32 %v348_v31, %v268_v33  ;;  %v447_v37 = vadd.f32 %v1121_v34, %v358_v32 }
  0xd6   : > { %v437_v38 = vpop.f32.mrf.mxu0 }
  0xd7   : > { %v526_v39 = vpop.f32.mrf.mxu1  ;;  %v536_v40 = vadd.f32 %v1126_v35, %v447_v37  ;;  %v446_v41 = vadd.f32 %v437_v38, %v357_v36 }
  0xd8   : > { %v1131_v42 = vpop.f32.mrf.mxu0 }
  0xd9   : > { %v1136_v43 = vpop.f32.mrf.mxu1  ;;  %v535_v44 = vadd.f32 %v526_v39, %v446_v41  ;;  %v625_v45 = vadd.f32 %v1131_v42, %v536_v40 }
  0xda   : > { %v615_v46 = vpop.f32.mrf.mxu0 }
  0xdb   : > { %v704_v47 = vpop.f32.mrf.mxu1  ;;  %v714_v48 = vadd.f32 %v1136_v43, %v625_v45  ;;  %v624_v49 = vadd.f32 %v615_v46, %v535_v44 }
  0xdc   : > { %v1141_v50 = vpop.f32.mrf.mxu0 }
  0xdd   : > { %v1146_v51 = vpop.f32.mrf.mxu1  ;;  %v713_v52 = vadd.f32 %v704_v47, %v624_v49  ;;  %v803_v53 = vadd.f32 %v1141_v50, %v714_v48 }
  0xde   : > { %v793_v54 = vpop.f32.mrf.mxu0 }
  0xdf   : > { %v892_v55 = vadd.f32 %v1146_v51, %v803_v53  ;;  %v802_v56 = vadd.f32 %v793_v54, %v713_v52  ;;  %v882_v57 = vpop.f32.mrf.mxu1 }
  0xe0   : > { %v1151_v58 = vpop.f32.mrf.mxu0 }
  0xe1   : > { %v891_v59 = vadd.f32 %v882_v57, %v802_v56  ;;  %v981_v60 = vadd.f32 %v1151_v58, %v892_v55 }
  0xe2   : > { %v971_v61 = vpop.f32.mrf.mxu0 }
  0xe3   : > { %983 = vst.msk [vmem:[%s170_s16 + $0x8] sm:$0xff] %vm182_vm1, %v981_v60  ;;  %v980_v62 = vadd.f32 %v971_v61, %v891_v59 }
  0xe5   : > { %982 = vst.msk [vmem:[%s170_s16] sm:$0xff] %vm182_vm1, %v980_v62 }
  0xe6 PF: > { %s13_s12 = sadd.s32 1, %s1166_s12  }
  0xe7   : > { %p10_p4 = scmp.ge.s32.totalorder %s13_s12, 4  }
  0xe9   :  { %12 = sbr.rel (!%p10_p4) target bundleno = 1 (0x1), region = 62 }

// kernel: esa_forward.11
= control target key start
LH: loop header
LB: loop body
LE: loop exit
PB: predicated region body
PF: predicated region fallthrough
CT: control target
= control target key end

     0   :  { %s4467_s27 = smov 0   ;;  %s4469_s28 = smov 0   ;;  %s5299_s0 = inlined_call_operand.vmem [shape: f32[1024,9], index: 0, kind: input, shape index: {}]   ;;  %s5300_s1 = inlined_call_operand.vmem [shape: f32[2,9,4], index: 1, kind: input, shape index: {}]   ;;  %s5301_s2 = inlined_call_operand.vmem [shape: bf16[2,1024,4], index: 2, kind: input, shape index: {}]   ;;  %s5302_s3 = inlined_call_operand.vmem [shape: f32[2,1024,16], index: 3, kind: input, shape index: {}]   ;;  %s5303_s4 = inlined_call_operand.vmem [shape: f32[4,4], index: 4, kind: input, shape index: {}]   ;;  %s5304_s5 = inlined_call_operand.vmem [shape: f32[1,4], index: 5, kind: input, shape index: {}]   ;;  %s5305_s6 = inlined_call_operand.vmem [shape: f32[4,16], index: 6, kind: input, shape index: {}]   ;;  %s5306_s7 = inlined_call_operand.vmem [shape: f32[1,16], index: 7, kind: input, shape index: {}]   ;;  %s5307_s8 = inlined_call_operand.vmem [shape: f32[2,1024,16], index: 8, kind: output, shape index: {}]  }
   0x1   :  { %s4471_s29 = smov 0   ;;  %s4473_s30 = smov 0  }
   0x2   :  { %s4475_s9 = smov 0  }
   0x3 LB: > { %s27_s10 = sadd.s32 1, %s4412_s29  ;;  %s30_s11 = sadd.s32 1, %s4416_s30  ;;  %s4420_s9 = sphi %s4475_s9, %s18_s9   ;;  %s4416_s30 = sphi %s4473_s30, %s5311_s30   ;;  %s4412_s29 = sphi %s4471_s29, %s5310_s29   ;;  %s4408_s28 = sphi %s4469_s28, %s5309_s28   ;;  %s4404_s27 = sphi %s4467_s27, %s5308_s27  }
   0x4   : > { %p28_p0 = scmp.ge.s32.totalorder %s27_s10, 2  ;;  %p3154_p1 = scmp.ge.s32.totalorder %s4420_s9, 1 }
   0x5   : > { %p321_p2 = scmp.lt.s32.totalorder %s4420_s9, 5 }
   0x6   : > { %s5313_s10 = smov (%p28_p0, %s27_s10), 0  ;;  %s5315_s11 = smov (!%p28_p0, %s30_s11), %s4416_s30 }
   0x7   : > { %p322_p3 = pnand %p3154_p1, %p321_p2  ;;  %p32_p4 = scmp.ge.s32.totalorder %s5315_s11, 2 }
   0x8   : > { %s3155_s14 = sshll.u32 (!%p322_p3), %s4404_s27, 6  ;;  %p388_p5 = scmp.lt.s32.totalorder (!%p322_p3), %s4408_s28, 1 }
   0x9   : > { %s5317_s11 = smov (%p32_p4, %s5315_s11), 0  ;;  %325 = sbr.rel (%p322_p3) target bundleno = 649 (0x289), region = 52 }
   0xa   : > { %p383_p6 = scmp.lt.s32.totalorder (!%p322_p3), %s3155_s14, 127 }
   0xe   : > { %v617_v0 = vld [vmem:[%s5303_s4] sm:$0xf]  ;;  %vm818_vm0 = vcmask 1043456   ;;  %s5319_s28 = smov (!%p388_p5, %s4408_s28), 1  ;;  %s5321_s14 = smov (!%p383_p6, %s3155_s14), 127  ;;  %vm1400_vm1 = vcmask 1040384  }
   0xf   : > { %4083 = vmatprep.subr.msk.mxu1 %vm818_vm0, %v617_v0  ;;  %3787 = vmatprep.subr.msk.mxu0 %vm818_vm0, %v617_v0  ;;  %s3160_s15 = sshll.u32 %s5319_s28, 7  ;;  %s3431_s17 = sshll.u32 %s5319_s28, 4  ;;  %vm625_vm2 = vcmask 31744   ;;  %vm1207_vm3 = vcmask 72704   ;;  %vm2953_vm4 = vcmask 130048  }
  0x10   : > { %4084 = vmatpush3.msk.msra.mxu1 %vm818_vm0, %v617_v0  ;;  %3788 = vmatpush3.msk.msra.mxu0 %vm818_vm0, %v617_v0  ;;  %s4507_s16 = sadd.s32 %s3160_s15, %s5321_s14  ;;  %s392_s24 = scalar_lea.vmem %s5300_s1, %s3431_s17 }
  0x11   : > { %s3161_s18 = sshll.u32 %s4507_s16, 2  ;;  %v488_v5 = vld [vmem:[%s392_s24 + $0x8] sm:$0x1]  ;;  %v487_v8 = vld [vmem:[%s392_s24] sm:$0xff]  ;;  %s3156_s25 = sshll.u32 %s5321_s14, 3 }
  0x12   : > { %s4513_s21 = scalar_lea.vmem %s5301_s2, %s3161_s18  ;;  %3885 = vmatprep.subr.msk.mxu1 %vm1400_vm1, %v488_v5  ;;  %s4607_s28 = scalar_lea.vmem %s5299_s0, %s3156_s25 }
  0x13   : > { %v3575_v1 = vld [vmem:[%s4513_s21 + $0x80] sm:$0xff]   ;;  %v3576_v2 = vld [vmem:[%s4513_s21 + $0x88] sm:$0xff]   ;;  %v3577_v7 = vld [vmem:[%s4513_s21 + $0x90] sm:$0xff]   ;;  %s3164_s19 = sshll.u32 %s4507_s16, 3 }
  0x14   : > { %v3498_v3 = vunpack.c.l.bf16 %v3575_v1  ;;  %v3499_v4 = vunpack.c.h.bf16 %v3575_v1  ;;  %v3502_v6 = vunpack.c.l.bf16 %v3576_v2  ;;  %v3503_v9 = vunpack.c.h.bf16 %v3576_v2  ;;  %v3433_v11 = vld [vmem:[%s4513_s21] sm:$0xff]   ;;  %v3578_v12 = vld [vmem:[%s4513_s21 + $0x98] sm:$0xff]   ;;  %v3560_v13 = vld [vmem:[%s4513_s21 + $0x8] sm:$0xff]   ;;  %s5030_s22 = scalar_lea.vmem %s5302_s3, %s3164_s19  ;;  %s5041_s25 = scalar_lea.vmem %s5307_s8, %s3164_s19 }
  0x15   : > { %v3506_v10 = vunpack.c.l.bf16 %v3577_v7  ;;  %v3507_v14 = vunpack.c.h.bf16 %v3577_v7  ;;  %v3434_v15 = vunpack.c.l.bf16 %v3433_v11  ;;  %v3435_v16 = vunpack.c.h.bf16 %v3433_v11  ;;  %v3561_v19 = vld [vmem:[%s4513_s21 + $0x10] sm:$0xff]   ;;  %v3579_v20 = vld [vmem:[%s4513_s21 + $0xa0] sm:$0xff]   ;;  %v3562_v25 = vld [vmem:[%s4513_s21 + $0x18] sm:$0xff]  }
  0x16   : > { %3837 = vmatprep.mubr.msk.f32.mxu1 %vm625_vm2, %v3498_v3  ;;  %v3510_v17 = vunpack.c.l.bf16 %v3578_v12  ;;  %v3438_v18 = vunpack.c.l.bf16 %v3560_v13  ;;  %v3439_v21 = vunpack.c.h.bf16 %v3560_v13  ;;  %v3511_v22 = vunpack.c.h.bf16 %v3578_v12  ;;  %v3580_v26 = vld [vmem:[%s4513_s21 + $0xa8] sm:$0xff]   ;;  %v3563_v31 = vld [vmem:[%s4513_s21 + $0x20] sm:$0xff]   ;;  %v3581_v32 = vld [vmem:[%s4513_s21 + $0xb0] sm:$0xff]  }
  0x17   : > { %3838 = vmatmul.mubr.msk.f32.vlgmr.msra.gmra.mxu1 %vm625_vm2, %v3499_v4  ;;  %3789 = vmatprep.mubr.msk.f32.mxu0 %vm625_vm2, %v3434_v15  ;;  %v3442_v23 = vunpack.c.l.bf16 %v3561_v19  ;;  %v3514_v24 = vunpack.c.l.bf16 %v3579_v20  ;;  %v3443_v27 = vunpack.c.h.bf16 %v3561_v19  ;;  %v3515_v28 = vunpack.c.h.bf16 %v3579_v20  ;;  %v3564_v37 = vld [vmem:[%s4513_s21 + $0x28] sm:$0xff]   ;;  %v3582_v38 = vld [vmem:[%s4513_s21 + $0xb8] sm:$0xff]   ;;  %v3565_v43 = vld [vmem:[%s4513_s21 + $0x30] sm:$0xff]  }
  0x18   : > { %3886 = vmatpush3.msk.msra.mxu1 %vm1400_vm1, %v488_v5  ;;  %3840 = vmatprep.mubr.msk.f32.mxu1 %vm625_vm2, %v3502_v6  ;;  %v3446_v29 = vunpack.c.l.bf16 %v3562_v25  ;;  %v3518_v30 = vunpack.c.l.bf16 %v3580_v26  ;;  %v3447_v33 = vunpack.c.h.bf16 %v3562_v25  ;;  %v3519_v34 = vunpack.c.h.bf16 %v3580_v26  ;;  %v3583_v44 = vld [vmem:[%s4513_s21 + $0xc0] sm:$0xff]   ;;  %v3566_v49 = vld [vmem:[%s4513_s21 + $0x38] sm:$0xff]   ;;  %v3584_v50 = vld [vmem:[%s4513_s21 + $0xc8] sm:$0xff]  }
  0x19   : > { %3887 = vmatprep.subr.mxu1 %v487_v8  ;;  %3790 = vmatmul.mubr.msk.f32.vlgmr.msra.gmra.mxu0 %vm625_vm2, %v3435_v16  ;;  %v3450_v35 = vunpack.c.l.bf16 %v3563_v31  ;;  %v3522_v36 = vunpack.c.l.bf16 %v3581_v32  ;;  %v3451_v39 = vunpack.c.h.bf16 %v3563_v31  ;;  %v3523_v40 = vunpack.c.h.bf16 %v3581_v32  ;;  %v3567_v55 = vld [vmem:[%s4513_s21 + $0x40] sm:$0xff]   ;;  %v3585_v56 = vld [vmem:[%s4513_s21 + $0xd0] sm:$0xff]   ;;  %v3568_v61 = vld [vmem:[%s4513_s21 + $0x48] sm:$0xff]  }
  0x1a   : > { %3888 = vmatpush3.msra.mxu1 %v487_v8  ;;  %3792 = vmatprep.mubr.msk.f32.mxu0 %vm625_vm2, %v3438_v18  ;;  %v3454_v41 = vunpack.c.l.bf16 %v3564_v37  ;;  %v3526_v42 = vunpack.c.l.bf16 %v3582_v38  ;;  %v3455_v45 = vunpack.c.h.bf16 %v3564_v37  ;;  %v3527_v46 = vunpack.c.h.bf16 %v3582_v38  ;;  %v3586_v62 = vld [vmem:[%s4513_s21 + $0xd8] sm:$0xff]   ;;  %v3569_v3 = vld [vmem:[%s4513_s21 + $0x50] sm:$0xff]   ;;  %v3587_v4 = vld [vmem:[%s4513_s21 + $0xe0] sm:$0xff]  }
  0x1b   : > { %3841 = vmatmul.mubr.msk.f32.gmra.mxu1 %vm625_vm2, %v3503_v9  ;;  %v3458_v47 = vunpack.c.l.bf16 %v3565_v43  ;;  %v3530_v48 = vunpack.c.l.bf16 %v3583_v44  ;;  %v3459_v51 = vunpack.c.h.bf16 %v3565_v43  ;;  %v3531_v52 = vunpack.c.h.bf16 %v3583_v44  ;;  %v3570_v9 = vld [vmem:[%s4513_s21 + $0x58] sm:$0xff]   ;;  %v3571_v15 = vld [vmem:[%s4513_s21 + $0x60] sm:$0xff]   ;;  %v3589_v16 = vld [vmem:[%s4513_s21 + $0xf0] sm:$0xff]  }
  0x1c   : > { %3843 = vmatprep.mubr.msk.f32.mxu1 %vm625_vm2, %v3506_v10  ;;  %v3462_v53 = vunpack.c.l.bf16 %v3566_v49  ;;  %v3534_v54 = vunpack.c.l.bf16 %v3584_v50  ;;  %v3463_v57 = vunpack.c.h.bf16 %v3566_v49  ;;  %v3535_v58 = vunpack.c.h.bf16 %v3584_v50  ;;  %v3588_v10 = vld [vmem:[%s4513_s21 + $0xe8] sm:$0xff]   ;;  %v3574_v31 = vld [vmem:[%s4513_s21 + $0x78] sm:$0xff]   ;;  %v423_v32 = vld [vmem:[%s4607_s28] sm:$0xff] }
  0x1d   : > { %3793 = vmatmul.mubr.msk.f32.gmra.mxu0 %vm625_vm2, %v3439_v21  ;;  %v3466_v59 = vunpack.c.l.bf16 %v3567_v55  ;;  %v3538_v60 = vunpack.c.l.bf16 %v3585_v56  ;;  %v3467_v63 = vunpack.c.h.bf16 %v3567_v55  ;;  %v3539_v0 = vunpack.c.h.bf16 %v3585_v56  ;;  %v3572_v21 = vld [vmem:[%s4513_s21 + $0x68] sm:$0xff]   ;;  %v426_v38 = vld [vmem:[%s4607_s28 + $0x18] sm:$0xff]  ;;  %v431_v44 = vld [vmem:[%s4607_s28 + $0x40] sm:$0xff] }
  0x1e   : > { %3795 = vmatprep.mubr.msk.f32.mxu0 %vm625_vm2, %v3442_v23  ;;  %v3470_v1 = vunpack.c.l.bf16 %v3568_v61  ;;  %v3542_v2 = vunpack.c.l.bf16 %v3586_v62  ;;  %v3471_v5 = vunpack.c.h.bf16 %v3568_v61  ;;  %v3543_v6 = vunpack.c.h.bf16 %v3586_v62  ;;  %v430_v43 = vld [vmem:[%s4607_s28 + $0x38] sm:$0xff]  ;;  %v436_v49 = vld [vmem:[%s4607_s28 + $0x68] sm:$0xff]  ;;  %v437_v50 = vld [vmem:[%s4607_s28 + $0x70] sm:$0xff] }
  0x1f   : > { %3844 = vmatmul.mubr.msk.f32.gmra.mxu1 %vm625_vm2, %v3507_v14  ;;  %v3474_v7 = vunpack.c.l.bf16 %v3569_v3  ;;  %v3546_v8 = vunpack.c.l.bf16 %v3587_v4  ;;  %v3475_v11 = vunpack.c.h.bf16 %v3569_v3  ;;  %v3547_v12 = vunpack.c.h.bf16 %v3587_v4  ;;  %v442_v55 = vld [vmem:[%s4607_s28 + $0x98] sm:$0xff]  ;;  %v443_v56 = vld [vmem:[%s4607_s28 + $0xa0] sm:$0xff]  ;;  %v448_v61 = vld [vmem:[%s4607_s28 + $0xc8] sm:$0xff] }
  0x20   : > { %3846 = vmatprep.mubr.msk.f32.mxu1 %vm625_vm2, %v3510_v17  ;;  %v3478_v13 = vunpack.c.l.bf16 %v3570_v9  ;;  %v3550_v14 = vunpack.c.l.bf16 %v3588_v10  ;;  %v3479_v17 = vunpack.c.h.bf16 %v3570_v9  ;;  %v3551_v18 = vunpack.c.h.bf16 %v3588_v10  ;;  %v449_v62 = vld [vmem:[%s4607_s28 + $0xd0] sm:$0xff]  ;;  %v454_v3 = vld [vmem:[%s4607_s28 + $0xf8] sm:$0xff]  ;;  %v455_v4 = vld [vmem:[%s4607_s28 + $0x100] sm:$0xff] }
  0x21   : > { %3796 = vmatmul.mubr.msk.f32.gmra.mxu0 %vm625_vm2, %v3443_v27  ;;  %v3482_v19 = vunpack.c.l.bf16 %v3571_v15  ;;  %v3554_v20 = vunpack.c.l.bf16 %v3589_v16  ;;  %v3483_v23 = vunpack.c.h.bf16 %v3571_v15  ;;  %v3486_v25 = vunpack.c.l.bf16 %v3572_v21  ;;  %v3573_v27 = vld [vmem:[%s4513_s21 + $0x70] sm:$0xff]   ;;  %v460_v9 = vld [vmem:[%s4607_s28 + $0x128] sm:$0xff]  ;;  %v466_v15 = vld [vmem:[%s4607_s28 + $0x158] sm:$0xff] }
  0x22   : > { %3798 = vmatprep.mubr.msk.f32.mxu0 %vm625_vm2, %v3446_v29  ;;  %v3495_v37 = vunpack.c.h.bf16 %v3574_v31  ;;  %v461_v10 = vld [vmem:[%s4607_s28 + $0x130] sm:$0xff] }
  0x23   : > { %3847 = vmatmul.mubr.msk.f32.gmra.mxu1 %vm625_vm2, %v3511_v22  ;;  %v3590_v22 = vld [vmem:[%s4513_s21 + $0xf8] sm:$0xff]  }
  0x24   : > { %3849 = vmatprep.mubr.msk.f32.mxu1 %vm625_vm2, %v3514_v24  ;;  %v3555_v24 = vunpack.c.h.bf16 %v3589_v16  ;;  %v3558_v26 = vunpack.c.l.bf16 %v3590_v22  ;;  %v3559_v29 = vunpack.c.h.bf16 %v3590_v22  ;;  %v467_v16 = vld [vmem:[%s4607_s28 + $0x160] sm:$0xff]  ;;  %v473_v22 = vld [vmem:[%s4607_s28 + $0x190] sm:$0xff] }
  0x25   : > { %3799 = vmatmul.mubr.msk.f32.gmra.mxu0 %vm625_vm2, %v3447_v33  ;;  %v3491_v33 = vunpack.c.h.bf16 %v3573_v27 }
  0x26   : > { %3801 = vmatprep.mubr.msk.f32.mxu0 %vm625_vm2, %v3450_v35  ;;  %v424_v35 = vld [vmem:[%s4607_s28 + $0x8] sm:$0xff] }
  0x27   : > { %3850 = vmatmul.mubr.msk.f32.gmra.mxu1 %vm625_vm2, %v3515_v28  ;;  %v3487_v28 = vunpack.c.h.bf16 %v3572_v21  ;;  %v472_v21 = vld [vmem:[%s4607_s28 + $0x188] sm:$0xff] }
  0x28   : > { %3852 = vmatprep.mubr.msk.f32.mxu1 %vm625_vm2, %v3518_v30  ;;  %v3490_v30 = vunpack.c.l.bf16 %v3573_v27  ;;  %v478_v27 = vld [vmem:[%s4607_s28 + $0x1b8] sm:$0xff] }
  0x29   : > { %3802 = vmatmul.mubr.msk.f32.gmra.mxu0 %vm625_vm2, %v3451_v39  ;;  %v427_v39 = vld [vmem:[%s4607_s28 + $0x20] sm:$0xff] }
  0x2a   : > { %3804 = vmatprep.mubr.msk.f32.mxu0 %vm625_vm2, %v3454_v41  ;;  %v1789_v41 = vld [vmem:[%s5305_s6] sm:$0xf] }
  0x2b   : > { %3853 = vmatmul.mubr.msk.f32.gmra.mxu1 %vm625_vm2, %v3519_v34  ;;  %v3494_v34 = vunpack.c.l.bf16 %v3574_v31  ;;  %3985 = vmatprep.subr.msk.mxu0 %vm818_vm0, %v1789_v41  ;;  %v482_v31 = vld [vmem:[%s4607_s28 + $0x1d8] sm:$0xff] }
  0x2c   : > { %3855 = vmatprep.mubr.msk.f32.mxu1 %vm625_vm2, %v3522_v36  ;;  %v425_v36 = vld [vmem:[%s4607_s28 + $0x10] sm:$0xff]  ;;  %3986 = vmatpush3.msk.msra.mxu0 %vm818_vm0, %v1789_v41 }
  0x2d   : > { %3805 = vmatmul.mubr.msk.f32.gmra.mxu0 %vm625_vm2, %v3455_v45  ;;  %v432_v45 = vld [vmem:[%s4607_s28 + $0x48] sm:$0xff] }
  0x2e   : > { %3807 = vmatprep.mubr.msk.f32.mxu0 %vm625_vm2, %v3458_v47  ;;  %v434_v47 = vld [vmem:[%s4607_s28 + $0x58] sm:$0xff] }
  0x2f   : > { %3856 = vmatmul.mubr.msk.f32.gmra.mxu1 %vm625_vm2, %v3523_v40  ;;  %v428_v40 = vld [vmem:[%s4607_s28 + $0x28] sm:$0xff] }
  0x30   : > { %3858 = vmatprep.mubr.msk.f32.mxu1 %vm625_vm2, %v3526_v42  ;;  %v429_v42 = vld [vmem:[%s4607_s28 + $0x30] sm:$0xff] }
  0x31   : > { %3808 = vmatmul.mubr.msk.f32.gmra.mxu0 %vm625_vm2, %v3459_v51  ;;  %v438_v51 = vld [vmem:[%s4607_s28 + $0x78] sm:$0xff] }
  0x32   : > { %3810 = vmatprep.mubr.msk.f32.mxu0 %vm625_vm2, %v3462_v53  ;;  %v440_v53 = vld [vmem:[%s4607_s28 + $0x88] sm:$0xff] }
  0x33   : > { %3859 = vmatmul.mubr.msk.f32.gmra.mxu1 %vm625_vm2, %v3527_v46  ;;  %v433_v46 = vld [vmem:[%s4607_s28 + $0x50] sm:$0xff] }
  0x34   : > { %3861 = vmatprep.mubr.msk.f32.mxu1 %vm625_vm2, %v3530_v48  ;;  %v435_v48 = vld [vmem:[%s4607_s28 + $0x60] sm:$0xff] }
  0x35   : > { %3811 = vmatmul.mubr.msk.f32.gmra.mxu0 %vm625_vm2, %v3463_v57  ;;  %v444_v57 = vld [vmem:[%s4607_s28 + $0xa8] sm:$0xff] }
  0x36   : > { %3813 = vmatprep.mubr.msk.f32.mxu0 %vm625_vm2, %v3466_v59  ;;  %v446_v59 = vld [vmem:[%s4607_s28 + $0xb8] sm:$0xff] }
  0x37   : > { %3862 = vmatmul.mubr.msk.f32.gmra.mxu1 %vm625_vm2, %v3531_v52  ;;  %v439_v52 = vld [vmem:[%s4607_s28 + $0x80] sm:$0xff] }
  0x38   : > { %3864 = vmatprep.mubr.msk.f32.mxu1 %vm625_vm2, %v3534_v54  ;;  %v441_v54 = vld [vmem:[%s4607_s28 + $0x90] sm:$0xff] }
  0x39   : > { %3814 = vmatmul.mubr.msk.f32.gmra.mxu0 %vm625_vm2, %v3467_v63  ;;  %v450_v63 = vld [vmem:[%s4607_s28 + $0xd8] sm:$0xff] }
  0x3a   : > { %3816 = vmatprep.mubr.msk.f32.mxu0 %vm625_vm2, %v3470_v1  ;;  %v452_v1 = vld [vmem:[%s4607_s28 + $0xe8] sm:$0xff] }
  0x3b   : > { %3865 = vmatmul.mubr.msk.f32.gmra.mxu1 %vm625_vm2, %v3535_v58  ;;  %v445_v58 = vld [vmem:[%s4607_s28 + $0xb0] sm:$0xff] }
  0x3c   : > { %3867 = vmatprep.mubr.msk.f32.mxu1 %vm625_vm2, %v3538_v60  ;;  %v447_v60 = vld [vmem:[%s4607_s28 + $0xc0] sm:$0xff] }
  0x3d   : > { %3817 = vmatmul.mubr.msk.f32.gmra.mxu0 %vm625_vm2, %v3471_v5  ;;  %v456_v5 = vld [vmem:[%s4607_s28 + $0x108] sm:$0xff] }
  0x3e   : > { %3819 = vmatprep.mubr.msk.f32.mxu0 %vm625_vm2, %v3474_v7  ;;  %v458_v7 = vld [vmem:[%s4607_s28 + $0x118] sm:$0xff] }
  0x3f   : > { %3868 = vmatmul.mubr.msk.f32.gmra.mxu1 %vm625_vm2, %v3539_v0  ;;  %v451_v0 = vld [vmem:[%s4607_s28 + $0xe0] sm:$0xff] }
  0x40   : > { %3870 = vmatprep.mubr.msk.f32.mxu1 %vm625_vm2, %v3542_v2  ;;  %v453_v2 = vld [vmem:[%s4607_s28 + $0xf0] sm:$0xff] }
  0x41   : > { %3820 = vmatmul.mubr.msk.f32.gmra.mxu0 %vm625_vm2, %v3475_v11  ;;  %v462_v11 = vld [vmem:[%s4607_s28 + $0x138] sm:$0xff] }
  0x42   : > { %3822 = vmatprep.mubr.msk.f32.mxu0 %vm625_vm2, %v3478_v13  ;;  %v464_v13 = vld [vmem:[%s4607_s28 + $0x148] sm:$0xff] }
  0x43   : > { %3871 = vmatmul.mubr.msk.f32.gmra.mxu1 %vm625_vm2, %v3543_v6  ;;  %v457_v6 = vld [vmem:[%s4607_s28 + $0x110] sm:$0xff] }
  0x44   : > { %3873 = vmatprep.mubr.msk.f32.mxu1 %vm625_vm2, %v3546_v8  ;;  %v459_v8 = vld [vmem:[%s4607_s28 + $0x120] sm:$0xff] }
  0x45   : > { %3823 = vmatmul.mubr.msk.f32.gmra.mxu0 %vm625_vm2, %v3479_v17  ;;  %v468_v17 = vld [vmem:[%s4607_s28 + $0x168] sm:$0xff] }
  0x46   : > { %3825 = vmatprep.mubr.msk.f32.mxu0 %vm625_vm2, %v3482_v19  ;;  %v470_v19 = vld [vmem:[%s4607_s28 + $0x178] sm:$0xff] }
  0x47   : > { %3874 = vmatmul.mubr.msk.f32.gmra.mxu1 %vm625_vm2, %v3547_v12  ;;  %v463_v12 = vld [vmem:[%s4607_s28 + $0x140] sm:$0xff] }
  0x48   : > { %3876 = vmatprep.mubr.msk.f32.mxu1 %vm625_vm2, %v3550_v14  ;;  %v465_v14 = vld [vmem:[%s4607_s28 + $0x150] sm:$0xff] }
  0x49   : > { %3826 = vmatmul.mubr.msk.f32.gmra.mxu0 %vm625_vm2, %v3483_v23  ;;  %v474_v23 = vld [vmem:[%s4607_s28 + $0x198] sm:$0xff] }
  0x4a   : > { %3828 = vmatprep.mubr.msk.f32.mxu0 %vm625_vm2, %v3486_v25  ;;  %v476_v25 = vld [vmem:[%s4607_s28 + $0x1a8] sm:$0xff] }
  0x4b   : > { %3877 = vmatmul.mubr.msk.f32.gmra.mxu1 %vm625_vm2, %v3551_v18  ;;  %v469_v18 = vld [vmem:[%s4607_s28 + $0x170] sm:$0xff] }
  0x4c   : > { %3879 = vmatprep.mubr.msk.f32.mxu1 %vm625_vm2, %v3554_v20  ;;  %v471_v20 = vld [vmem:[%s4607_s28 + $0x180] sm:$0xff] }
  0x4d   : > { %3829 = vmatmul.mubr.msk.f32.gmra.mxu0 %vm625_vm2, %v3487_v28  ;;  %v479_v28 = vld [vmem:[%s4607_s28 + $0x1c0] sm:$0xff] }
  0x4e   : > { %3831 = vmatprep.mubr.msk.f32.mxu0 %vm625_vm2, %v3490_v30  ;;  %v481_v30 = vld [vmem:[%s4607_s28 + $0x1d0] sm:$0xff] }
  0x4f   : > { %3880 = vmatmul.mubr.msk.f32.gmra.mxu1 %vm625_vm2, %v3555_v24  ;;  %v475_v24 = vld [vmem:[%s4607_s28 + $0x1a0] sm:$0xff] }
  0x50   : > { %3882 = vmatprep.mubr.msk.f32.mxu1 %vm625_vm2, %v3558_v26  ;;  %v477_v26 = vld [vmem:[%s4607_s28 + $0x1b0] sm:$0xff] }
  0x51   : > { %3832 = vmatmul.mubr.msk.f32.gmra.mxu0 %vm625_vm2, %v3491_v33  ;;  %v484_v33 = vld [vmem:[%s4607_s28 + $0x1e8] sm:$0xff] }
  0x52   : > { %3834 = vmatprep.mubr.msk.f32.mxu0 %vm625_vm2, %v3494_v34  ;;  %v485_v34 = vld [vmem:[%s4607_s28 + $0x1f0] sm:$0xff] }
  0x53   : > { %3883 = vmatmul.mubr.msk.f32.gmra.mxu1 %vm625_vm2, %v3559_v29  ;;  %v480_v29 = vld [vmem:[%s4607_s28 + $0x1c8] sm:$0xff] }
  0x54   : > { %3889 = vmatprep.mubr.msk.f32.mxu1 %vm1207_vm3, %v423_v32  ;;  %v483_v32 = vld [vmem:[%s4607_s28 + $0x1e0] sm:$0xff] }
  0x55   : > { %3835 = vmatmul.mubr.msk.f32.gmra.mxu0 %vm625_vm2, %v3495_v37 }
  0x57   : > { %3890 = vmatmul.mubr.msk.f32.vlgmr.msra.gmra.mxu1 %vm1207_vm3, %v424_v35  ;;  %v486_v35 = vld [vmem:[%s4607_s28 + $0x1f8] sm:$0xff] }
  0x58   : > { %3892 = vmatprep.mubr.msk.f32.mxu1 %vm1207_vm3, %v425_v36 }
  0x5b   : > { %3893 = vmatmul.mubr.msk.f32.gmra.mxu1 %vm1207_vm3, %v426_v38 }
  0x5c   : > { %3895 = vmatprep.mubr.msk.f32.mxu1 %vm1207_vm3, %v427_v39 }
  0x5f   : > { %3896 = vmatmul.mubr.msk.f32.gmra.mxu1 %vm1207_vm3, %v428_v40 }
  0x60   : > { %3898 = vmatprep.mubr.msk.f32.mxu1 %vm1207_vm3, %v429_v42 }
  0x63   : > { %3899 = vmatmul.mubr.msk.f32.gmra.mxu1 %vm1207_vm3, %v430_v43 }
  0x64   : > { %3901 = vmatprep.mubr.msk.f32.mxu1 %vm1207_vm3, %v431_v44 }
  0x67   : > { %3902 = vmatmul.mubr.msk.f32.gmra.mxu1 %vm1207_vm3, %v432_v45 }
  0x68   : > { %3904 = vmatprep.mubr.msk.f32.mxu1 %vm1207_vm3, %v433_v46 }
  0x6b   : > { %3905 = vmatmul.mubr.msk.f32.gmra.mxu1 %vm1207_vm3, %v434_v47 }
  0x6c   : > { %3907 = vmatprep.mubr.msk.f32.mxu1 %vm1207_vm3, %v435_v48 }
  0x6f   : > { %3908 = vmatmul.mubr.msk.f32.gmra.mxu1 %vm1207_vm3, %v436_v49 }
  0x70   : > { %3910 = vmatprep.mubr.msk.f32.mxu1 %vm1207_vm3, %v437_v50 }
  0x73   : > { %3911 = vmatmul.mubr.msk.f32.gmra.mxu1 %vm1207_vm3, %v438_v51 }
  0x74   : > { %3913 = vmatprep.mubr.msk.f32.mxu1 %vm1207_vm3, %v439_v52 }
  0x77   : > { %3914 = vmatmul.mubr.msk.f32.gmra.mxu1 %vm1207_vm3, %v440_v53 }
  0x78   : > { %3916 = vmatprep.mubr.msk.f32.mxu1 %vm1207_vm3, %v441_v54 }
  0x7b   : > { %3917 = vmatmul.mubr.msk.f32.gmra.mxu1 %vm1207_vm3, %v442_v55 }
  0x7c   : > { %3919 = vmatprep.mubr.msk.f32.mxu1 %vm1207_vm3, %v443_v56 }
  0x7f   : > { %3920 = vmatmul.mubr.msk.f32.gmra.mxu1 %vm1207_vm3, %v444_v57 }
  0x80   : > { %3922 = vmatprep.mubr.msk.f32.mxu1 %vm1207_vm3, %v445_v58 }
  0x83   : > { %3923 = vmatmul.mubr.msk.f32.gmra.mxu1 %vm1207_vm3, %v446_v59 }
  0x84   : > { %3925 = vmatprep.mubr.msk.f32.mxu1 %vm1207_vm3, %v447_v60 }
  0x87   : > { %3926 = vmatmul.mubr.msk.f32.gmra.mxu1 %vm1207_vm3, %v448_v61 }
  0x88   : > { %3928 = vmatprep.mubr.msk.f32.mxu1 %vm1207_vm3, %v449_v62 }
  0x8b   : > { %3929 = vmatmul.mubr.msk.f32.gmra.mxu1 %vm1207_vm3, %v450_v63 }
  0x8c   : > { %3931 = vmatprep.mubr.msk.f32.mxu1 %vm1207_vm3, %v451_v0 }
  0x8f   : > { %3932 = vmatmul.mubr.msk.f32.gmra.mxu1 %vm1207_vm3, %v452_v1 }
  0x90   : > { %3934 = vmatprep.mubr.msk.f32.mxu1 %vm1207_vm3, %v453_v2 }
  0x93   : > { %3935 = vmatmul.mubr.msk.f32.gmra.mxu1 %vm1207_vm3, %v454_v3 }
  0x94   : > { %3937 = vmatprep.mubr.msk.f32.mxu1 %vm1207_vm3, %v455_v4 }
  0x97   : > { %3938 = vmatmul.mubr.msk.f32.gmra.mxu1 %vm1207_vm3, %v456_v5 }
  0x98   : > { %3940 = vmatprep.mubr.msk.f32.mxu1 %vm1207_vm3, %v457_v6 }
  0x9b   : > { %3941 = vmatmul.mubr.msk.f32.gmra.mxu1 %vm1207_vm3, %v458_v7 }
  0x9c   : > { %3943 = vmatprep.mubr.msk.f32.mxu1 %vm1207_vm3, %v459_v8 }
  0x9f   : > { %3944 = vmatmul.mubr.msk.f32.gmra.mxu1 %vm1207_vm3, %v460_v9 }
  0xa0   : > { %3946 = vmatprep.mubr.msk.f32.mxu1 %vm1207_vm3, %v461_v10 }
  0xa3   : > { %3947 = vmatmul.mubr.msk.f32.gmra.mxu1 %vm1207_vm3, %v462_v11 }
  0xa4   : > { %3949 = vmatprep.mubr.msk.f32.mxu1 %vm1207_vm3, %v463_v12 }
  0xa7   : > { %3950 = vmatmul.mubr.msk.f32.gmra.mxu1 %vm1207_vm3, %v464_v13 }
  0xa8   : > { %3952 = vmatprep.mubr.msk.f32.mxu1 %vm1207_vm3, %v465_v14 }
  0xab   : > { %3953 = vmatmul.mubr.msk.f32.gmra.mxu1 %vm1207_vm3, %v466_v15 }
  0xac   : > { %3955 = vmatprep.mubr.msk.f32.mxu1 %vm1207_vm3, %v467_v16 }
  0xaf   : > { %3956 = vmatmul.mubr.msk.f32.gmra.mxu1 %vm1207_vm3, %v468_v17 }
  0xb0   : > { %3958 = vmatprep.mubr.msk.f32.mxu1 %vm1207_vm3, %v469_v18 }
  0xb3   : > { %3959 = vmatmul.mubr.msk.f32.gmra.mxu1 %vm1207_vm3, %v470_v19 }
  0xb4   : > { %3961 = vmatprep.mubr.msk.f32.mxu1 %vm1207_vm3, %v471_v20 }
  0xb7   : > { %3962 = vmatmul.mubr.msk.f32.gmra.mxu1 %vm1207_vm3, %v472_v21  ;;  %v4830_v21 = vld [vmem:[%s5304_s5] ss:$0 sm:$0xff] }
  0xb8   : > { %3964 = vmatprep.mubr.msk.f32.mxu1 %vm1207_vm3, %v473_v22 }
  0xbb   : > { %3965 = vmatmul.mubr.msk.f32.gmra.mxu1 %vm1207_vm3, %v474_v23 }
  0xbc   : > { %3967 = vmatprep.mubr.msk.f32.mxu1 %vm1207_vm3, %v475_v24 }
  0xbf   : > { %3968 = vmatmul.mubr.msk.f32.gmra.mxu1 %vm1207_vm3, %v476_v25 }
  0xc0   : > { %3970 = vmatprep.mubr.msk.f32.mxu1 %vm1207_vm3, %v477_v26 }
  0xc3   : > { %3971 = vmatmul.mubr.msk.f32.gmra.mxu1 %vm1207_vm3, %v478_v27 }
  0xc4   : > { %3973 = vmatprep.mubr.msk.f32.mxu1 %vm1207_vm3, %v479_v28 }
  0xc7   : > { %3974 = vmatmul.mubr.msk.f32.gmra.mxu1 %vm1207_vm3, %v480_v29 }
  0xc8   : > { %3976 = vmatprep.mubr.msk.f32.mxu1 %vm1207_vm3, %v481_v30 }
  0xcb   : > { %3977 = vmatmul.mubr.msk.f32.gmra.mxu1 %vm1207_vm3, %v482_v31 }
  0xcc   : > { %3979 = vmatprep.mubr.msk.f32.mxu1 %vm1207_vm3, %v483_v32 }
  0xcf   : > { %3980 = vmatmul.mubr.msk.f32.gmra.mxu1 %vm1207_vm3, %v484_v33 }
  0xd0   : > { %3982 = vmatprep.mubr.msk.f32.mxu1 %vm1207_vm3, %v485_v34 }
  0xd3   : > { %3983 = vmatmul.mubr.msk.f32.gmra.mxu1 %vm1207_vm3, %v486_v35 }
  0xd7   : > { %v4753_v36 = vpop.f32.mrf.mxu1 }
  0xd9   : > { %v4755_v37 = vpop.f32.mrf.mxu1  ;;  %v3791_v40 = vpop.f32.mrf.mxu0 }
  0xda   : > { %v894_v22 = vadd.f32 %v3791_v40, %v4830_v21 }
  0xdb   : > { %v4757_v38 = vpop.f32.mrf.mxu1  ;;  %v888_v42 = vpop.f32.mrf.mxu0 }
  0xdc   : > { %v889_v24 = vadd.f32 %v4830_v21, %v888_v42 }
  0xdd   : > { %v4759_v39 = vpop.f32.mrf.mxu1  ;;  %v3794_v44 = vpop.f32.mrf.mxu0 }
  0xde   : > { %v904_v28 = vadd.f32 %v3794_v44, %v4830_v21 }
  0xdf   : > { %v4761_v41 = vpop.f32.mrf.mxu1  ;;  %v898_v46 = vpop.f32.mrf.mxu0 }
  0xe0   : > { %v899_v31 = vadd.f32 %v4830_v21, %v898_v46 }
  0xe1   : > { %v4763_v43 = vpop.f32.mrf.mxu1  ;;  %v3797_v48 = vpop.f32.mrf.mxu0 }
  0xe2   : > { %v914_v35 = vadd.f32 %v3797_v48, %v4830_v21 }
  0xe3   : > { %v4765_v45 = vpop.f32.mrf.mxu1  ;;  %v908_v51 = vpop.f32.mrf.mxu0 }
  0xe5   : > { %v4767_v47 = vpop.f32.mrf.mxu1  ;;  %v3800_v54 = vpop.f32.mrf.mxu0 }
  0xe7   : > { %v4769_v49 = vpop.f32.mrf.mxu1  ;;  %v918_v57 = vpop.f32.mrf.mxu0 }
  0xe9   : > { %v4771_v50 = vpop.f32.mrf.mxu1  ;;  %v3803_v60 = vpop.f32.mrf.mxu0 }
  0xeb   : > { %v4773_v52 = vpop.f32.mrf.mxu1  ;;  %v928_v63 = vpop.f32.mrf.mxu0 }
  0xed   : > { %v4775_v53 = vpop.f32.mrf.mxu1  ;;  %v3806_v2 = vpop.f32.mrf.mxu0 }
  0xef   : > { %v4777_v55 = vpop.f32.mrf.mxu1  ;;  %v938_v5 = vpop.f32.mrf.mxu0 }
  0xf1   : > { %v4779_v56 = vpop.f32.mrf.mxu1  ;;  %v4801_v8 = vpop.f32.mrf.mxu0 }
  0xf3   : > { %v4781_v58 = vpop.f32.mrf.mxu1  ;;  %v4807_v11 = vpop.f32.mrf.mxu0 }
  0xf5   : > { %v4783_v59 = vpop.f32.mrf.mxu1  ;;  %v4813_v14 = vpop.f32.mrf.mxu0 }
  0xf7   : > { %v4785_v61 = vpop.f32.mrf.mxu1  ;;  %v4819_v17 = vpop.f32.mrf.mxu0 }
  0xf9   : > { %v4787_v62 = vpop.f32.mrf.mxu1  ;;  %v4825_v20 = vpop.f32.mrf.mxu0 }
  0xfb   : > { %v4789_v0 = vpop.f32.mrf.mxu1  ;;  %v4834_v26 = vpop.f32.mrf.mxu0 }
  0xfd   : > { %v4791_v1 = vpop.f32.mrf.mxu1  ;;  %v4840_v33 = vpop.f32.mrf.mxu0 }
  0xff   : > { %v4793_v3 = vpop.f32.mrf.mxu1  ;;  %v978_v46 = vpop.f32.mrf.mxu0 }
 0x101   : > { %v4795_v4 = vpop.f32.mrf.mxu1 }
 0x103   : > { %v4797_v6 = vpop.f32.mrf.mxu1 }
 0x105   : > { %v4799_v7 = vpop.f32.mrf.mxu1 }
 0x107   : > { %v4803_v9 = vpop.f32.mrf.mxu1 }
 0x109   : > { %v4805_v10 = vpop.f32.mrf.mxu1 }
 0x10b   : > { %v4809_v12 = vpop.f32.mrf.mxu1 }
 0x10d   : > { %v4811_v13 = vpop.f32.mrf.mxu1 }
 0x10f   : > { %v4815_v15 = vpop.f32.mrf.mxu1 }
 0x111   : > { %v4817_v16 = vpop.f32.mrf.mxu1 }
 0x113   : > { %v4821_v18 = vpop.f32.mrf.mxu1 }
 0x115   : > { %v4823_v19 = vpop.f32.mrf.mxu1 }
 0x117   : > { %v3891_v23 = vpop.f32.mrf.mxu1 }
 0x118   : > { %v1476_v29 = vadd.f32 %v3891_v23, %v894_v22  ;;  %v924_v23 = vadd.f32 %v3800_v54, %v4830_v21 }
 0x119   : > { %v1470_v25 = vpop.f32.mrf.mxu1 }
 0x11a   : > { %v1471_v27 = vadd.f32 %v1470_v25, %v889_v24  ;;  %v909_v24 = vadd.f32 %v4830_v21, %v908_v51 }
 0x11b   : > { %v3894_v30 = vpop.f32.mrf.mxu1 }
 0x11c   : > { %3987 = vmatprep.mubr.msk.f32.mxu0 %vm625_vm2, %v1471_v27  ;;  %v1486_v40 = vadd.f32 %v3894_v30, %v904_v28  ;;  %v3821_v28 = vpop.f32.mrf.mxu0  ;;  %v934_v30 = vadd.f32 %v3803_v60, %v4830_v21 }
 0x11d   : > { %v1480_v32 = vpop.f32.mrf.mxu1  ;;  %3988 = vmatmul.mubr.msk.f32.vlgmr.msra.gmra.mxu0 %vm625_vm2, %v1476_v29  ;;  %v919_v29 = vadd.f32 %v4830_v21, %v918_v57 }
 0x11e   : > { %v1481_v34 = vadd.f32 %v1480_v32, %v899_v31 }
 0x11f   : > { %v3897_v42 = vpop.f32.mrf.mxu1 }
 0x120   : > { %3990 = vmatprep.mubr.msk.f32.mxu0 %vm625_vm2, %v1481_v34  ;;  %v1496_v25 = vadd.f32 %v3897_v42, %v914_v35  ;;  %v929_v34 = vadd.f32 %v4830_v21, %v928_v63  ;;  %v988_v35 = vpop.f32.mrf.mxu0 }
 0x121   : > { %v1490_v44 = vpop.f32.mrf.mxu1  ;;  %3991 = vmatmul.mubr.msk.f32.gmra.mxu0 %vm625_vm2, %v1486_v40  ;;  %v944_v40 = vadd.f32 %v3806_v2, %v4830_v21 }
 0x122   : > { %v1491_v22 = vadd.f32 %v1490_v44, %v909_v24  ;;  %v939_v44 = vadd.f32 %v4830_v21, %v938_v5 }
 0x123   : > { %v3900_v27 = vpop.f32.mrf.mxu1 }
 0x124   : > { %3993 = vmatprep.mubr.msk.f32.mxu0 %vm625_vm2, %v1491_v22  ;;  %v1506_v31 = vadd.f32 %v3900_v27, %v924_v23  ;;  %v3824_v22 = vpop.f32.mrf.mxu0  ;;  %v954_v23 = vadd.f32 %v4801_v8, %v4830_v21  ;;  %v959_v8 = vadd.f32 %v4830_v21, %v4819_v17 }
 0x125   : > { %v1500_v48 = vpop.f32.mrf.mxu1  ;;  %3994 = vmatmul.mubr.msk.f32.gmra.mxu0 %vm625_vm2, %v1496_v25 }
 0x126   : > { %v1501_v51 = vadd.f32 %v1500_v48, %v919_v29  ;;  %v949_v29 = vadd.f32 %v4830_v21, %v4807_v11  ;;  %v998_v5 = vpop.f32.mrf.mxu0 }
 0x127   : > { %v3903_v32 = vpop.f32.mrf.mxu1 }
 0x128   : > { %3996 = vmatprep.mubr.msk.f32.mxu0 %vm625_vm2, %v1501_v51  ;;  %v1516_v42 = vadd.f32 %v3903_v32, %v934_v30  ;;  %v964_v51 = vadd.f32 %v4813_v14, %v4830_v21  ;;  %v3827_v11 = vpop.f32.mrf.mxu0  ;;  %v969_v14 = vadd.f32 %v4830_v21, %v4834_v26 }
 0x129   : > { %v1510_v54 = vpop.f32.mrf.mxu1  ;;  %3997 = vmatmul.mubr.msk.f32.gmra.mxu0 %vm625_vm2, %v1506_v31 }
 0x12a   : > { %v1511_v57 = vadd.f32 %v1510_v54, %v929_v34  ;;  %v974_v54 = vadd.f32 %v4825_v20, %v4830_v21  ;;  %v1008_v17 = vpop.f32.mrf.mxu0 }
 0x12b   : > { %v3906_v24 = vpop.f32.mrf.mxu1 }
 0x12c   : > { %3999 = vmatprep.mubr.msk.f32.mxu0 %vm625_vm2, %v1511_v57  ;;  %v1526_v25 = vadd.f32 %v3906_v24, %v944_v40  ;;  %v3830_v26 = vpop.f32.mrf.mxu0 }
 0x12d   : > { %v1520_v60 = vpop.f32.mrf.mxu1  ;;  %4000 = vmatmul.mubr.msk.f32.gmra.mxu0 %vm625_vm2, %v1516_v42 }
 0x12e   : > { %v1521_v63 = vadd.f32 %v1520_v60, %v939_v44  ;;  %v984_v44 = vadd.f32 %v4840_v33, %v4830_v21 }
 0x12f   : > { %v3909_v27 = vpop.f32.mrf.mxu1 }
 0x130   : > { %4002 = vmatprep.mubr.msk.f32.mxu0 %vm625_vm2, %v1521_v63  ;;  %v1536_v30 = vadd.f32 %v3909_v27, %v954_v23  ;;  %v979_v23 = vadd.f32 %v4830_v21, %v978_v46  ;;  %v994_v27 = vadd.f32 %v3821_v28, %v4830_v21 }
 0x131   : > { %v1530_v2 = vpop.f32.mrf.mxu1  ;;  %4003 = vmatmul.mubr.msk.f32.gmra.mxu0 %vm625_vm2, %v1526_v25 }
 0x132   : > { %v1531_v48 = vadd.f32 %v1530_v2, %v949_v29 }
 0x133   : > { %v3912_v31 = vpop.f32.mrf.mxu1 }
 0x134   : > { %4005 = vmatprep.mubr.msk.f32.mxu0 %vm625_vm2, %v1531_v48  ;;  %v1546_v57 = vadd.f32 %v3912_v31, %v964_v51  ;;  %v989_v48 = vadd.f32 %v4830_v21, %v988_v35  ;;  %v1018_v51 = vpop.f32.mrf.mxu0 }
 0x135   : > { %v1540_v32 = vpop.f32.mrf.mxu1  ;;  %4006 = vmatmul.mubr.msk.f32.gmra.mxu0 %vm625_vm2, %v1536_v30  ;;  %v1004_v30 = vadd.f32 %v3824_v22, %v4830_v21 }
 0x136   : > { %v1541_v34 = vadd.f32 %v1540_v32, %v959_v8  ;;  %v999_v32 = vadd.f32 %v4830_v21, %v998_v5 }
 0x137   : > { %v3915_v40 = vpop.f32.mrf.mxu1 }
 0x138   : > { %4008 = vmatprep.mubr.msk.f32.mxu0 %vm625_vm2, %v1541_v34  ;;  %v1556_v60 = vadd.f32 %v3915_v40, %v974_v54  ;;  %v3833_v34 = vpop.f32.mrf.mxu0  ;;  %v1014_v54 = vadd.f32 %v3827_v11, %v4830_v21 }
 0x139   : > { %v1550_v42 = vpop.f32.mrf.mxu1  ;;  %4009 = vmatmul.mubr.msk.f32.gmra.mxu0 %vm625_vm2, %v1546_v57 }
 0x13a   : > { %v1551_v24 = vadd.f32 %v1550_v42, %v969_v14  ;;  %v1009_v14 = vadd.f32 %v4830_v21, %v1008_v17  ;;  %v1028_v42 = vpop.f32.mrf.mxu0 }
 0x13b   : > { %v3918_v63 = vpop.f32.mrf.mxu1 }
 0x13c   : > { %4011 = vmatprep.mubr.msk.f32.mxu0 %vm625_vm2, %v1551_v24  ;;  %v1566_v29 = vadd.f32 %v3918_v63, %v984_v44  ;;  %v1024_v24 = vadd.f32 %v3830_v26, %v4830_v21  ;;  %v1019_v63 = vadd.f32 %v4830_v21, %v1018_v51 }
 0x13d   : > { %v1560_v20 = vpop.f32.mrf.mxu1  ;;  %4012 = vmatmul.mubr.msk.f32.gmra.mxu0 %vm625_vm2, %v1556_v60 }
 0x13e   : > { %v1561_v25 = vadd.f32 %v1560_v20, %v979_v23  ;;  %v3836_v23 = vpop.f32.mrf.mxu0  ;;  %v1034_v20 = vadd.f32 %v3833_v34, %v4830_v21  ;;  %v1049_v34 = vadd.f32 %v4830_v21, %v4755_v37 }
 0x13f   : > { %v3921_v2 = vpop.f32.mrf.mxu1 }
 0x140   : > { %4014 = vmatprep.mubr.msk.f32.mxu0 %vm625_vm2, %v1561_v25  ;;  %v1576_v31 = vadd.f32 %v3921_v2, %v994_v27  ;;  %v1038_v26 = vpop.f32.mrf.mxu0 }
 0x141   : > { %v1570_v33 = vpop.f32.mrf.mxu1  ;;  %4015 = vmatmul.mubr.msk.f32.gmra.mxu0 %vm625_vm2, %v1566_v29  ;;  %v1029_v29 = vadd.f32 %v4830_v21, %v1028_v42  ;;  %v1064_v42 = vadd.f32 %v4757_v38, %v4830_v21 }
 0x142   : > { %v1571_v46 = vadd.f32 %v1570_v33, %v989_v48  ;;  %v1044_v33 = vadd.f32 %v3836_v23, %v4830_v21  ;;  %v1079_v23 = vadd.f32 %v4830_v21, %v4767_v47 }
 0x143   : > { %v3924_v8 = vpop.f32.mrf.mxu1 }
 0x144   : > { %4017 = vmatprep.mubr.msk.f32.mxu0 %vm625_vm2, %v1571_v46  ;;  %v1586_v57 = vadd.f32 %v3924_v8, %v1004_v30  ;;  %v1039_v30 = vadd.f32 %v4830_v21, %v1038_v26 }
 0x145   : > { %v1580_v28 = vpop.f32.mrf.mxu1  ;;  %4018 = vmatmul.mubr.msk.f32.gmra.mxu0 %vm625_vm2, %v1576_v31 }
 0x146   : > { %v1581_v35 = vadd.f32 %v1580_v28, %v999_v32 }
 0x147   : > { %v3927_v40 = vpop.f32.mrf.mxu1 }
 0x148   : > { %4020 = vmatprep.mubr.msk.f32.mxu0 %vm625_vm2, %v1581_v35  ;;  %v1596_v44 = vadd.f32 %v3927_v40, %v1014_v54  ;;  %v1054_v35 = vadd.f32 %v4753_v36, %v4830_v21 }
 0x149   : > { %v1590_v22 = vpop.f32.mrf.mxu1  ;;  %4021 = vmatmul.mubr.msk.f32.gmra.mxu0 %vm625_vm2, %v1586_v57 }
 0x14a   : > { %v1591_v5 = vadd.f32 %v1590_v22, %v1009_v14  ;;  %v1059_v22 = vadd.f32 %v4830_v21, %v4759_v39 }
 0x14b   : > { %v3930_v60 = vpop.f32.mrf.mxu1 }
 0x14c   : > { %4023 = vmatprep.mubr.msk.f32.mxu0 %vm625_vm2, %v1591_v5  ;;  %v1606_v25 = vadd.f32 %v3930_v60, %v1024_v24  ;;  %v1074_v60 = vadd.f32 %v4761_v41, %v4830_v21 }
 0x14d   : > { %v1600_v11 = vpop.f32.mrf.mxu1  ;;  %4024 = vmatmul.mubr.msk.f32.gmra.mxu0 %vm625_vm2, %v1596_v44  ;;  %v1069_v44 = vadd.f32 %v4830_v21, %v4763_v43 }
 0x14e   : > { %v1601_v17 = vadd.f32 %v1600_v11, %v1019_v63 }
 0x14f   : > { %v3933_v27 = vpop.f32.mrf.mxu1 }
 0x150   : > { %4026 = vmatprep.mubr.msk.f32.mxu0 %vm625_vm2, %v1601_v17  ;;  %v1616_v51 = vadd.f32 %v3933_v27, %v1034_v20  ;;  %v1084_v17 = vadd.f32 %v4765_v45, %v4830_v21  ;;  %v1089_v27 = vadd.f32 %v4830_v21, %v4771_v50 }
 0x151   : > { %v1610_v2 = vpop.f32.mrf.mxu1  ;;  %4027 = vmatmul.mubr.msk.f32.gmra.mxu0 %vm625_vm2, %v1606_v25 }
 0x152   : > { %v1611_v48 = vadd.f32 %v1610_v2, %v1029_v29  ;;  %v1094_v29 = vadd.f32 %v4769_v49, %v4830_v21 }
 0x153   : > { %v3936_v46 = vpop.f32.mrf.mxu1 }
 0x154   : > { %4029 = vmatprep.mubr.msk.f32.mxu0 %vm625_vm2, %v1611_v48  ;;  %v1626_v32 = vadd.f32 %v3936_v46, %v1044_v33  ;;  %v1099_v48 = vadd.f32 %v4830_v21, %v4775_v53  ;;  %v1104_v33 = vadd.f32 %v4773_v52, %v4830_v21 }
 0x155   : > { %v1620_v31 = vpop.f32.mrf.mxu1  ;;  %4030 = vmatmul.mubr.msk.f32.gmra.mxu0 %vm625_vm2, %v1616_v51 }
 0x156   : > { %v1621_v8 = vadd.f32 %v1620_v31, %v1039_v30  ;;  %v1109_v30 = vadd.f32 %v4830_v21, %v4779_v56  ;;  %v1114_v31 = vadd.f32 %v4777_v55, %v4830_v21 }
 0x157   : > { %v3939_v28 = vpop.f32.mrf.mxu1 }
 0x158   : > { %4032 = vmatprep.mubr.msk.f32.mxu0 %vm625_vm2, %v1621_v8  ;;  %v1636_v40 = vadd.f32 %v3939_v28, %v1054_v35  ;;  %v1119_v28 = vadd.f32 %v4830_v21, %v4783_v59 }
 0x159   : > { %v1630_v54 = vpop.f32.mrf.mxu1  ;;  %4033 = vmatmul.mubr.msk.f32.gmra.mxu0 %vm625_vm2, %v1626_v32 }
 0x15a   : > { %v1631_v57 = vadd.f32 %v1630_v54, %v1049_v34  ;;  %v1124_v34 = vadd.f32 %v4781_v58, %v4830_v21 }
 0x15b   : > { %v3942_v14 = vpop.f32.mrf.mxu1 }
 0x15c   : > { %4035 = vmatprep.mubr.msk.f32.mxu0 %vm625_vm2, %v1631_v57  ;;  %v1646_v24 = vadd.f32 %v3942_v14, %v1064_v42  ;;  %v1129_v57 = vadd.f32 %v4830_v21, %v4787_v62  ;;  %v1139_v42 = vadd.f32 %v4830_v21, %v4791_v1 }
 0x15d   : > { %v1640_v37 = vpop.f32.mrf.mxu1  ;;  %4036 = vmatmul.mubr.msk.f32.gmra.mxu0 %vm625_vm2, %v1636_v40  ;;  %v1134_v40 = vadd.f32 %v4785_v61, %v4830_v21 }
 0x15e   : > { %v1641_v5 = vadd.f32 %v1640_v37, %v1059_v22  ;;  %v1144_v37 = vadd.f32 %v4789_v0, %v4830_v21 }
 0x15f   : > { %v3945_v36 = vpop.f32.mrf.mxu1 }
 0x160   : > { %4038 = vmatprep.mubr.msk.f32.mxu0 %vm625_vm2, %v1641_v5  ;;  %v1656_v11 = vadd.f32 %v3945_v36, %v1074_v60  ;;  %v1149_v36 = vadd.f32 %v4830_v21, %v4795_v4 }
 0x161   : > { %v1650_v39 = vpop.f32.mrf.mxu1  ;;  %4039 = vmatmul.mubr.msk.f32.gmra.mxu0 %vm625_vm2, %v1646_v24 }
 0x162   : > { %v1651_v63 = vadd.f32 %v1650_v39, %v1069_v44  ;;  %v1154_v44 = vadd.f32 %v4793_v3, %v4830_v21 }
 0x163   : > { %v3948_v38 = vpop.f32.mrf.mxu1 }
 0x164   : > { %4041 = vmatprep.mubr.msk.f32.mxu0 %vm625_vm2, %v1651_v63  ;;  %v1666_v25 = vadd.f32 %v3948_v38, %v1084_v17  ;;  %v1159_v63 = vadd.f32 %v4830_v21, %v4799_v7  ;;  %v1169_v17 = vadd.f32 %v4830_v21, %v4805_v10 }
 0x165   : > { %v1660_v43 = vpop.f32.mrf.mxu1  ;;  %4042 = vmatmul.mubr.msk.f32.gmra.mxu0 %vm625_vm2, %v1656_v11  ;;  %v1164_v11 = vadd.f32 %v4797_v6, %v4830_v21 }
 0x166   : > { %v1661_v20 = vadd.f32 %v1660_v43, %v1079_v23  ;;  %v1174_v43 = vadd.f32 %v4803_v9, %v4830_v21 }
 0x167   : > { %v3951_v41 = vpop.f32.mrf.mxu1 }
 0x168   : > { %4044 = vmatprep.mubr.msk.f32.mxu0 %vm625_vm2, %v1661_v20  ;;  %v1676_v2 = vadd.f32 %v3951_v41, %v1094_v29  ;;  %v1179_v41 = vadd.f32 %v4830_v21, %v4811_v13 }
 0x169   : > { %v1670_v47 = vpop.f32.mrf.mxu1  ;;  %4045 = vmatmul.mubr.msk.f32.gmra.mxu0 %vm625_vm2, %v1666_v25 }
 0x16a   : > { %v1671_v26 = vadd.f32 %v1670_v47, %v1089_v27  ;;  %v1184_v27 = vadd.f32 %v4809_v12, %v4830_v21 }
 0x16b   : > { %v3954_v45 = vpop.f32.mrf.mxu1 }
 0x16c   : > { %4047 = vmatprep.mubr.msk.f32.mxu0 %vm625_vm2, %v1671_v26  ;;  %v1686_v46 = vadd.f32 %v3954_v45, %v1104_v33  ;;  %v1189_v26 = vadd.f32 %v4830_v21, %v4817_v16  ;;  %v1199_v33 = vadd.f32 %v4830_v21, %v4823_v19 }
 0x16d   : > { %v1680_v50 = vpop.f32.mrf.mxu1  ;;  %4048 = vmatmul.mubr.msk.f32.gmra.mxu0 %vm625_vm2, %v1676_v2  ;;  %v1194_v2 = vadd.f32 %v4815_v15, %v4830_v21  ;;  %v5006_v15 = vld [vmem:[%s5306_s7] ss:$0 sm:$0xff] }
 0x16e   : > { %v1681_v51 = vadd.f32 %v1680_v50, %v1099_v48  ;;  %v1204_v50 = vadd.f32 %v4821_v18, %v4830_v21 }
 0x16f   : > { %v3957_v49 = vpop.f32.mrf.mxu1 }
 0x170   : > { %4050 = vmatprep.mubr.msk.f32.mxu0 %vm625_vm2, %v1681_v51  ;;  %v1696_v32 = vadd.f32 %v3957_v49, %v1114_v31 }
 0x171   : > { %v1690_v53 = vpop.f32.mrf.mxu1  ;;  %4051 = vmatmul.mubr.msk.f32.gmra.mxu0 %vm625_vm2, %v1686_v46 }
 0x172   : > { %v1691_v8 = vadd.f32 %v1690_v53, %v1109_v30 }
 0x173   : > { %v3960_v52 = vpop.f32.mrf.mxu1 }
 0x174   : > { %4053 = vmatprep.mubr.msk.f32.mxu0 %vm625_vm2, %v1691_v8  ;;  %v1706_v54 = vadd.f32 %v3960_v52, %v1124_v34 }
 0x175   : > { %v1700_v56 = vpop.f32.mrf.mxu1  ;;  %4054 = vmatmul.mubr.msk.f32.gmra.mxu0 %vm625_vm2, %v1696_v32 }
 0x176   : > { %v1701_v35 = vadd.f32 %v1700_v56, %v1119_v28 }
 0x177   : > { %v3963_v55 = vpop.f32.mrf.mxu1 }
 0x178   : > { %4056 = vmatprep.mubr.msk.f32.mxu0 %vm625_vm2, %v1701_v35  ;;  %v1716_v22 = vadd.f32 %v3963_v55, %v1134_v40 }
 0x179   : > { %v1710_v59 = vpop.f32.mrf.mxu1  ;;  %4057 = vmatmul.mubr.msk.f32.gmra.mxu0 %vm625_vm2, %v1706_v54 }
 0x17a   : > { %v1711_v14 = vadd.f32 %v1710_v59, %v1129_v57 }
 0x17b   : > { %v3966_v58 = vpop.f32.mrf.mxu1 }
 0x17c   : > { %4059 = vmatprep.mubr.msk.f32.mxu0 %vm625_vm2, %v1711_v14  ;;  %v1726_v24 = vadd.f32 %v3966_v58, %v1144_v37 }
 0x17d   : > { %v1720_v62 = vpop.f32.mrf.mxu1  ;;  %4060 = vmatmul.mubr.msk.f32.gmra.mxu0 %vm625_vm2, %v1716_v22 }
 0x17e   : > { %v1721_v5 = vadd.f32 %v1720_v62, %v1139_v42 }
 0x17f   : > { %v3969_v61 = vpop.f32.mrf.mxu1 }
 0x180   : > { %4062 = vmatprep.mubr.msk.f32.mxu0 %vm625_vm2, %v1721_v5  ;;  %v1736_v39 = vadd.f32 %v3969_v61, %v1154_v44 }
 0x181   : > { %v1730_v1 = vpop.f32.mrf.mxu1  ;;  %4063 = vmatmul.mubr.msk.f32.gmra.mxu0 %vm625_vm2, %v1726_v24 }
 0x182   : > { %v1731_v60 = vadd.f32 %v1730_v1, %v1149_v36 }
 0x183   : > { %v3972_v0 = vpop.f32.mrf.mxu1 }
 0x184   : > { %4065 = vmatprep.mubr.msk.f32.mxu0 %vm625_vm2, %v1731_v60  ;;  %v1746_v23 = vadd.f32 %v3972_v0, %v1164_v11 }
 0x185   : > { %v1740_v4 = vpop.f32.mrf.mxu1  ;;  %4066 = vmatmul.mubr.msk.f32.gmra.mxu0 %vm625_vm2, %v1736_v39 }
 0x186   : > { %v1741_v38 = vadd.f32 %v1740_v4, %v1159_v63 }
 0x187   : > { %v3975_v3 = vpop.f32.mrf.mxu1 }
 0x188   : > { %4068 = vmatprep.mubr.msk.f32.mxu0 %vm625_vm2, %v1741_v38  ;;  %v1756_v25 = vadd.f32 %v3975_v3, %v1174_v43 }
 0x189   : > { %v1750_v7 = vpop.f32.mrf.mxu1  ;;  %4069 = vmatmul.mubr.msk.f32.gmra.mxu0 %vm625_vm2, %v1746_v23 }
 0x18a   : > { %v1751_v20 = vadd.f32 %v1750_v7, %v1169_v17 }
 0x18b   : > { %v3978_v6 = vpop.f32.mrf.mxu1 }
 0x18c   : > { %4071 = vmatprep.mubr.msk.f32.mxu0 %vm625_vm2, %v1751_v20  ;;  %v1766_v47 = vadd.f32 %v3978_v6, %v1184_v27 }
 0x18d   : > { %v1760_v10 = vpop.f32.mrf.mxu1  ;;  %4072 = vmatmul.mubr.msk.f32.gmra.mxu0 %vm625_vm2, %v1756_v25 }
 0x18e   : > { %v1761_v29 = vadd.f32 %v1760_v10, %v1179_v41 }
 0x18f   : > { %v3981_v9 = vpop.f32.mrf.mxu1 }
 0x190   : > { %4074 = vmatprep.mubr.msk.f32.mxu0 %vm625_vm2, %v1761_v29  ;;  %v1776_v48 = vadd.f32 %v3981_v9, %v1194_v2 }
 0x191   : > { %v1770_v13 = vpop.f32.mrf.mxu1  ;;  %4075 = vmatmul.mubr.msk.f32.gmra.mxu0 %vm625_vm2, %v1766_v47 }
 0x192   : > { %v1771_v45 = vadd.f32 %v1770_v13, %v1189_v26 }
 0x193   : > { %v3984_v12 = vpop.f32.mrf.mxu1 }
 0x194   : > { %4077 = vmatprep.mubr.msk.f32.mxu0 %vm625_vm2, %v1771_v45  ;;  %v1786_v46 = vadd.f32 %v3984_v12, %v1204_v50 }
 0x195   : > { %v1780_v16 = vpop.f32.mrf.mxu1  ;;  %4078 = vmatmul.mubr.msk.f32.gmra.mxu0 %vm625_vm2, %v1776_v48 }
 0x196   : > { %v1781_v51 = vadd.f32 %v1780_v16, %v1199_v33 }
 0x198   : > { %4080 = vmatprep.mubr.msk.f32.mxu0 %vm625_vm2, %v1781_v51 }
 0x199   : > { %4081 = vmatmul.mubr.msk.f32.gmra.mxu0 %vm625_vm2, %v1786_v46 }
 0x1dd   : > { %v3989_v19 = vpop.f32.mrf.mxu0 }
 0x1de   : > { %v2064_v49 = vadd.f32 %v3989_v19, %v5006_v15 }
 0x1df   : > { %v2058_v30 = vpop.f32.mrf.mxu0 }
 0x1e0   : > { %v3366_v31 = vclamps-f32 %v2064_v49, 30.0  ;;  %v2059_v18 = vadd.f32 %v5006_v15, %v2058_v30 }
 0x1e1   : > { %v3992_v21 = vpop.f32.mrf.mxu0 }
 0x1e2   : > { %v2506_v53 = vsub.f32 0.0, %v3366_v31  ;;  %v3365_v8 = vclamps-f32 %v2059_v18, 30.0  ;;  %v2074_v32 = vadd.f32 %v3992_v21, %v5006_v15 }
 0x1e3   : > { %v2068_v52 = vpop.f32.mrf.mxu0 }
 0x1e4   : > { %v2571_v28 = vmul.f32 1.442695, %v2506_v53  ;;  %v2505_v34 = vsub.f32 0.0, %v3365_v8  ;;  %v3368_v56 = vclamps-f32 %v2074_v32, 30.0  ;;  %v2069_v35 = vadd.f32 %v5006_v15, %v2068_v52 }
 0x1e5   : > { %v3995_v54 = vpop.f32.mrf.mxu0 }
 0x1e6   : > { %4125 = vpow2.f32 %v2571_v28  ;;  %v2569_v55 = vmul.f32 1.442695, %v2505_v34  ;;  %v2508_v57 = vsub.f32 0.0, %v3368_v56  ;;  %v3367_v40 = vclamps-f32 %v2069_v35, 30.0 }
 0x1e7   : > { %v2084_v59 = vadd.f32 %v3995_v54, %v5006_v15  ;;  %v2078_v14 = vpop.f32.mrf.mxu0 }
 0x1e8   : > { %4127 = vpow2.f32 %v2569_v55  ;;  %v2575_v22 = vmul.f32 1.442695, %v2508_v57  ;;  %v2507_v58 = vsub.f32 0.0, %v3367_v40  ;;  %v2079_v42 = vadd.f32 %v5006_v15, %v2078_v14 }
 0x1e9   : > { %v3370_v37 = vclamps-f32 %v2084_v59, 30.0  ;;  %v3998_v62 = vpop.f32.mrf.mxu0 }
 0x1ea   : > { %4129 = vpow2.f32 %v2575_v22  ;;  %v2573_v5 = vmul.f32 1.442695, %v2507_v58  ;;  %v3369_v24 = vclamps-f32 %v2079_v42, 30.0  ;;  %v2094_v61 = vadd.f32 %v3998_v62, %v5006_v15 }
 0x1eb   : > { %v2510_v36 = vsub.f32 0.0, %v3370_v37  ;;  %v2088_v44 = vpop.f32.mrf.mxu0 }
 0x1ec   : > { %4131 = vpow2.f32 %v2573_v5  ;;  %v2509_v1 = vsub.f32 0.0, %v3369_v24  ;;  %v3372_v60 = vclamps-f32 %v2094_v61, 30.0  ;;  %v2089_v39 = vadd.f32 %v5006_v15, %v2088_v44 }
 0x1ed   : > { %v2579_v0 = vmul.f32 1.442695, %v2510_v36  ;;  %v4001_v63 = vpop.f32.mrf.mxu0 }
 0x1ee   : > { %v2577_v11 = vmul.f32 1.442695, %v2509_v1  ;;  %v2512_v4 = vsub.f32 0.0, %v3372_v60  ;;  %v3371_v38 = vclamps-f32 %v2089_v39, 30.0  ;;  %v2104_v23 = vadd.f32 %v4001_v63, %v5006_v15  ;;  %v2826_v63 = vld [vmem:[%s5030_s22 + $0x8] sm:$0xff] }
 0x1ef   : > { %4133 = vpow2.f32 %v2579_v0  ;;  %v2098_v3 = vpop.f32.mrf.mxu0 }
 0x1f0   : > { %4135 = vpow2.f32 %v2577_v11  ;;  %v2583_v17 = vmul.f32 1.442695, %v2512_v4  ;;  %v2511_v43 = vsub.f32 0.0, %v3371_v38  ;;  %v3374_v7 = vclamps-f32 %v2104_v23, 30.0 }
 0x1f1   : > { %v2099_v20 = vadd.f32 %v5006_v15, %v2098_v3  ;;  %v4004_v25 = vpop.f32.mrf.mxu0 }
 0x1f2   : > { %4137 = vpow2.f32 %v2583_v17  ;;  %v2581_v6 = vmul.f32 1.442695, %v2511_v43  ;;  %v2514_v41 = vsub.f32 0.0, %v3374_v7  ;;  %v2114_v27 = vadd.f32 %v4004_v25, %v5006_v15  ;;  %v2825_v7 = vld [vmem:[%s5030_s22] sm:$0xff] }
 0x1f3   : > { %v4126_v10 = vpop.eup %4125  ;;  %v3373_v29 = vclamps-f32 %v2099_v20, 30.0  ;;  %v2108_v47 = vpop.f32.mrf.mxu0 }
 0x1f4   : > { %v2698_v9 = vadd.f32 1.0, %v4126_v10  ;;  %4139 = vpow2.f32 %v2581_v6  ;;  %v2587_v26 = vmul.f32 1.442695, %v2514_v41  ;;  %v3376_v2 = vclamps-f32 %v2114_v27, 30.0 }
 0x1f5   : > { %v4128_v13 = vpop.eup %4127  ;;  %v2513_v45 = vsub.f32 0.0, %v3373_v29  ;;  %v2109_v48 = vadd.f32 %v5006_v15, %v2108_v47  ;;  %v4007_v12 = vpop.f32.mrf.mxu0 }
 0x1f6   : > { %4141 = vrcp.f32 %v2698_v9  ;;  %v2697_v33 = vadd.f32 1.0, %v4128_v13  ;;  %v2516_v50 = vsub.f32 0.0, %v3376_v2  ;;  %v2124_v16 = vadd.f32 %v4007_v12, %v5006_v15  ;;  %v2828_v9 = vld [vmem:[%s5030_s22 + $0x18] sm:$0xff] }
 0x1f7   : > { %v4130_v51 = vpop.eup %4129  ;;  %4143 = vpow2.f32 %v2587_v26  ;;  %v2585_v46 = vmul.f32 1.442695, %v2513_v45  ;;  %v3375_v19 = vclamps-f32 %v2109_v48, 30.0  ;;  %v2118_v49 = vpop.f32.mrf.mxu0 }
 0x1f8   : > { %4145 = vrcp.f32 %v2697_v33  ;;  %v2700_v30 = vadd.f32 1.0, %v4130_v51  ;;  %v2591_v31 = vmul.f32 1.442695, %v2516_v50  ;;  %v3378_v18 = vclamps-f32 %v2124_v16, 30.0 }
 0x1f9   : > { %v4132_v21 = vpop.eup %4131  ;;  %4147 = vpow2.f32 %v2585_v46  ;;  %v2515_v53 = vsub.f32 0.0, %v3375_v19  ;;  %v2119_v8 = vadd.f32 %v5006_v15, %v2118_v49  ;;  %v4010_v32 = vpop.f32.mrf.mxu0  ;;  %v2827_v46 = vld [vmem:[%s5030_s22 + $0x10] sm:$0xff] }
 0x1fa   : > { %4149 = vrcp.f32 %v2700_v30  ;;  %v2699_v52 = vadd.f32 1.0, %v4132_v21  ;;  %v2518_v28 = vsub.f32 0.0, %v3378_v18  ;;  %v2134_v34 = vadd.f32 %v4010_v32, %v5006_v15 }
 0x1fb   : > { %4151 = vpow2.f32 %v2591_v31  ;;  %v2589_v56 = vmul.f32 1.442695, %v2515_v53  ;;  %v3377_v35 = vclamps-f32 %v2119_v8, 30.0  ;;  %v2128_v54 = vpop.f32.mrf.mxu0 }
 0x1fc   : > { %v4134_v55 = vpop.eup %4133  ;;  %4153 = vrcp.f32 %v2699_v52  ;;  %v2595_v57 = vmul.f32 1.442695, %v2518_v28  ;;  %v3380_v40 = vclamps-f32 %v2134_v34, 30.0  ;;  %v2129_v59 = vadd.f32 %v5006_v15, %v2128_v54  ;;  %v2830_v54 = vld [vmem:[%s5030_s22 + $0x28] sm:$0xff] }
 0x1fd   : > { %v4136_v14 = vpop.eup %4135  ;;  %v2702_v22 = vadd.f32 1.0, %v4134_v55  ;;  %4155 = vpow2.f32 %v2589_v56  ;;  %v2517_v58 = vsub.f32 0.0, %v3377_v35  ;;  %v4013_v42 = vpop.f32.mrf.mxu0 }
 0x1fe   : > { %v2701_v37 = vadd.f32 1.0, %v4136_v14  ;;  %4157 = vpow2.f32 %v2595_v57  ;;  %v2520_v62 = vsub.f32 0.0, %v3380_v40  ;;  %v3379_v5 = vclamps-f32 %v2129_v59, 30.0  ;;  %v2829_v59 = vld [vmem:[%s5030_s22 + $0x20] sm:$0xff] }
 0x1ff   : > { %v4138_v24 = vpop.eup %4137  ;;  %4159 = vrcp.f32 %v2702_v22  ;;  %v2593_v61 = vmul.f32 1.442695, %v2517_v58  ;;  %v2144_v36 = vadd.f32 %v4013_v42, %v5006_v15  ;;  %v2138_v44 = vpop.f32.mrf.mxu0 }
 0x200   : > { %4161 = vrcp.f32 %v2701_v37  ;;  %v2704_v1 = vadd.f32 1.0, %v4138_v24  ;;  %v2599_v60 = vmul.f32 1.442695, %v2520_v62  ;;  %v2519_v39 = vsub.f32 0.0, %v3379_v5 }
 0x201   : > { %v4140_v0 = vpop.eup %4139  ;;  %4163 = vpow2.f32 %v2593_v61  ;;  %v3382_v11 = vclamps-f32 %v2144_v36, 30.0  ;;  %v2139_v4 = vadd.f32 %v5006_v15, %v2138_v44  ;;  %v4016_v38 = vpop.f32.mrf.mxu0  ;;  %v2832_v44 = vld [vmem:[%s5030_s22 + $0x38] sm:$0xff] }
 0x202   : > { %4165 = vrcp.f32 %v2704_v1  ;;  %v2703_v23 = vadd.f32 1.0, %v4140_v0  ;;  %v2597_v3 = vmul.f32 1.442695, %v2519_v39  ;;  %v2154_v17 = vadd.f32 %v4016_v38, %v5006_v15 }
 0x203   : > { %v4142_v43 = vpop.eup %4141  ;;  %4167 = vpow2.f32 %v2599_v60  ;;  %v2522_v20 = vsub.f32 0.0, %v3382_v11  ;;  %v3381_v25 = vclamps-f32 %v2139_v4, 30.0  ;;  %v2148_v6 = vpop.f32.mrf.mxu0 }
 0x204   : > { %v4144_v41 = vpop.eup %4143  ;;  %v2890_v27 = vmul.f32 %v4142_v43, %v2826_v63  ;;  %4169 = vrcp.f32 %v2703_v23  ;;  %v3384_v10 = vclamps-f32 %v2154_v17, 30.0  ;;  %v2149_v29 = vadd.f32 %v5006_v15, %v2148_v6  ;;  %v2831_v23 = vld [vmem:[%s5030_s22 + $0x30] sm:$0xff] }
 0x205   : > { %v4146_v47 = vpop.eup %4145  ;;  %v2706_v26 = vadd.f32 1.0, %v4144_v41  ;;  %4171 = vpow2.f32 %v2597_v3  ;;  %v2603_v2 = vmul.f32 1.442695, %v2522_v20  ;;  %v2521_v13 = vsub.f32 0.0, %v3381_v25  ;;  %v4019_v45 = vpop.f32.mrf.mxu0 }
 0x206   : > { %v4148_v48 = vpop.eup %4147  ;;  %2955 = vst.msk [vmem:[%s5041_s25 + $0x8] sm:$0xff] %vm2953_vm4, %v2890_v27  ;;  %v2889_v12 = vmul.f32 %v4146_v47, %v2825_v7  ;;  %v2524_v33 = vsub.f32 0.0, %v3384_v10  ;;  %v3383_v50 = vclamps-f32 %v2149_v29, 30.0  ;;  %v2164_v16 = vadd.f32 %v4019_v45, %v5006_v15 }
 0x207   : > { %v4150_v51 = vpop.eup %4149  ;;  %4173 = vrcp.f32 %v2706_v26  ;;  %v2705_v19 = vadd.f32 1.0, %v4148_v48  ;;  %v2601_v49 = vmul.f32 1.442695, %v2521_v13  ;;  %v2158_v30 = vpop.f32.mrf.mxu0  ;;  %v2834_v13 = vld [vmem:[%s5030_s22 + $0x48] sm:$0xff] }
 0x208   : > { %v4152_v31 = vpop.eup %4151  ;;  %2954 = vst.msk [vmem:[%s5041_s25] sm:$0xff] %vm2953_vm4, %v2889_v12  ;;  %v2892_v18 = vmul.f32 %v4150_v51, %v2828_v9  ;;  %4175 = vpow2.f32 %v2603_v2  ;;  %v2607_v21 = vmul.f32 1.442695, %v2524_v33  ;;  %v2523_v53 = vsub.f32 0.0, %v3383_v50 }
 0x209   : > { %v4154_v8 = vpop.eup %4153  ;;  %4177 = vrcp.f32 %v2705_v19  ;;  %v2708_v32 = vadd.f32 1.0, %v4152_v31  ;;  %v3386_v52 = vclamps-f32 %v2164_v16, 30.0  ;;  %v2159_v28 = vadd.f32 %v5006_v15, %v2158_v30  ;;  %v4022_v34 = vpop.f32.mrf.mxu0 }
 0x20a   : > { %v4156_v56 = vpop.eup %4155  ;;  %2957 = vst.msk [vmem:[%s5041_s25 + $0x18] sm:$0xff] %vm2953_vm4, %v2892_v18  ;;  %v2891_v35 = vmul.f32 %v4154_v8, %v2827_v46  ;;  %4179 = vpow2.f32 %v2601_v49  ;;  %v2605_v55 = vmul.f32 1.442695, %v2523_v53  ;;  %v2174_v57 = vadd.f32 %v4022_v34, %v5006_v15  ;;  %v2833_v46 = vld [vmem:[%s5030_s22 + $0x40] sm:$0xff] }
 0x20b   : > { %v4158_v40 = vpop.eup %4157  ;;  %4181 = vrcp.f32 %v2708_v32  ;;  %v2707_v14 = vadd.f32 1.0, %v4156_v56  ;;  %v2526_v22 = vsub.f32 0.0, %v3386_v52  ;;  %v3385_v58 = vclamps-f32 %v2159_v28, 30.0  ;;  %v2168_v42 = vpop.f32.mrf.mxu0  ;;  %v2836_v32 = vld [vmem:[%s5030_s22 + $0x58] sm:$0xff] }
 0x20c   : > { %v4160_v37 = vpop.eup %4159  ;;  %2956 = vst.msk [vmem:[%s5041_s25 + $0x10] sm:$0xff] %vm2953_vm4, %v2891_v35  ;;  %v2710_v62 = vadd.f32 1.0, %v4158_v40  ;;  %4183 = vpow2.f32 %v2607_v21  ;;  %v3388_v5 = vclamps-f32 %v2174_v57, 30.0  ;;  %v2169_v24 = vadd.f32 %v5006_v15, %v2168_v42 }
 0x20d   : > { %v4162_v61 = vpop.eup %4161  ;;  %v2894_v36 = vmul.f32 %v4160_v37, %v2830_v54  ;;  %4185 = vrcp.f32 %v2707_v14  ;;  %v2611_v1 = vmul.f32 1.442695, %v2526_v22  ;;  %v2525_v60 = vsub.f32 0.0, %v3385_v58  ;;  %v4025_v39 = vpop.f32.mrf.mxu0 }
 0x20e   : > { %v4164_v0 = vpop.eup %4163  ;;  %v2893_v63 = vmul.f32 %v4162_v61, %v2829_v59  ;;  %4187 = vrcp.f32 %v2710_v62  ;;  %v2528_v11 = vsub.f32 0.0, %v3388_v5  ;;  %v3387_v4 = vclamps-f32 %v2169_v24, 30.0  ;;  %v2835_v59 = vld [vmem:[%s5030_s22 + $0x50] sm:$0xff]  ;;  %v2838_v62 = vld [vmem:[%s5030_s22 + $0x68] sm:$0xff] }
 0x20f   : > { %v4166_v38 = vpop.eup %4165  ;;  %2959 = vst.msk [vmem:[%s5041_s25 + $0x28] sm:$0xff] %vm2953_vm4, %v2894_v36  ;;  %v2709_v3 = vadd.f32 1.0, %v4164_v0  ;;  %4189 = vpow2.f32 %v2605_v55  ;;  %v2609_v17 = vmul.f32 1.442695, %v2525_v60  ;;  %v2184_v43 = vadd.f32 %v4025_v39, %v5006_v15  ;;  %v2178_v7 = vpop.f32.mrf.mxu0 }
 0x210   : > { %v4168_v20 = vpop.eup %4167  ;;  %2958 = vst.msk [vmem:[%s5041_s25 + $0x20] sm:$0xff] %vm2953_vm4, %v2893_v63  ;;  %v2896_v25 = vmul.f32 %v4166_v38, %v2832_v44  ;;  %4191 = vpow2.f32 %v2611_v1  ;;  %v2615_v6 = vmul.f32 1.442695, %v2528_v11  ;;  %v2527_v41 = vsub.f32 0.0, %v3387_v4 }
 0x211   : > { %v4170_v27 = vpop.eup %4169  ;;  %4193 = vrcp.f32 %v2709_v3  ;;  %v2712_v10 = vadd.f32 1.0, %v4168_v20  ;;  %v3390_v29 = vclamps-f32 %v2184_v43, 30.0  ;;  %v2179_v47 = vadd.f32 %v5006_v15, %v2178_v7  ;;  %v4028_v9 = vpop.f32.mrf.mxu0  ;;  %v2837_v3 = vld [vmem:[%s5030_s22 + $0x60] sm:$0xff] }
 0x212   : > { %v4172_v26 = vpop.eup %4171  ;;  %2961 = vst.msk [vmem:[%s5041_s25 + $0x38] sm:$0xff] %vm2953_vm4, %v2896_v25  ;;  %v2895_v2 = vmul.f32 %v4170_v27, %v2831_v23  ;;  %4195 = vpow2.f32 %v2609_v17  ;;  %v2613_v45 = vmul.f32 1.442695, %v2527_v41  ;;  %v2194_v48 = vadd.f32 %v4028_v9, %v5006_v15 }
 0x213   : > { %4197 = vrcp.f32 %v2712_v10  ;;  %v2711_v12 = vadd.f32 1.0, %v4172_v26  ;;  %v2530_v33 = vsub.f32 0.0, %v3390_v29  ;;  %v3389_v50 = vclamps-f32 %v2179_v47, 30.0  ;;  %v2188_v16 = vpop.f32.mrf.mxu0  ;;  %v2840_v10 = vld [vmem:[%s5030_s22 + $0x78] sm:$0xff] }
 0x214   : > { %v4174_v51 = vpop.eup %4173  ;;  %2960 = vst.msk [vmem:[%s5041_s25 + $0x30] sm:$0xff] %vm2953_vm4, %v2895_v2  ;;  %4199 = vpow2.f32 %v2615_v6  ;;  %v3392_v19 = vclamps-f32 %v2194_v48, 30.0  ;;  %v2189_v49 = vadd.f32 %v5006_v15, %v2188_v16 }
 0x215   : > { %v4176_v30 = vpop.eup %4175  ;;  %v2898_v31 = vmul.f32 %v4174_v51, %v2834_v13  ;;  %4201 = vrcp.f32 %v2711_v12  ;;  %v2619_v18 = vmul.f32 1.442695, %v2530_v33  ;;  %v2529_v21 = vsub.f32 0.0, %v3389_v50  ;;  %v4031_v53 = vpop.f32.mrf.mxu0  ;;  %v2839_v33 = vld [vmem:[%s5030_s22 + $0x70] sm:$0xff] }
 0x216   : > { %v4178_v8 = vpop.eup %4177  ;;  %v2714_v52 = vadd.f32 1.0, %v4176_v30  ;;  %4203 = vpow2.f32 %v2613_v45  ;;  %v2532_v28 = vsub.f32 0.0, %v3392_v19  ;;  %v3391_v34 = vclamps-f32 %v2189_v49, 30.0 }
 0x217   : > { %v4180_v56 = vpop.eup %4179  ;;  %2963 = vst.msk [vmem:[%s5041_s25 + $0x48] sm:$0xff] %vm2953_vm4, %v2898_v31  ;;  %v2897_v35 = vmul.f32 %v4178_v8, %v2833_v46  ;;  %4205 = vpow2.f32 %v2619_v18  ;;  %v2617_v54 = vmul.f32 1.442695, %v2529_v21  ;;  %v2204_v55 = vadd.f32 %v4031_v53, %v5006_v15  ;;  %v2198_v57 = vpop.f32.mrf.mxu0 }
 0x218   : > { %v4182_v40 = vpop.eup %4181  ;;  %4207 = vrcp.f32 %v2714_v52  ;;  %v2713_v14 = vadd.f32 1.0, %v4180_v56  ;;  %v2623_v22 = vmul.f32 1.442695, %v2532_v28  ;;  %v2531_v58 = vsub.f32 0.0, %v3391_v34  ;;  %v2842_v28 = vld [vmem:[%s5030_s22 + $0x88] sm:$0xff] }
 0x219   : > { %v4184_v42 = vpop.eup %4183  ;;  %2962 = vst.msk [vmem:[%s5041_s25 + $0x40] sm:$0xff] %vm2953_vm4, %v2897_v35  ;;  %v2900_v37 = vmul.f32 %v4182_v40, %v2836_v32  ;;  %4209 = vpow2.f32 %v2617_v54  ;;  %v3394_v5 = vclamps-f32 %v2204_v55, 30.0  ;;  %v2199_v24 = vadd.f32 %v5006_v15, %v2198_v57  ;;  %v4034_v61 = vpop.f32.mrf.mxu0 }
 0x21a   : > { %v4186_v36 = vpop.eup %4185  ;;  %4211 = vrcp.f32 %v2713_v14  ;;  %v2716_v44 = vadd.f32 1.0, %v4184_v42  ;;  %v2621_v1 = vmul.f32 1.442695, %v2531_v58  ;;  %v2214_v60 = vadd.f32 %v4034_v61, %v5006_v15  ;;  %v2841_v14 = vld [vmem:[%s5030_s22 + $0x80] sm:$0xff] }
 0x21b   : > { %v4188_v39 = vpop.eup %4187  ;;  %2965 = vst.msk [vmem:[%s5041_s25 + $0x58] sm:$0xff] %vm2953_vm4, %v2900_v37  ;;  %v2899_v0 = vmul.f32 %v4186_v36, %v2835_v59  ;;  %4213 = vpow2.f32 %v2623_v22  ;;  %v2534_v63 = vsub.f32 0.0, %v3394_v5  ;;  %v3393_v11 = vclamps-f32 %v2199_v24, 30.0  ;;  %v2208_v4 = vpop.f32.mrf.mxu0 }
 0x21c   : > { %v4190_v38 = vpop.eup %4189  ;;  %v2902_v23 = vmul.f32 %v4188_v39, %v2838_v62  ;;  %4215 = vrcp.f32 %v2716_v44  ;;  %v3396_v17 = vclamps-f32 %v2214_v60, 30.0  ;;  %v2209_v43 = vadd.f32 %v5006_v15, %v2208_v4  ;;  %v2844_v44 = vld [vmem:[%s5030_s22 + $0x98] sm:$0xff] }
 0x21d   : > { %v4192_v7 = vpop.eup %4191  ;;  %2964 = vst.msk [vmem:[%s5041_s25 + $0x50] sm:$0xff] %vm2953_vm4, %v2899_v0  ;;  %v2715_v20 = vadd.f32 1.0, %v4190_v38  ;;  %4217 = vpow2.f32 %v2621_v1  ;;  %v2627_v25 = vmul.f32 1.442695, %v2534_v63  ;;  %v2533_v6 = vsub.f32 0.0, %v3393_v11  ;;  %v4037_v41 = vpop.f32.mrf.mxu0 }
 0x21e   : > { %v4194_v27 = vpop.eup %4193  ;;  %2967 = vst.msk [vmem:[%s5041_s25 + $0x68] sm:$0xff] %vm2953_vm4, %v2902_v23  ;;  %v2718_v29 = vadd.f32 1.0, %v4192_v7  ;;  %v2536_v47 = vsub.f32 0.0, %v3396_v17  ;;  %v3395_v9 = vclamps-f32 %v2209_v43, 30.0  ;;  %v2224_v26 = vadd.f32 %v4037_v41, %v5006_v15 }
 0x21f   : > { %v4196_v2 = vpop.eup %4195  ;;  %v2901_v13 = vmul.f32 %v4194_v27, %v2837_v3  ;;  %4219 = vrcp.f32 %v2715_v20  ;;  %v2625_v45 = vmul.f32 1.442695, %v2533_v6  ;;  %v2218_v48 = vpop.f32.mrf.mxu0  ;;  %v2843_v6 = vld [vmem:[%s5030_s22 + $0x90] sm:$0xff] }
 0x220   : > { %v4198_v12 = vpop.eup %4197  ;;  %4221 = vrcp.f32 %v2718_v29  ;;  %v2717_v50 = vadd.f32 1.0, %v4196_v2  ;;  %v2631_v16 = vmul.f32 1.442695, %v2536_v47  ;;  %v2535_v51 = vsub.f32 0.0, %v3395_v9 }
 0x221   : > { %v4200_v46 = vpop.eup %4199  ;;  %2966 = vst.msk [vmem:[%s5041_s25 + $0x60] sm:$0xff] %vm2953_vm4, %v2901_v13  ;;  %v2904_v19 = vmul.f32 %v4198_v12, %v2840_v10  ;;  %4223 = vpow2.f32 %v2627_v25  ;;  %v3398_v49 = vclamps-f32 %v2224_v26, 30.0  ;;  %v2219_v30 = vadd.f32 %v5006_v15, %v2218_v48  ;;  %v4040_v31 = vpop.f32.mrf.mxu0  ;;  %v2846_v10 = vld [vmem:[%s5030_s22 + $0xa8] sm:$0xff] }
 0x222   : > { %v4202_v18 = vpop.eup %4201  ;;  %4225 = vrcp.f32 %v2717_v50  ;;  %v2720_v21 = vadd.f32 1.0, %v4200_v46  ;;  %v2629_v53 = vmul.f32 1.442695, %v2535_v51  ;;  %v2234_v8 = vadd.f32 %v4040_v31, %v5006_v15 }
 0x223   : > { %v4204_v32 = vpop.eup %4203  ;;  %2969 = vst.msk [vmem:[%s5041_s25 + $0x78] sm:$0xff] %vm2953_vm4, %v2904_v19  ;;  %v2903_v52 = vmul.f32 %v4202_v18, %v2839_v33  ;;  %4227 = vpow2.f32 %v2625_v45  ;;  %v2538_v34 = vsub.f32 0.0, %v3398_v49  ;;  %v3397_v56 = vclamps-f32 %v2219_v30, 30.0  ;;  %v2228_v35 = vpop.f32.mrf.mxu0  ;;  %v2845_v33 = vld [vmem:[%s5030_s22 + $0xa0] sm:$0xff]  ;;  %v2848_v18 = vld [vmem:[%s5030_s22 + $0xb8] sm:$0xff] }
 0x224   : > { %v4206_v54 = vpop.eup %4205  ;;  %4229 = vrcp.f32 %v2720_v21  ;;  %v2719_v55 = vadd.f32 1.0, %v4204_v32  ;;  %v3400_v57 = vclamps-f32 %v2234_v8, 30.0  ;;  %v2229_v40 = vadd.f32 %v5006_v15, %v2228_v35 }
 0x225   : > { %v4208_v59 = vpop.eup %4207  ;;  %2968 = vst.msk [vmem:[%s5041_s25 + $0x70] sm:$0xff] %vm2953_vm4, %v2903_v52  ;;  %v2722_v22 = vadd.f32 1.0, %v4206_v54  ;;  %4231 = vpow2.f32 %v2631_v16  ;;  %v2635_v58 = vmul.f32 1.442695, %v2538_v34  ;;  %v2537_v42 = vsub.f32 0.0, %v3397_v56  ;;  %v4043_v37 = vpop.f32.mrf.mxu0  ;;  %v2847_v54 = vld [vmem:[%s5030_s22 + $0xb0] sm:$0xff] }
 0x226   : > { %v4210_v62 = vpop.eup %4209  ;;  %v2906_v5 = vmul.f32 %v4208_v59, %v2842_v28  ;;  %4233 = vrcp.f32 %v2719_v55  ;;  %v2540_v24 = vsub.f32 0.0, %v3400_v57  ;;  %v3399_v61 = vclamps-f32 %v2229_v40, 30.0 }
 0x227   : > { %v4212_v36 = vpop.eup %4211  ;;  %4235 = vrcp.f32 %v2722_v22  ;;  %v2721_v1 = vadd.f32 1.0, %v4210_v62  ;;  %v2633_v60 = vmul.f32 1.442695, %v2537_v42  ;;  %v2244_v39 = vadd.f32 %v4043_v37, %v5006_v15  ;;  %v2238_v0 = vpop.f32.mrf.mxu0 }
 0x228   : > { %v4214_v63 = vpop.eup %4213  ;;  %2971 = vst.msk [vmem:[%s5041_s25 + $0x88] sm:$0xff] %vm2953_vm4, %v2906_v5  ;;  %v2905_v11 = vmul.f32 %v4212_v36, %v2841_v14  ;;  %4237 = vpow2.f32 %v2629_v53  ;;  %v2639_v4 = vmul.f32 1.442695, %v2540_v24  ;;  %v2539_v38 = vsub.f32 0.0, %v3399_v61 }
 0x229   : > { %v4216_v23 = vpop.eup %4215  ;;  %4239 = vrcp.f32 %v2721_v1  ;;  %v2724_v3 = vadd.f32 1.0, %v4214_v63  ;;  %v3402_v17 = vclamps-f32 %v2244_v39, 30.0  ;;  %v2239_v43 = vadd.f32 %v5006_v15, %v2238_v0  ;;  %v4046_v7 = vpop.f32.mrf.mxu0 }
 0x22a   : > { %v4218_v20 = vpop.eup %4217  ;;  %2970 = vst.msk [vmem:[%s5041_s25 + $0x80] sm:$0xff] %vm2953_vm4, %v2905_v11  ;;  %v2908_v25 = vmul.f32 %v4216_v23, %v2844_v44  ;;  %4241 = vpow2.f32 %v2635_v58  ;;  %v2637_v41 = vmul.f32 1.442695, %v2539_v38  ;;  %v2254_v27 = vadd.f32 %v4046_v7, %v5006_v15  ;;  %v2850_v58 = vld [vmem:[%s5030_s22 + $0xc8] sm:$0xff] }
 0x22b   : > { %4243 = vrcp.f32 %v2724_v3  ;;  %v2723_v29 = vadd.f32 1.0, %v4218_v20  ;;  %v2542_v47 = vsub.f32 0.0, %v3402_v17  ;;  %v3401_v9 = vclamps-f32 %v2239_v43, 30.0  ;;  %v2248_v26 = vpop.f32.mrf.mxu0  ;;  %v2852_v17 = vld [vmem:[%s5030_s22 + $0xd8] sm:$0xff] }
 0x22c   : > { %v4220_v2 = vpop.eup %4219  ;;  %2973 = vst.msk [vmem:[%s5041_s25 + $0x98] sm:$0xff] %vm2953_vm4, %v2908_v25  ;;  %4245 = vpow2.f32 %v2633_v60  ;;  %v3404_v13 = vclamps-f32 %v2254_v27, 30.0  ;;  %v2249_v45 = vadd.f32 %v5006_v15, %v2248_v26  ;;  %v2849_v60 = vld [vmem:[%s5030_s22 + $0xc0] sm:$0xff] }
 0x22d   : > { %v4222_v48 = vpop.eup %4221  ;;  %v2907_v12 = vmul.f32 %v4220_v2, %v2843_v6  ;;  %4247 = vrcp.f32 %v2723_v29  ;;  %v2643_v50 = vmul.f32 1.442695, %v2542_v47  ;;  %v2541_v16 = vsub.f32 0.0, %v3401_v9  ;;  %v4049_v51 = vpop.f32.mrf.mxu0  ;;  %v2851_v47 = vld [vmem:[%s5030_s22 + $0xd0] sm:$0xff] }
 0x22e   : > { %v4224_v46 = vpop.eup %4223  ;;  %v2910_v19 = vmul.f32 %v4222_v48, %v2846_v10  ;;  %4249 = vpow2.f32 %v2639_v4  ;;  %v2544_v49 = vsub.f32 0.0, %v3404_v13  ;;  %v3403_v30 = vclamps-f32 %v2249_v45, 30.0 }
 0x22f   : > { %v4226_v31 = vpop.eup %4225  ;;  %2972 = vst.msk [vmem:[%s5041_s25 + $0x90] sm:$0xff] %vm2953_vm4, %v2907_v12  ;;  %v2726_v21 = vadd.f32 1.0, %v4224_v46  ;;  %4251 = vpow2.f32 %v2637_v41  ;;  %v2641_v53 = vmul.f32 1.442695, %v2541_v16  ;;  %v2264_v8 = vadd.f32 %v4049_v51, %v5006_v15  ;;  %v2258_v32 = vpop.f32.mrf.mxu0 }
 0x230   : > { %v4228_v52 = vpop.eup %4227  ;;  %2975 = vst.msk [vmem:[%s5041_s25 + $0xa8] sm:$0xff] %vm2953_vm4, %v2910_v19  ;;  %v2909_v28 = vmul.f32 %v4226_v31, %v2845_v33  ;;  %4253 = vpow2.f32 %v2643_v50  ;;  %v2647_v34 = vmul.f32 1.442695, %v2544_v49  ;;  %v2543_v56 = vsub.f32 0.0, %v3403_v30 }
 0x231   : > { %v4230_v35 = vpop.eup %4229  ;;  %4255 = vrcp.f32 %v2726_v21  ;;  %v2725_v55 = vadd.f32 1.0, %v4228_v52  ;;  %v3406_v57 = vclamps-f32 %v2264_v8, 30.0  ;;  %v2259_v40 = vadd.f32 %v5006_v15, %v2258_v32  ;;  %v4052_v59 = vpop.f32.mrf.mxu0 }
 0x232   : > { %v4232_v14 = vpop.eup %4231  ;;  %2974 = vst.msk [vmem:[%s5041_s25 + $0xa0] sm:$0xff] %vm2953_vm4, %v2909_v28  ;;  %v2912_v22 = vmul.f32 %v4230_v35, %v2848_v18  ;;  %4257 = vpow2.f32 %v2641_v53  ;;  %v2645_v42 = vmul.f32 1.442695, %v2543_v56  ;;  %v2274_v37 = vadd.f32 %v4052_v59, %v5006_v15  ;;  %v2854_v53 = vld [vmem:[%s5030_s22 + $0xe8] sm:$0xff] }
 0x233   : > { %v4234_v62 = vpop.eup %4233  ;;  %4259 = vrcp.f32 %v2725_v55  ;;  %v2728_v5 = vadd.f32 1.0, %v4232_v14  ;;  %v2546_v24 = vsub.f32 0.0, %v3406_v57  ;;  %v3405_v61 = vclamps-f32 %v2259_v40, 30.0  ;;  %v2268_v36 = vpop.f32.mrf.mxu0  ;;  %v2853_v57 = vld [vmem:[%s5030_s22 + $0xe0] sm:$0xff] }
 0x234   : > { %v4236_v44 = vpop.eup %4235  ;;  %2977 = vst.msk [vmem:[%s5041_s25 + $0xb8] sm:$0xff] %vm2953_vm4, %v2912_v22  ;;  %v2911_v1 = vmul.f32 %v4234_v62, %v2847_v54  ;;  %4261 = vpow2.f32 %v2647_v34  ;;  %v3408_v39 = vclamps-f32 %v2274_v37, 30.0  ;;  %v2269_v0 = vadd.f32 %v5006_v15, %v2268_v36 }
 0x235   : > { %v4238_v63 = vpop.eup %4237  ;;  %v2914_v11 = vmul.f32 %v4236_v44, %v2850_v58  ;;  %4263 = vrcp.f32 %v2728_v5  ;;  %v2651_v4 = vmul.f32 1.442695, %v2546_v24  ;;  %v2545_v38 = vsub.f32 0.0, %v3405_v61  ;;  %v4055_v23 = vpop.f32.mrf.mxu0  ;;  %v2856_v24 = vld [vmem:[%s5030_s22 + $0xf8] sm:$0xff] }
 0x236   : > { %v4240_v3 = vpop.eup %4239  ;;  %2976 = vst.msk [vmem:[%s5041_s25 + $0xb0] sm:$0xff] %vm2953_vm4, %v2911_v1  ;;  %v2727_v43 = vadd.f32 1.0, %v4238_v63  ;;  %4265 = vpow2.f32 %v2645_v42  ;;  %v2548_v7 = vsub.f32 0.0, %v3408_v39  ;;  %v3407_v20 = vclamps-f32 %v2269_v0, 30.0  ;;  %v5160_v42 = vld [vmem:[%s5306_s7] ss:$0 sm:$0xff] }
 0x237   : > { %v4242_v25 = vpop.eup %4241  ;;  %2979 = vst.msk [vmem:[%s5041_s25 + $0xc8] sm:$0xff] %vm2953_vm4, %v2914_v11  ;;  %v2913_v6 = vmul.f32 %v4240_v3, %v2849_v60  ;;  %4267 = vpow2.f32 %v2651_v4  ;;  %v2649_v41 = vmul.f32 1.442695, %v2545_v38  ;;  %v2284_v27 = vadd.f32 %v4055_v23, %v5006_v15  ;;  %v2278_v10 = vpop.f32.mrf.mxu0 }
 0x238   : > { %v4244_v29 = vpop.eup %4243  ;;  %4269 = vrcp.f32 %v2727_v43  ;;  %v2730_v9 = vadd.f32 1.0, %v4242_v25  ;;  %v2655_v26 = vmul.f32 1.442695, %v2548_v7  ;;  %v2547_v2 = vsub.f32 0.0, %v3407_v20  ;;  %v2855_v43 = vld [vmem:[%s5030_s22 + $0xf0] sm:$0xff] }
 0x239   : > { %v4246_v13 = vpop.eup %4245  ;;  %2978 = vst.msk [vmem:[%s5041_s25 + $0xc0] sm:$0xff] %vm2953_vm4, %v2913_v6  ;;  %v2916_v45 = vmul.f32 %v4244_v29, %v2852_v17  ;;  %4271 = vpow2.f32 %v2649_v41  ;;  %v3410_v48 = vclamps-f32 %v2284_v27, 30.0  ;;  %v2279_v12 = vadd.f32 %v5006_v15, %v2278_v10  ;;  %v4058_v33 = vpop.f32.mrf.mxu0 }
 0x23a   : > { %v4248_v50 = vpop.eup %4247  ;;  %4273 = vrcp.f32 %v2730_v9  ;;  %v2729_v16 = vadd.f32 1.0, %v4246_v13  ;;  %v2653_v51 = vmul.f32 1.442695, %v2547_v2  ;;  %v2294_v46 = vadd.f32 %v4058_v33, %v5006_v15 }
 0x23b   : > { %v4250_v19 = vpop.eup %4249  ;;  %2981 = vst.msk [vmem:[%s5041_s25 + $0xd8] sm:$0xff] %vm2953_vm4, %v2916_v45  ;;  %v2915_v49 = vmul.f32 %v4248_v50, %v2851_v47  ;;  %4275 = vpow2.f32 %v2655_v26  ;;  %v2550_v30 = vsub.f32 0.0, %v3410_v48  ;;  %v3409_v31 = vclamps-f32 %v2279_v12, 30.0  ;;  %v2288_v18 = vpop.f32.mrf.mxu0  ;;  %v2858_v47 = vld [vmem:[%s5030_s22 + $0x108] sm:$0xff] }
 0x23c   : > { %v4252_v21 = vpop.eup %4251  ;;  %4277 = vrcp.f32 %v2729_v16  ;;  %v2732_v8 = vadd.f32 1.0, %v4250_v19  ;;  %v3412_v32 = vclamps-f32 %v2294_v46, 30.0  ;;  %v2289_v52 = vadd.f32 %v5006_v15, %v2288_v18  ;;  %v2857_v16 = vld [vmem:[%s5030_s22 + $0x100] sm:$0xff] }
 0x23d   : > { %v4254_v28 = vpop.eup %4253  ;;  %2980 = vst.msk [vmem:[%s5041_s25 + $0xd0] sm:$0xff] %vm2953_vm4, %v2915_v49  ;;  %v2731_v34 = vadd.f32 1.0, %v4252_v21  ;;  %4279 = vpow2.f32 %v2653_v51  ;;  %v2659_v56 = vmul.f32 1.442695, %v2550_v30  ;;  %v2549_v35 = vsub.f32 0.0, %v3409_v31  ;;  %v4061_v54 = vpop.f32.mrf.mxu0 }
 0x23e   : > { %v4256_v55 = vpop.eup %4255  ;;  %4281 = vrcp.f32 %v2732_v8  ;;  %v2734_v40 = vadd.f32 1.0, %v4254_v28  ;;  %v2552_v59 = vsub.f32 0.0, %v3412_v32  ;;  %v3411_v14 = vclamps-f32 %v2289_v52, 30.0  ;;  %v2860_v8 = vld [vmem:[%s5030_s22 + $0x118] sm:$0xff] }
 0x23f   : > { %v4258_v22 = vpop.eup %4257  ;;  %v2918_v58 = vmul.f32 %v4256_v55, %v2854_v53  ;;  %4283 = vrcp.f32 %v2731_v34  ;;  %v2657_v15 = vmul.f32 1.442695, %v2549_v35  ;;  %v2304_v37 = vadd.f32 %v5160_v42, %v4061_v54  ;;  %v2298_v62 = vpop.f32.mrf.mxu0  ;;  %v2859_v54 = vld [vmem:[%s5030_s22 + $0x110] sm:$0xff] }
 0x240   : > { %v4260_v5 = vpop.eup %4259  ;;  %4285 = vrcp.f32 %v2734_v40  ;;  %v2733_v61 = vadd.f32 1.0, %v4258_v22  ;;  %v2663_v36 = vmul.f32 1.442695, %v2552_v59  ;;  %v2551_v44 = vsub.f32 0.0, %v3411_v14  ;;  %v2862_v59 = vld [vmem:[%s5030_s22 + $0x128] sm:$0xff] }
 0x241   : > { %v4262_v1 = vpop.eup %4261  ;;  %2983 = vst.msk [vmem:[%s5041_s25 + $0xe8] sm:$0xff] %vm2953_vm4, %v2918_v58  ;;  %v2917_v60 = vmul.f32 %v4260_v5, %v2853_v57  ;;  %4287 = vpow2.f32 %v2659_v56  ;;  %v3414_v39 = vclamps-f32 %v2304_v37, 30.0  ;;  %v2299_v0 = vadd.f32 %v5160_v42, %v2298_v62  ;;  %v4064_v63 = vpop.f32.mrf.mxu0 }
 0x242   : > { %v4264_v11 = vpop.eup %4263  ;;  %4289 = vrcp.f32 %v2733_v61  ;;  %v2736_v4 = vadd.f32 1.0, %v4262_v1  ;;  %v2661_v38 = vmul.f32 1.442695, %v2551_v44  ;;  %v2314_v23 = vadd.f32 %v5160_v42, %v4064_v63  ;;  %v2861_v44 = vld [vmem:[%s5030_s22 + $0x120] sm:$0xff] }
 0x243   : > { %v4266_v3 = vpop.eup %4265  ;;  %2982 = vst.msk [vmem:[%s5041_s25 + $0xe0] sm:$0xff] %vm2953_vm4, %v2917_v60  ;;  %v2920_v17 = vmul.f32 %v4264_v11, %v2856_v24  ;;  %4291 = vpow2.f32 %v2657_v15  ;;  %v2554_v7 = vsub.f32 0.0, %v3414_v39  ;;  %v3413_v20 = vclamps-f32 %v2299_v0, 30.0  ;;  %v2308_v25 = vpop.f32.mrf.mxu0 }
 0x244   : > { %v4268_v6 = vpop.eup %4267  ;;  %4293 = vrcp.f32 %v2736_v4  ;;  %v2735_v41 = vadd.f32 1.0, %v4266_v3  ;;  %v3416_v27 = vclamps-f32 %v2314_v23, 30.0  ;;  %v2309_v10 = vadd.f32 %v5160_v42, %v2308_v25  ;;  %v2864_v23 = vld [vmem:[%s5030_s22 + $0x138] sm:$0xff] }
 0x245   : > { %v4270_v29 = vpop.eup %4269  ;;  %2985 = vst.msk [vmem:[%s5041_s25 + $0xf8] sm:$0xff] %vm2953_vm4, %v2920_v17  ;;  %v2738_v9 = vadd.f32 1.0, %v4268_v6  ;;  %4295 = vpow2.f32 %v2663_v36  ;;  %v2667_v26 = vmul.f32 1.442695, %v2554_v7  ;;  %v2553_v2 = vsub.f32 0.0, %v3413_v20  ;;  %v4067_v13 = vpop.f32.mrf.mxu0 }
 0x246   : > { %v4272_v45 = vpop.eup %4271  ;;  %v2919_v48 = vmul.f32 %v4270_v29, %v2855_v43  ;;  %4297 = vrcp.f32 %v2735_v41  ;;  %v2556_v12 = vsub.f32 0.0, %v3416_v27  ;;  %v3415_v33 = vclamps-f32 %v2309_v10, 30.0  ;;  %v2863_v10 = vld [vmem:[%s5030_s22 + $0x130] sm:$0xff] }
 0x247   : > { %v4274_v50 = vpop.eup %4273  ;;  %4299 = vrcp.f32 %v2738_v9  ;;  %v2737_v51 = vadd.f32 1.0, %v4272_v45  ;;  %v2665_v46 = vmul.f32 1.442695, %v2553_v2  ;;  %v2324_v19 = vadd.f32 %v5160_v42, %v4067_v13  ;;  %v2318_v49 = vpop.f32.mrf.mxu0  ;;  %v2866_v45 = vld [vmem:[%s5030_s22 + $0x148] sm:$0xff] }
 0x248   : > { %v4276_v30 = vpop.eup %4275  ;;  %2984 = vst.msk [vmem:[%s5041_s25 + $0xf0] sm:$0xff] %vm2953_vm4, %v2919_v48  ;;  %v2922_v31 = vmul.f32 %v4274_v50, %v2858_v47  ;;  %4301 = vpow2.f32 %v2661_v38  ;;  %v2671_v18 = vmul.f32 1.442695, %v2556_v12  ;;  %v2555_v21 = vsub.f32 0.0, %v3415_v33 }
 0x249   : > { %v4278_v53 = vpop.eup %4277  ;;  %4303 = vrcp.f32 %v2737_v51  ;;  %v2740_v32 = vadd.f32 1.0, %v4276_v30  ;;  %v3418_v52 = vclamps-f32 %v2324_v19, 30.0  ;;  %v2319_v28 = vadd.f32 %v5160_v42, %v2318_v49  ;;  %v4070_v34 = vpop.f32.mrf.mxu0  ;;  %v2865_v30 = vld [vmem:[%s5030_s22 + $0x140] sm:$0xff] }
 0x24a   : > { %v4280_v56 = vpop.eup %4279  ;;  %2987 = vst.msk [vmem:[%s5041_s25 + $0x108] sm:$0xff] %vm2953_vm4, %v2922_v31  ;;  %v2921_v35 = vmul.f32 %v4278_v53, %v2857_v16  ;;  %4305 = vpow2.f32 %v2667_v26  ;;  %v2669_v55 = vmul.f32 1.442695, %v2555_v21  ;;  %v2334_v57 = vadd.f32 %v5160_v42, %v4070_v34  ;;  %v2868_v34 = vld [vmem:[%s5030_s22 + $0x158] sm:$0xff] }
 0x24b   : > { %v4282_v40 = vpop.eup %4281  ;;  %4307 = vrcp.f32 %v2740_v32  ;;  %v2739_v14 = vadd.f32 1.0, %v4280_v56  ;;  %v2558_v22 = vsub.f32 0.0, %v3418_v52  ;;  %v3417_v58 = vclamps-f32 %v2319_v28, 30.0  ;;  %v2328_v15 = vpop.f32.mrf.mxu0 }
 0x24c   : > { %v4284_v37 = vpop.eup %4283  ;;  %2986 = vst.msk [vmem:[%s5041_s25 + $0x100] sm:$0xff] %vm2953_vm4, %v2921_v35  ;;  %v2924_v62 = vmul.f32 %v4282_v40, %v2860_v8  ;;  %4309 = vpow2.f32 %v2665_v46  ;;  %v3420_v5 = vclamps-f32 %v2334_v57, 30.0  ;;  %v2329_v24 = vadd.f32 %v5160_v42, %v2328_v15 }
 0x24d   : > { %v4286_v61 = vpop.eup %4285  ;;  %v2923_v36 = vmul.f32 %v4284_v37, %v2859_v54  ;;  %4311 = vrcp.f32 %v2739_v14  ;;  %v2675_v1 = vmul.f32 1.442695, %v2558_v22  ;;  %v2557_v60 = vsub.f32 0.0, %v3417_v58  ;;  %v4073_v39 = vpop.f32.mrf.mxu0  ;;  %v2867_v58 = vld [vmem:[%s5030_s22 + $0x150] sm:$0xff] }
 0x24e   : > { %v4288_v0 = vpop.eup %4287  ;;  %2989 = vst.msk [vmem:[%s5041_s25 + $0x118] sm:$0xff] %vm2953_vm4, %v2924_v62  ;;  %v2926_v63 = vmul.f32 %v4286_v61, %v2862_v59  ;;  %4313 = vpow2.f32 %v2671_v18  ;;  %v2560_v11 = vsub.f32 0.0, %v3420_v5  ;;  %v3419_v4 = vclamps-f32 %v2329_v24, 30.0 }
 0x24f   : > { %v4290_v38 = vpop.eup %4289  ;;  %2988 = vst.msk [vmem:[%s5041_s25 + $0x110] sm:$0xff] %vm2953_vm4, %v2923_v36  ;;  %v2742_v3 = vadd.f32 1.0, %v4288_v0  ;;  %4315 = vpow2.f32 %v2669_v55  ;;  %v2673_v17 = vmul.f32 1.442695, %v2557_v60  ;;  %v2344_v43 = vadd.f32 %v5160_v42, %v4073_v39  ;;  %v2338_v7 = vpop.f32.mrf.mxu0 }
 0x250   : > { %v4292_v20 = vpop.eup %4291  ;;  %2991 = vst.msk [vmem:[%s5041_s25 + $0x128] sm:$0xff] %vm2953_vm4, %v2926_v63  ;;  %v2925_v25 = vmul.f32 %v4290_v38, %v2861_v44  ;;  %4317 = vpow2.f32 %v2675_v1  ;;  %v2679_v6 = vmul.f32 1.442695, %v2560_v11  ;;  %v2559_v41 = vsub.f32 0.0, %v3419_v4 }
 0x251   : > { %v4294_v27 = vpop.eup %4293  ;;  %4319 = vrcp.f32 %v2742_v3  ;;  %v2741_v29 = vadd.f32 1.0, %v4292_v20  ;;  %v3422_v47 = vclamps-f32 %v2344_v43, 30.0  ;;  %v2339_v9 = vadd.f32 %v5160_v42, %v2338_v7  ;;  %v4076_v26 = vpop.f32.mrf.mxu0 }
 0x252   : > { %v4296_v2 = vpop.eup %4295  ;;  %2990 = vst.msk [vmem:[%s5041_s25 + $0x120] sm:$0xff] %vm2953_vm4, %v2925_v25  ;;  %v2928_v13 = vmul.f32 %v4294_v27, %v2864_v23  ;;  %4321 = vpow2.f32 %v2673_v17  ;;  %v2677_v48 = vmul.f32 1.442695, %v2559_v41  ;;  %v2354_v12 = vadd.f32 %v5160_v42, %v4076_v26  ;;  %v2870_v17 = vld [vmem:[%s5030_s22 + $0x168] sm:$0xff] }
 0x253   : > { %v4298_v33 = vpop.eup %4297  ;;  %4323 = vrcp.f32 %v2741_v29  ;;  %v2744_v50 = vadd.f32 1.0, %v4296_v2  ;;  %v2562_v16 = vsub.f32 0.0, %v3422_v47  ;;  %v3421_v51 = vclamps-f32 %v2339_v9, 30.0  ;;  %v2348_v46 = vpop.f32.mrf.mxu0  ;;  %v2869_v29 = vld [vmem:[%s5030_s22 + $0x160] sm:$0xff] }
 0x254   : > { %v4300_v19 = vpop.eup %4299  ;;  %2993 = vst.msk [vmem:[%s5041_s25 + $0x138] sm:$0xff] %vm2953_vm4, %v2928_v13  ;;  %v2927_v49 = vmul.f32 %v4298_v33, %v2863_v10  ;;  %4325 = vpow2.f32 %v2679_v6  ;;  %v3424_v31 = vclamps-f32 %v2354_v12, 30.0  ;;  %v2349_v18 = vadd.f32 %v5160_v42, %v2348_v46 }
 0x255   : > { %v4302_v21 = vpop.eup %4301  ;;  %v2930_v53 = vmul.f32 %v4300_v19, %v2866_v45  ;;  %4327 = vrcp.f32 %v2744_v50  ;;  %v2683_v8 = vmul.f32 1.442695, %v2562_v16  ;;  %v2561_v32 = vsub.f32 0.0, %v3421_v51  ;;  %v4079_v52 = vpop.f32.mrf.mxu0 }
 0x256   : > { %v4304_v28 = vpop.eup %4303  ;;  %2992 = vst.msk [vmem:[%s5041_s25 + $0x130] sm:$0xff] %vm2953_vm4, %v2927_v49  ;;  %v2743_v56 = vadd.f32 1.0, %v4302_v21  ;;  %4329 = vpow2.f32 %v2677_v48  ;;  %v2564_v35 = vsub.f32 0.0, %v3424_v31  ;;  %v3423_v54 = vclamps-f32 %v2349_v18, 30.0  ;;  %v2872_v48 = vld [vmem:[%s5030_s22 + $0x178] sm:$0xff]  ;;  %v2871_v31 = vld [vmem:[%s5030_s22 + $0x170] sm:$0xff] }
 0x257   : > { %v4306_v55 = vpop.eup %4305  ;;  %2995 = vst.msk [vmem:[%s5041_s25 + $0x148] sm:$0xff] %vm2953_vm4, %v2930_v53  ;;  %v2929_v57 = vmul.f32 %v4304_v28, %v2865_v30  ;;  %4331 = vpow2.f32 %v2683_v8  ;;  %v2681_v40 = vmul.f32 1.442695, %v2561_v32  ;;  %v2364_v59 = vadd.f32 %v5160_v42, %v4079_v52  ;;  %v2358_v14 = vpop.f32.mrf.mxu0  ;;  %v2874_v32 = vld [vmem:[%s5030_s22 + $0x188] sm:$0xff] }
 0x258   : > { %v4308_v22 = vpop.eup %4307  ;;  %4333 = vrcp.f32 %v2743_v56  ;;  %v2746_v15 = vadd.f32 1.0, %v4306_v55  ;;  %v2687_v37 = vmul.f32 1.442695, %v2564_v35  ;;  %v2563_v62 = vsub.f32 0.0, %v3423_v54  ;;  %v2873_v35 = vld [vmem:[%s5030_s22 + $0x180] sm:$0xff] }
 0x259   : > { %v4310_v5 = vpop.eup %4309  ;;  %2994 = vst.msk [vmem:[%s5041_s25 + $0x140] sm:$0xff] %vm2953_vm4, %v2929_v57  ;;  %v2932_v24 = vmul.f32 %v4308_v22, %v2868_v34  ;;  %4335 = vpow2.f32 %v2681_v40  ;;  %v3426_v61 = vclamps-f32 %v2364_v59, 30.0  ;;  %v2359_v36 = vadd.f32 %v5160_v42, %v2358_v14  ;;  %v4082_v44 = vpop.f32.mrf.mxu0  ;;  %v2876_v59 = vld [vmem:[%s5030_s22 + $0x198] sm:$0xff] }
 0x25a   : > { %v4312_v1 = vpop.eup %4311  ;;  %4337 = vrcp.f32 %v2746_v15  ;;  %v2745_v60 = vadd.f32 1.0, %v4310_v5  ;;  %v2685_v39 = vmul.f32 1.442695, %v2563_v62  ;;  %v2374_v0 = vadd.f32 %v5160_v42, %v4082_v44  ;;  %v2875_v15 = vld [vmem:[%s5030_s22 + $0x190] sm:$0xff]  ;;  %v2878_v62 = vld [vmem:[%s5030_s22 + $0x1a8] sm:$0xff] }
 0x25b   : > { %v4314_v63 = vpop.eup %4313  ;;  %2997 = vst.msk [vmem:[%s5041_s25 + $0x158] sm:$0xff] %vm2953_vm4, %v2932_v24  ;;  %v2931_v11 = vmul.f32 %v4312_v1, %v2867_v58  ;;  %4339 = vpow2.f32 %v2687_v37  ;;  %v2566_v4 = vsub.f32 0.0, %v3426_v61  ;;  %v3425_v38 = vclamps-f32 %v2359_v36, 30.0  ;;  %v2368_v23 = vpop.f32.mrf.mxu0  ;;  %v2877_v1 = vld [vmem:[%s5030_s22 + $0x1a0] sm:$0xff] }
 0x25c   : > { %v4316_v3 = vpop.eup %4315  ;;  %4341 = vrcp.f32 %v2745_v60  ;;  %v2748_v43 = vadd.f32 1.0, %v4314_v63  ;;  %v3428_v7 = vclamps-f32 %v2374_v0, 30.0  ;;  %v2369_v20 = vadd.f32 %v5160_v42, %v2368_v23  ;;  %v2880_v63 = vld [vmem:[%s5030_s22 + $0x1b8] sm:$0xff] }
 0x25d   : > { %v4318_v25 = vpop.eup %4317  ;;  %2996 = vst.msk [vmem:[%s5041_s25 + $0x150] sm:$0xff] %vm2953_vm4, %v2931_v11  ;;  %v2747_v6 = vadd.f32 1.0, %v4316_v3  ;;  %4343 = vpow2.f32 %v2685_v39  ;;  %v2691_v41 = vmul.f32 1.442695, %v2566_v4  ;;  %v2565_v27 = vsub.f32 0.0, %v3425_v38  ;;  %v2879_v3 = vld [vmem:[%s5030_s22 + $0x1b0] sm:$0xff] }
 0x25e   : > { %v4320_v10 = vpop.eup %4319  ;;  %4345 = vrcp.f32 %v2748_v43  ;;  %v2750_v47 = vadd.f32 1.0, %v4318_v25  ;;  %v2568_v9 = vsub.f32 0.0, %v3428_v7  ;;  %v3427_v26 = vclamps-f32 %v2369_v20, 30.0  ;;  %v2882_v20 = vld [vmem:[%s5030_s22 + $0x1c8] sm:$0xff] }
 0x25f   : > { %v4322_v2 = vpop.eup %4321  ;;  %v2934_v13 = vmul.f32 %v4320_v10, %v2870_v17  ;;  %4347 = vrcp.f32 %v2747_v6  ;;  %v2689_v42 = vmul.f32 1.442695, %v2565_v27  ;;  %v2881_v10 = vld [vmem:[%s5030_s22 + $0x1c0] sm:$0xff] }
 0x260   : > { %v4324_v45 = vpop.eup %4323  ;;  %4349 = vrcp.f32 %v2750_v47  ;;  %v2749_v12 = vadd.f32 1.0, %v4322_v2  ;;  %v2567_v33 = vsub.f32 0.0, %v3427_v26  ;;  %v2695_v51 = vmul.f32 1.442695, %v2568_v9  ;;  %v2884_v26 = vld [vmem:[%s5030_s22 + $0x1d8] sm:$0xff] }
 0x261   : > { %v4326_v50 = vpop.eup %4325  ;;  %2999 = vst.msk [vmem:[%s5041_s25 + $0x168] sm:$0xff] %vm2953_vm4, %v2934_v13  ;;  %v2933_v16 = vmul.f32 %v4324_v45, %v2869_v29  ;;  %4351 = vpow2.f32 %v2691_v41  ;;  %v2883_v45 = vld [vmem:[%s5030_s22 + $0x1d0] sm:$0xff] }
 0x262   : > { %v4328_v46 = vpop.eup %4327  ;;  %4353 = vrcp.f32 %v2749_v12  ;;  %v2752_v19 = vadd.f32 1.0, %v4326_v50  ;;  %v2693_v53 = vmul.f32 1.442695, %v2567_v33  ;;  %v2886_v50 = vld [vmem:[%s5030_s22 + $0x1e8] sm:$0xff] }
 0x263   : > { %v4330_v49 = vpop.eup %4329  ;;  %2998 = vst.msk [vmem:[%s5041_s25 + $0x160] sm:$0xff] %vm2953_vm4, %v2933_v16  ;;  %v2936_v30 = vmul.f32 %v4328_v46, %v2872_v48  ;;  %4355 = vpow2.f32 %v2689_v42 }
 0x264   : > { %v4332_v18 = vpop.eup %4331  ;;  %4357 = vrcp.f32 %v2752_v19  ;;  %v2751_v21 = vadd.f32 1.0, %v4330_v49  ;;  %v2888_v49 = vld [vmem:[%s5030_s22 + $0x1f8] sm:$0xff] }
 0x265   : > { %v4334_v8 = vpop.eup %4333  ;;  %3001 = vst.msk [vmem:[%s5041_s25 + $0x178] sm:$0xff] %vm2953_vm4, %v2936_v30  ;;  %v2754_v52 = vadd.f32 1.0, %v4332_v18  ;;  %4359 = vpow2.f32 %v2695_v51  ;;  %v2885_v51 = vld [vmem:[%s5030_s22 + $0x1e0] sm:$0xff] }
 0x266   : > { %v4336_v28 = vpop.eup %4335  ;;  %v2935_v34 = vmul.f32 %v4334_v8, %v2871_v31  ;;  %4361 = vrcp.f32 %v2751_v21  ;;  %v2887_v21 = vld [vmem:[%s5030_s22 + $0x1f0] sm:$0xff] }
 0x267   : > { %v4338_v56 = vpop.eup %4337  ;;  %4363 = vrcp.f32 %v2754_v52  ;;  %v2753_v54 = vadd.f32 1.0, %v4336_v28 }
 0x268   : > { %v4340_v55 = vpop.eup %4339  ;;  %3000 = vst.msk [vmem:[%s5041_s25 + $0x170] sm:$0xff] %vm2953_vm4, %v2935_v34  ;;  %v2938_v57 = vmul.f32 %v4338_v56, %v2874_v32  ;;  %4365 = vpow2.f32 %v2693_v53 }
 0x269   : > { %v4342_v40 = vpop.eup %4341  ;;  %4367 = vrcp.f32 %v2753_v54  ;;  %v2756_v14 = vadd.f32 1.0, %v4340_v55 }
 0x26a   : > { %v4344_v22 = vpop.eup %4343  ;;  %3003 = vst.msk [vmem:[%s5041_s25 + $0x188] sm:$0xff] %vm2953_vm4, %v2938_v57  ;;  %v2937_v58 = vmul.f32 %v4342_v40, %v2873_v35 }
 0x26b   : > { %v4346_v37 = vpop.eup %4345  ;;  %4369 = vrcp.f32 %v2756_v14  ;;  %v2755_v5 = vadd.f32 1.0, %v4344_v22 }
 0x26c   : > { %v4348_v24 = vpop.eup %4347  ;;  %3002 = vst.msk [vmem:[%s5041_s25 + $0x180] sm:$0xff] %vm2953_vm4, %v2937_v58  ;;  %v2940_v61 = vmul.f32 %v4346_v37, %v2876_v59 }
 0x26d   : > { %v4350_v36 = vpop.eup %4349  ;;  %v2939_v44 = vmul.f32 %v4348_v24, %v2875_v15  ;;  %4371 = vrcp.f32 %v2755_v5 }
 0x26e   : > { %v4352_v60 = vpop.eup %4351  ;;  %3005 = vst.msk [vmem:[%s5041_s25 + $0x198] sm:$0xff] %vm2953_vm4, %v2940_v61  ;;  %v2942_v39 = vmul.f32 %v4350_v36, %v2878_v62 }
 0x26f   : > { %v4354_v0 = vpop.eup %4353  ;;  %3004 = vst.msk [vmem:[%s5041_s25 + $0x190] sm:$0xff] %vm2953_vm4, %v2939_v44  ;;  %v2758_v11 = vadd.f32 1.0, %v4352_v60 }
 0x270   : > { %v4356_v4 = vpop.eup %4355  ;;  %3007 = vst.msk [vmem:[%s5041_s25 + $0x1a8] sm:$0xff] %vm2953_vm4, %v2942_v39  ;;  %v2941_v38 = vmul.f32 %v4354_v0, %v2877_v1 }
 0x271   : > { %v4358_v23 = vpop.eup %4357  ;;  %4373 = vrcp.f32 %v2758_v11  ;;  %v2757_v17 = vadd.f32 1.0, %v4356_v4 }
 0x272   : > { %v4360_v43 = vpop.eup %4359  ;;  %3006 = vst.msk [vmem:[%s5041_s25 + $0x1a0] sm:$0xff] %vm2953_vm4, %v2941_v38  ;;  %v2944_v7 = vmul.f32 %v4358_v23, %v2880_v63 }
 0x273   : > { %v4362_v25 = vpop.eup %4361  ;;  %4375 = vrcp.f32 %v2757_v17  ;;  %v2760_v6 = vadd.f32 1.0, %v4360_v43 }
 0x274   : > { %v4364_v41 = vpop.eup %4363  ;;  %3009 = vst.msk [vmem:[%s5041_s25 + $0x1b8] sm:$0xff] %vm2953_vm4, %v2944_v7  ;;  %v2943_v27 = vmul.f32 %v4362_v25, %v2879_v3 }
 0x275   : > { %v4366_v29 = vpop.eup %4365  ;;  %v2946_v47 = vmul.f32 %v4364_v41, %v2882_v20  ;;  %4377 = vrcp.f32 %v2760_v6 }
 0x276   : > { %v4368_v9 = vpop.eup %4367  ;;  %3008 = vst.msk [vmem:[%s5041_s25 + $0x1b0] sm:$0xff] %vm2953_vm4, %v2943_v27  ;;  %v2759_v2 = vadd.f32 1.0, %v4366_v29 }
 0x277   : > { %3011 = vst.msk [vmem:[%s5041_s25 + $0x1c8] sm:$0xff] %vm2953_vm4, %v2946_v47  ;;  %v2945_v13 = vmul.f32 %v4368_v9, %v2881_v10 }
 0x278   : > { %v4370_v42 = vpop.eup %4369  ;;  %4379 = vrcp.f32 %v2759_v2 }
 0x279   : > { %3010 = vst.msk [vmem:[%s5041_s25 + $0x1c0] sm:$0xff] %vm2953_vm4, %v2945_v13  ;;  %v2948_v48 = vmul.f32 %v4370_v42, %v2884_v26 }
 0x27a   : > { %v4372_v12 = vpop.eup %4371 }
 0x27b   : > { %3013 = vst.msk [vmem:[%s5041_s25 + $0x1d8] sm:$0xff] %vm2953_vm4, %v2948_v48  ;;  %v2947_v33 = vmul.f32 %v4372_v12, %v2883_v45 }
 0x27d   : > { %3012 = vst.msk [vmem:[%s5041_s25 + $0x1d0] sm:$0xff] %vm2953_vm4, %v2947_v33 }
 0x27e   : > { %v4374_v16 = vpop.eup %4373 }
 0x27f   : > { %v2950_v46 = vmul.f32 %v4374_v16, %v2886_v50 }
 0x280   : > { %v4376_v19 = vpop.eup %4375 }
 0x281   : > { %3015 = vst.msk [vmem:[%s5041_s25 + $0x1e8] sm:$0xff] %vm2953_vm4, %v2950_v46  ;;  %v2949_v30 = vmul.f32 %v4376_v19, %v2885_v51 }
 0x282   : > { %v4378_v31 = vpop.eup %4377 }
 0x283   : > { %3014 = vst.msk [vmem:[%s5041_s25 + $0x1e0] sm:$0xff] %vm2953_vm4, %v2949_v30  ;;  %v2952_v18 = vmul.f32 %v4378_v31, %v2888_v49 }
 0x285   : > { %v4380_v53 = vpop.eup %4379  ;;  %3017 = vst.msk [vmem:[%s5041_s25 + $0x1f8] sm:$0xff] %vm2953_vm4, %v2952_v18 }
 0x286   : > { %v2951_v8 = vmul.f32 %v4380_v53, %v2887_v21 }
 0x288   : > { %3016 = vst.msk [vmem:[%s5041_s25 + $0x1f0] sm:$0xff] %vm2953_vm4, %v2951_v8 }
 0x289 PF: > { %s18_s9 = sadd.s32 1, %s4420_s9   ;;  %s5308_s27 = smov %s4412_s29 }
 0x28a   : > { %p15_p7 = scmp.ge.s32.totalorder %s18_s9, 6   ;;  %s5309_s28 = smov %s4416_s30 }
 0x28b   : > { %s5310_s29 = smov %s5313_s10  ;;  %s5311_s30 = smov %s5317_s11 }
 0x28c   :  { %17 = sbr.rel (!%p15_p7) target bundleno = 3 (0x3), region = 91 }

</bundles_post_ra>
